<compile_context>
chip_gen: v7x
topology: tpu7x:2x2x1
jax: 0.10.0
libtpu: 0.0.40
codegen_flags: <defaults>
</compile_context>

<pallas_src>
import functools

import jax
import jax.numpy as jnp
from jax import lax
from jax.experimental import pallas as pl
from jax.experimental.pallas import tpu as pltpu

SEQ_LEN = 24  # fc1 expects 128*3 features => L / 2^3 == 3 => L == 24


# ---------------------------------------------------------------------------
# Kernel: six lane-dense matmuls + three half-lane max-pools, all on (BB, .) tiles.
# ---------------------------------------------------------------------------
def _forward_kernel(x_ref, m1_ref, b1_ref, m2_ref, b2_ref, m3_ref, b3_ref,
                    mf1_ref, bf1_ref, mf2_ref, bf2_ref, wf3_ref, bf3_ref,
                    o_ref, *, compute_dtype):
    def dense_relu(h, w_ref, b_ref):
        y = jnp.dot(h.astype(compute_dtype), w_ref[...],
                    preferred_element_type=jnp.float32) + b_ref[...]
        return jnp.maximum(y, 0.0)

    def pool(h):
        # MaxPool1d(2, 2): conv columns are parity-major over the output position,
        # so pooling is a 128-aligned half-lane maximum (pure VPU, no relayout).
        half = h.shape[-1] // 2
        return jnp.maximum(h[:, :half], h[:, half:])

    h = x_ref[...]                            # (BB, 24)
    h = pool(dense_relu(h, m1_ref, b1_ref))   # conv1+relu+pool1 -> (BB, 384)
    h = pool(dense_relu(h, m2_ref, b2_ref))   # conv2+relu+pool2 -> (BB, 384)
    h = pool(dense_relu(h, m3_ref, b3_ref))   # conv3+relu+pool3 -> (BB, 384)
    h = dense_relu(h, mf1_ref, bf1_ref)       # fc1+relu         -> (BB, 256)
    h = dense_relu(h, mf2_ref, bf2_ref)       # fc2+relu         -> (BB, 128)
    # fc3, emitted as a lane-dense (1, BB) row: (1,128) @ (128,BB).
    out = jnp.dot(wf3_ref[...], h.T.astype(compute_dtype),
                  preferred_element_type=jnp.float32) + bf3_ref[...]
    o_ref[0] = out


# ---------------------------------------------------------------------------
# Wrapper-side weight preparation (plain JAX glue, traced once).
# ---------------------------------------------------------------------------
def _conv_as_dense(w, b, length):
    """Fold a stride-1, pad-1, k=3 Conv1d into a dense (length*Cin, length*Cout) matrix.

    Row order   : i = l_in * Cin + c_in            (matches the activation lane order).
    Column order: j = parity*(length//2*Cout) + (l_out//2)*Cout + c_out
                  (even output positions first)    so MaxPool1d(2,2) == half-lane max.
    """
    c_out_n, c_in_n, k = w.shape
    taps = jnp.arange(length)[:, None] - jnp.arange(length)[None, :] + 1   # (l_in, l_out)
    valid = (taps >= 0) & (taps < k)
    wt = jnp.transpose(w, (2, 1, 0))                       # (k, Cin, Cout)
    t = wt[jnp.clip(taps, 0, k - 1)]                       # (l_in, l_out, Cin, Cout)
    t = t * valid[:, :, None, None].astype(w.dtype)        # zero the out-of-band taps
    t = jnp.transpose(t, (0, 2, 1, 3))                     # (l_in, Cin, l_out, Cout)
    t = t.reshape(length, c_in_n, length // 2, 2, c_out_n)  # split l_out -> (pos, parity)
    t = jnp.transpose(t, (0, 1, 3, 2, 4))                  # (l_in, Cin, parity, pos, Cout)
    m = t.reshape(length * c_in_n, length * c_out_n)

    bias = jnp.broadcast_to(b[None, :], (length, c_out_n))
    bias = bias.reshape(length // 2, 2, c_out_n).transpose(1, 0, 2).reshape(1, -1)
    return m, bias


def sales_prediction_cnn(x, params, *, block_b=None, compute_dtype=jnp.float32):
    """x: (B, 24) float32; params in torch layout. Returns (B, 1) float32."""
    (w1, b1, w2, b2, w3, b3, wf1, bf1, wf2, bf2, wf3, bf3) = params
    B = x.shape[0]

    if block_b is None:
        block_b = min(128, max(8, -(-B // 8) * 8))   # multiple of 8, capped at 128
    BB = int(block_b)
    assert BB % 8 == 0, "block_b must be a multiple of 8"
    nb = -(-B // BB)
    Bp = nb * BB

    x_p = jnp.pad(x.astype(jnp.float32), ((0, Bp - B), (0, 0)))   # (Bp, 24)

    # Fold the convs into dense pooling-friendly matrices; permute fc1 for the
    # torch channel-major flatten (f = c*3 + l) given our lane order (l*128 + c).
    m1, bb1 = _conv_as_dense(w1, b1, 24)       # (24, 768),  (1, 768)
    m2, bb2 = _conv_as_dense(w2, b2, 12)       # (384, 768), (1, 768)
    m3, bb3 = _conv_as_dense(w3, b3, 6)        # (384, 768), (1, 768)
    mf1 = jnp.transpose(wf1).reshape(128, 3, 256).transpose(1, 0, 2).reshape(384, 256)
    mf2 = jnp.transpose(wf2)                   # (256, 128)
    bf1k = bf1.reshape(1, -1)
    bf2k = bf2.reshape(1, -1)
    wf3k = wf3.reshape(1, 128)
    bf3k = bf3.reshape(1, 1)

    cdt = compute_dtype
    mats = [m1.astype(cdt), bb1, m2.astype(cdt), bb2, m3.astype(cdt), bb3,
            mf1.astype(cdt), bf1k, mf2.astype(cdt), bf2k, wf3k.astype(cdt), bf3k]

    def const_spec(a):
        return pl.BlockSpec(a.shape, lambda i: (0,) * a.ndim)

    kernel = functools.partial(_forward_kernel, compute_dtype=cdt)
    out = pl.pallas_call(
        kernel,
        out_shape=jax.ShapeDtypeStruct((nb, 1, BB), jnp.float32),
        grid=(nb,),
        in_specs=[pl.BlockSpec((BB, SEQ_LEN), lambda i: (i, 0))]
                 + [const_spec(a) for a in mats],
        out_specs=pl.BlockSpec((1, 1, BB), lambda i: (i, 0, 0)),
        compiler_params=pltpu.CompilerParams(
            dimension_semantics=("parallel",),
            vmem_limit_bytes=32 * 1024 * 1024),
    )(x_p, *mats)

    return out.reshape(Bp)[:B].reshape(B, 1)


# ---------------------------------------------------------------------------
# Pure-JAX reference with exact PyTorch semantics (NCW conv, channel-major flatten).
# ---------------------------------------------------------------------------
def reference_forward(x, params):
    w1, b1, w2, b2, w3, b3, wf1, bf1, wf2, bf2, wf3, bf3 = params
    h = x[:, None, :]                                       # (B, 1, 24)

    def conv(h, w, b):
        y = lax.conv_general_dilated(h, w, window_strides=(1,), padding=((1, 1),),
                                     dimension_numbers=('NCH', 'OIH', 'NCH'))
        return jax.nn.relu(y + b[None, :, None])

    def pool(h):
        B, C, L = h.shape
        return jnp.max(h.reshape(B, C, L // 2, 2), axis=-1)

    h = pool(conv(h, w1, b1))
    h = pool(conv(h, w2, b2))
    h = pool(conv(h, w3, b3))
    h = h.reshape(h.shape[0], -1)                           # (B, 384), channel-major
    h = jax.nn.relu(h @ wf1.T + bf1)
    h = jax.nn.relu(h @ wf2.T + bf2)
    return h @ wf3.T + bf3


if __name__ == "__main__":
    key = jax.random.PRNGKey(0)
    keys = jax.random.split(key, 13)
    B = 2

    def nrm(k, shape, fan_in):
        return jax.random.normal(k, shape, jnp.float32) / jnp.sqrt(float(fan_in))

    params = (
        nrm(keys[0], (32, 1, 3), 3),     nrm(keys[1], (32,), 3),      # conv1
        nrm(keys[2], (64, 32, 3), 96),   nrm(keys[3], (64,), 96),     # conv2
        nrm(keys[4], (128, 64, 3), 192), nrm(keys[5], (128,), 192),   # conv3
        nrm(keys[6], (256, 384), 384),   nrm(keys[7], (256,), 384),   # fc1
        nrm(keys[8], (128, 256), 256),   nrm(keys[9], (128,), 256),   # fc2
        nrm(keys[10], (1, 128), 128),    nrm(keys[11], (1,), 128),    # fc3
    )
    x = jax.random.normal(keys[12], (B, SEQ_LEN), jnp.float32)

    ref = jax.block_until_ready(reference_forward(x, params))

    # f32 path (exact check).
    out = jax.block_until_ready(sales_prediction_cnn(x, params))
    assert out.shape == (B, 1), out.shape
    if not jnp.allclose(out, ref, rtol=1e-3, atol=1e-3):
        raise AssertionError(f"f32 kernel/reference mismatch:\n{out}\nvs\n{ref}")

    # bf16-matmul / f32-accumulate path (v6e/v7x fast path), loose check.
    out_bf16 = jax.block_until_ready(
        sales_prediction_cnn(x, params, compute_dtype=jnp.bfloat16))
    if not jnp.allclose(out_bf16, ref, rtol=1e-1, atol=1e-1):
        raise AssertionError(f"bf16 kernel/reference mismatch:\n{out_bf16}\nvs\n{ref}")

    print("KERNEL_OK")
</pallas_src>

<mosaic_0001>
module attributes {stable_mosaic.version = 11 : i64} {
  func.func @_forward_kernel(%arg0: i32, %arg1: memref<8x24xf32, #tpu.memory_space<vmem>>, %arg2: memref<24x768xf32, #tpu.memory_space<vmem>>, %arg3: memref<1x768xf32, #tpu.memory_space<vmem>>, %arg4: memref<384x768xf32, #tpu.memory_space<vmem>>, %arg5: memref<1x768xf32, #tpu.memory_space<vmem>>, %arg6: memref<384x768xf32, #tpu.memory_space<vmem>>, %arg7: memref<1x768xf32, #tpu.memory_space<vmem>>, %arg8: memref<384x256xf32, #tpu.memory_space<vmem>>, %arg9: memref<1x256xf32, #tpu.memory_space<vmem>>, %arg10: memref<256x128xf32, #tpu.memory_space<vmem>>, %arg11: memref<1x128xf32, #tpu.memory_space<vmem>>, %arg12: memref<1x128xf32, #tpu.memory_space<vmem>>, %arg13: memref<1x1xf32, #tpu.memory_space<vmem>>, %arg14: memref<1x1x8xf32, #tpu.memory_space<vmem>>) attributes {dimension_semantics = [#tpu.dimension_semantics<parallel>], iteration_bounds = array<i64: 1>, scalar_prefetch = 0 : i64, scratch_operands = 0 : i64, tpu.core_type = #tpu.core_type<tc>, window_params = [{transform_indices = @transform_0, window_bounds = array<i64: 8, 24>}, {pipeline_mode = #tpu.pipeline_mode<synchronous>, transform_indices = @transform_1, window_bounds = array<i64: 24, 768>}, {pipeline_mode = #tpu.pipeline_mode<synchronous>, transform_indices = @transform_2, window_bounds = array<i64: 1, 768>}, {pipeline_mode = #tpu.pipeline_mode<synchronous>, transform_indices = @transform_3, window_bounds = array<i64: 384, 768>}, {pipeline_mode = #tpu.pipeline_mode<synchronous>, transform_indices = @transform_4, window_bounds = array<i64: 1, 768>}, {pipeline_mode = #tpu.pipeline_mode<synchronous>, transform_indices = @transform_5, window_bounds = array<i64: 384, 768>}, {pipeline_mode = #tpu.pipeline_mode<synchronous>, transform_indices = @transform_6, window_bounds = array<i64: 1, 768>}, {pipeline_mode = #tpu.pipeline_mode<synchronous>, transform_indices = @transform_7, window_bounds = array<i64: 384, 256>}, {pipeline_mode = #tpu.pipeline_mode<synchronous>, transform_indices = @transform_8, window_bounds = array<i64: 1, 256>}, {pipeline_mode = #tpu.pipeline_mode<synchronous>, transform_indices = @transform_9, window_bounds = array<i64: 256, 128>}, {pipeline_mode = #tpu.pipeline_mode<synchronous>, transform_indices = @transform_10, window_bounds = array<i64: 1, 128>}, {pipeline_mode = #tpu.pipeline_mode<synchronous>, transform_indices = @transform_11, window_bounds = array<i64: 1, 128>}, {pipeline_mode = #tpu.pipeline_mode<synchronous>, transform_indices = @transform_12, window_bounds = array<i64: 1, 1>}, {transform_indices = @transform_13, window_bounds = array<i64: 1, 1, 8>}]} {
    %c0 = arith.constant 0 : index
    %c0_0 = arith.constant 0 : index
    %0 = vector.load %arg1[%c0, %c0_0] : memref<8x24xf32, #tpu.memory_space<vmem>>, vector<8x24xf32>
    %c0_1 = arith.constant 0 : index
    %c0_2 = arith.constant 0 : index
    %1 = vector.load %arg2[%c0_1, %c0_2] : memref<24x768xf32, #tpu.memory_space<vmem>>, vector<24x768xf32>
    %cst = arith.constant dense<0.000000e+00> : vector<8x768xf32>
    %2 = tpu.matmul %0, %1, %cst {dimension_numbers = #tpu.dot_dimension_numbers<[1], [0], [0], [1], [0, 0, 1, 1], [], []>} : vector<8x24xf32>, vector<24x768xf32>, vector<8x768xf32> -> vector<8x768xf32>
    %c0_3 = arith.constant 0 : index
    %c0_4 = arith.constant 0 : index
    %3 = vector.load %arg3[%c0_3, %c0_4] : memref<1x768xf32, #tpu.memory_space<vmem>>, vector<1x768xf32>
    %4 = vector.broadcast %3 : vector<1x768xf32> to vector<8x768xf32>
    %5 = arith.addf %2, %4 : vector<8x768xf32>
    %cst_5 = arith.constant 0.000000e+00 : f32
    %6 = vector.broadcast %cst_5 : f32 to vector<8x768xf32>
    %7 = arith.maximumf %5, %6 : vector<8x768xf32>
    %8 = vector.extract_strided_slice %7 {offsets = [0, 0], sizes = [8, 384], strides = [1, 1]} : vector<8x768xf32> to vector<8x384xf32>
    %9 = vector.extract_strided_slice %7 {offsets = [0, 384], sizes = [8, 384], strides = [1, 1]} : vector<8x768xf32> to vector<8x384xf32>
    %10 = arith.maximumf %8, %9 : vector<8x384xf32>
    %c0_6 = arith.constant 0 : index
    %c0_7 = arith.constant 0 : index
    %11 = vector.load %arg4[%c0_6, %c0_7] : memref<384x768xf32, #tpu.memory_space<vmem>>, vector<384x768xf32>
    %cst_8 = arith.constant dense<0.000000e+00> : vector<8x768xf32>
    %12 = tpu.matmul %10, %11, %cst_8 {dimension_numbers = #tpu.dot_dimension_numbers<[1], [0], [0], [1], [0, 0, 1, 1], [], []>} : vector<8x384xf32>, vector<384x768xf32>, vector<8x768xf32> -> vector<8x768xf32>
    %c0_9 = arith.constant 0 : index
    %c0_10 = arith.constant 0 : index
    %13 = vector.load %arg5[%c0_9, %c0_10] : memref<1x768xf32, #tpu.memory_space<vmem>>, vector<1x768xf32>
    %14 = vector.broadcast %13 : vector<1x768xf32> to vector<8x768xf32>
    %15 = arith.addf %12, %14 : vector<8x768xf32>
    %cst_11 = arith.constant 0.000000e+00 : f32
    %16 = vector.broadcast %cst_11 : f32 to vector<8x768xf32>
    %17 = arith.maximumf %15, %16 : vector<8x768xf32>
    %18 = vector.extract_strided_slice %17 {offsets = [0, 0], sizes = [8, 384], strides = [1, 1]} : vector<8x768xf32> to vector<8x384xf32>
    %19 = vector.extract_strided_slice %17 {offsets = [0, 384], sizes = [8, 384], strides = [1, 1]} : vector<8x768xf32> to vector<8x384xf32>
    %20 = arith.maximumf %18, %19 : vector<8x384xf32>
    %c0_12 = arith.constant 0 : index
    %c0_13 = arith.constant 0 : index
    %21 = vector.load %arg6[%c0_12, %c0_13] : memref<384x768xf32, #tpu.memory_space<vmem>>, vector<384x768xf32>
    %cst_14 = arith.constant dense<0.000000e+00> : vector<8x768xf32>
    %22 = tpu.matmul %20, %21, %cst_14 {dimension_numbers = #tpu.dot_dimension_numbers<[1], [0], [0], [1], [0, 0, 1, 1], [], []>} : vector<8x384xf32>, vector<384x768xf32>, vector<8x768xf32> -> vector<8x768xf32>
    %c0_15 = arith.constant 0 : index
    %c0_16 = arith.constant 0 : index
    %23 = vector.load %arg7[%c0_15, %c0_16] : memref<1x768xf32, #tpu.memory_space<vmem>>, vector<1x768xf32>
    %24 = vector.broadcast %23 : vector<1x768xf32> to vector<8x768xf32>
    %25 = arith.addf %22, %24 : vector<8x768xf32>
    %cst_17 = arith.constant 0.000000e+00 : f32
    %26 = vector.broadcast %cst_17 : f32 to vector<8x768xf32>
    %27 = arith.maximumf %25, %26 : vector<8x768xf32>
    %28 = vector.extract_strided_slice %27 {offsets = [0, 0], sizes = [8, 384], strides = [1, 1]} : vector<8x768xf32> to vector<8x384xf32>
    %29 = vector.extract_strided_slice %27 {offsets = [0, 384], sizes = [8, 384], strides = [1, 1]} : vector<8x768xf32> to vector<8x384xf32>
    %30 = arith.maximumf %28, %29 : vector<8x384xf32>
    %c0_18 = arith.constant 0 : index
    %c0_19 = arith.constant 0 : index
    %31 = vector.load %arg8[%c0_18, %c0_19] : memref<384x256xf32, #tpu.memory_space<vmem>>, vector<384x256xf32>
    %cst_20 = arith.constant dense<0.000000e+00> : vector<8x256xf32>
    %32 = tpu.matmul %30, %31, %cst_20 {dimension_numbers = #tpu.dot_dimension_numbers<[1], [0], [0], [1], [0, 0, 1, 1], [], []>} : vector<8x384xf32>, vector<384x256xf32>, vector<8x256xf32> -> vector<8x256xf32>
    %c0_21 = arith.constant 0 : index
    %c0_22 = arith.constant 0 : index
    %33 = vector.load %arg9[%c0_21, %c0_22] : memref<1x256xf32, #tpu.memory_space<vmem>>, vector<1x256xf32>
    %34 = vector.broadcast %33 : vector<1x256xf32> to vector<8x256xf32>
    %35 = arith.addf %32, %34 : vector<8x256xf32>
    %cst_23 = arith.constant 0.000000e+00 : f32
    %36 = vector.broadcast %cst_23 : f32 to vector<8x256xf32>
    %37 = arith.maximumf %35, %36 : vector<8x256xf32>
    %c0_24 = arith.constant 0 : index
    %c0_25 = arith.constant 0 : index
    %38 = vector.load %arg10[%c0_24, %c0_25] : memref<256x128xf32, #tpu.memory_space<vmem>>, vector<256x128xf32>
    %cst_26 = arith.constant dense<0.000000e+00> : vector<8x128xf32>
    %39 = tpu.matmul %37, %38, %cst_26 {dimension_numbers = #tpu.dot_dimension_numbers<[1], [0], [0], [1], [0, 0, 1, 1], [], []>} : vector<8x256xf32>, vector<256x128xf32>, vector<8x128xf32> -> vector<8x128xf32>
    %c0_27 = arith.constant 0 : index
    %c0_28 = arith.constant 0 : index
    %40 = vector.load %arg11[%c0_27, %c0_28] : memref<1x128xf32, #tpu.memory_space<vmem>>, vector<1x128xf32>
    %41 = vector.broadcast %40 : vector<1x128xf32> to vector<8x128xf32>
    %42 = arith.addf %39, %41 : vector<8x128xf32>
    %cst_29 = arith.constant 0.000000e+00 : f32
    %43 = vector.broadcast %cst_29 : f32 to vector<8x128xf32>
    %44 = arith.maximumf %42, %43 : vector<8x128xf32>
    %c0_30 = arith.constant 0 : index
    %c0_31 = arith.constant 0 : index
    %45 = vector.load %arg12[%c0_30, %c0_31] : memref<1x128xf32, #tpu.memory_space<vmem>>, vector<1x128xf32>
    %46 = tpu.transpose %44, [1, 0] : vector<8x128xf32> -> vector<128x8xf32>
    %cst_32 = arith.constant dense<0.000000e+00> : vector<1x8xf32>
    %47 = tpu.matmul %45, %46, %cst_32 {dimension_numbers = #tpu.dot_dimension_numbers<[1], [0], [0], [1], [0, 0, 1, 1], [], []>} : vector<1x128xf32>, vector<128x8xf32>, vector<1x8xf32> -> vector<1x8xf32>
    %c0_33 = arith.constant 0 : index
    %c0_34 = arith.constant 0 : index
    %48 = vector.load %arg13[%c0_33, %c0_34] : memref<1x1xf32, #tpu.memory_space<vmem>>, vector<1x1xf32>
    %49 = vector.broadcast %48 : vector<1x1xf32> to vector<1x8xf32>
    %50 = arith.addf %47, %49 : vector<1x8xf32>
    %c0_35 = arith.constant 0 : index
    %c0_36 = arith.constant 0 : index
    %c0_37 = arith.constant 0 : index
    %51 = vector.load %arg14[%c0_35, %c0_36, %c0_37] : memref<1x1x8xf32, #tpu.memory_space<vmem>>, vector<1x1x8xf32>
    %52 = vector.shape_cast %51 : vector<1x1x8xf32> to vector<1x8xf32>
    %53 = vector.shape_cast %50 : vector<1x8xf32> to vector<1x1x8xf32>
    tpu.vector_store %arg14[%c0_35, %c0_36, %c0_37], %53 {strides = array<i32>} : memref<1x1x8xf32, #tpu.memory_space<vmem>>, vector<1x1x8xf32>,
    return
  }
  func.func @transform_0(%arg0: i32) -> (i32, i32) {
    %c0_i32 = arith.constant 0 : i32
    %c0_i32_0 = arith.constant 0 : i32
    return %arg0, %c0_i32 : i32, i32
  }
  func.func @transform_1(%arg0: i32) -> (i32, i32) {
    %c0_i32 = arith.constant 0 : i32
    %c0_i32_0 = arith.constant 0 : i32
    %c0_i32_1 = arith.constant 0 : i32
    return %c0_i32, %c0_i32_0 : i32, i32
  }
  func.func @transform_2(%arg0: i32) -> (i32, i32) {
    %c0_i32 = arith.constant 0 : i32
    %c0_i32_0 = arith.constant 0 : i32
    %c0_i32_1 = arith.constant 0 : i32
    return %c0_i32, %c0_i32_0 : i32, i32
  }
  func.func @transform_3(%arg0: i32) -> (i32, i32) {
    %c0_i32 = arith.constant 0 : i32
    %c0_i32_0 = arith.constant 0 : i32
    %c0_i32_1 = arith.constant 0 : i32
    return %c0_i32, %c0_i32_0 : i32, i32
  }
  func.func @transform_4(%arg0: i32) -> (i32, i32) {
    %c0_i32 = arith.constant 0 : i32
    %c0_i32_0 = arith.constant 0 : i32
    %c0_i32_1 = arith.constant 0 : i32
    return %c0_i32, %c0_i32_0 : i32, i32
  }
  func.func @transform_5(%arg0: i32) -> (i32, i32) {
    %c0_i32 = arith.constant 0 : i32
    %c0_i32_0 = arith.constant 0 : i32
    %c0_i32_1 = arith.constant 0 : i32
    return %c0_i32, %c0_i32_0 : i32, i32
  }
  func.func @transform_6(%arg0: i32) -> (i32, i32) {
    %c0_i32 = arith.constant 0 : i32
    %c0_i32_0 = arith.constant 0 : i32
    %c0_i32_1 = arith.constant 0 : i32
    return %c0_i32, %c0_i32_0 : i32, i32
  }
  func.func @transform_7(%arg0: i32) -> (i32, i32) {
    %c0_i32 = arith.constant 0 : i32
    %c0_i32_0 = arith.constant 0 : i32
    %c0_i32_1 = arith.constant 0 : i32
    return %c0_i32, %c0_i32_0 : i32, i32
  }
  func.func @transform_8(%arg0: i32) -> (i32, i32) {
    %c0_i32 = arith.constant 0 : i32
    %c0_i32_0 = arith.constant 0 : i32
    %c0_i32_1 = arith.constant 0 : i32
    return %c0_i32, %c0_i32_0 : i32, i32
  }
  func.func @transform_9(%arg0: i32) -> (i32, i32) {
    %c0_i32 = arith.constant 0 : i32
    %c0_i32_0 = arith.constant 0 : i32
    %c0_i32_1 = arith.constant 0 : i32
    return %c0_i32, %c0_i32_0 : i32, i32
  }
  func.func @transform_10(%arg0: i32) -> (i32, i32) {
    %c0_i32 = arith.constant 0 : i32
    %c0_i32_0 = arith.constant 0 : i32
    %c0_i32_1 = arith.constant 0 : i32
    return %c0_i32, %c0_i32_0 : i32, i32
  }
  func.func @transform_11(%arg0: i32) -> (i32, i32) {
    %c0_i32 = arith.constant 0 : i32
    %c0_i32_0 = arith.constant 0 : i32
    %c0_i32_1 = arith.constant 0 : i32
    return %c0_i32, %c0_i32_0 : i32, i32
  }
  func.func @transform_12(%arg0: i32) -> (i32, i32) {
    %c0_i32 = arith.constant 0 : i32
    %c0_i32_0 = arith.constant 0 : i32
    %c0_i32_1 = arith.constant 0 : i32
    return %c0_i32, %c0_i32_0 : i32, i32
  }
  func.func @transform_13(%arg0: i32) -> (i32, i32, i32) {
    %c0_i32 = arith.constant 0 : i32
    %c0_i32_0 = arith.constant 0 : i32
    %c0_i32_1 = arith.constant 0 : i32
    return %arg0, %c0_i32, %c0_i32_0 : i32, i32, i32
  }
}

</mosaic_0001>

<bundles_post_ra>
// kernel: tpu_custom_call.1
= control target key start
LH: loop header
LB: loop body
LE: loop exit
PB: predicated region body
PF: predicated region fallthrough
CT: control target
= control target key end

     0   :  { %s3911_s0 = inlined_call_operand.hbm [shape: f32[8,24], index: 0, kind: input, shape index: {}]   ;;  %s3912_s1 = inlined_call_operand.hbm [shape: f32[24,768], index: 1, kind: input, shape index: {}]   ;;  %s3913_s2 = inlined_call_operand.hbm [shape: f32[1,768], index: 2, kind: input, shape index: {}]   ;;  %s3914_s3 = inlined_call_operand.hbm [shape: f32[384,768], index: 3, kind: input, shape index: {}]   ;;  %s3915_s4 = inlined_call_operand.hbm [shape: f32[1,768], index: 4, kind: input, shape index: {}]   ;;  %s3916_s5 = inlined_call_operand.hbm [shape: f32[384,768], index: 5, kind: input, shape index: {}]   ;;  %s3917_s6 = inlined_call_operand.hbm [shape: f32[1,768], index: 6, kind: input, shape index: {}]   ;;  %s3918_s7 = inlined_call_operand.hbm [shape: f32[384,256], index: 7, kind: input, shape index: {}]   ;;  %s3919_s8 = inlined_call_operand.hbm [shape: f32[1,256], index: 8, kind: input, shape index: {}]   ;;  %s3920_s9 = inlined_call_operand.hbm [shape: f32[256,128], index: 9, kind: input, shape index: {}]   ;;  %s3921_s10 = inlined_call_operand.hbm [shape: f32[1,128], index: 10, kind: input, shape index: {}]   ;;  %s3922_s11 = inlined_call_operand.hbm [shape: f32[1,128], index: 11, kind: input, shape index: {}]   ;;  %s3923_s12 = inlined_call_operand.<no memory space> [shape: f32[1,1], index: 12, kind: input, shape index: {}]   ;;  %s3924_s13 = inlined_call_operand.hbm [shape: f32[1,1,8], index: 13, kind: output, shape index: {}]  }
   0x1   :  { %v18_v0 = vstv %s3923_s12 }
   0x2   :  { %19 = vst [vmem:[#allocation2] sm:$0x1] %v18_v0 }
   0x3   :  { %20 = vsyncpa [#allocation4], 0 }
   0x4   :  { %21 = vsyncpa [#allocation7], 0 }
   0x5   :  { %22 = vsyncpa [#allocation10], 0 }
   0x6   :  { %23 = vsyncpa [#allocation13], 0 }
   0x7   :  { %24 = vsyncpa [#allocation16], 0 }
   0x8   :  { %25 = vsyncpa [#allocation19], 0 }
   0x9   :  { %26 = vsyncpa [#allocation22], 0 }
   0xa   :  { %27 = vsyncpa [#allocation5], 0  ;;  %s3564_s27 = smov [#allocation6]   ;;  %s3262_s14 = scalar_lea.hbm %s3912_s1, 2304 }
   0xb   :  { %s43_s28 = sshll.u32 %s3564_s27, 4  ;;  %p3263_p0 = scmp.ne.s32.totalorder %s3912_s1, %s3262_s14  ;;  %s44_s28 = int_to_ptr.vmem [resolvable:$true] %s43_s28 }
   0xc   :  { %p3266_p1 = scmp.lt.u32.totalorder %s3262_s14, %s3912_s1 }
   0xe   :  { %p3268_p2 = pnand %p3266_p1, %p3263_p0 }
  0x10   :  { %3271 = shalt.err (!%p3268_p2)
}
  0x11   :  { %s3272_s18 = scalar_lea.vmem %s44_s28, 2304  ;;  %p3277_p4 = scmp.lt.s32.totalorder %s44_s28, %s44_s28 }
  0x12   :  { %p3273_p3 = scmp.ne.s32.totalorder %s44_s28, %s3272_s18  ;;  %p3278_p5 = scmp.lt.s32.totalorder %s3272_s18, %s3272_s18 }
  0x14   :  { %p3279_p6 = por %p3278_p5, %p3277_p4 }
  0x16   :  { %p3280_p7 = pnand %p3279_p6, %p3273_p3 }
  0x18   :  { %3283 = shalt.err (!%p3280_p7)
}
  0x19   :  { %s3565_s19 = smov 768   ;;  %s3566_s20 = smov 48  }
  0x1a   :  { %49 = dma.hbm_to_vmem [thread:$0]  %s3912_s1, 2304, %s44_s28, [#allocation7], %s3565_s19, %s3565_s19, %s3566_s20  }
  0x1b   :  { %s3567_s23 = smov [#allocation9]   ;;  %s3568_s25 = smov [#allocation12]  }
  0x1c   :  { %s65_s24 = sshll.u32 %s3567_s23, 4  ;;  %s87_s26 = sshll.u32 %s3568_s25, 4  ;;  %s66_s24 = int_to_ptr.vmem [resolvable:$true] %s65_s24  ;;  %s88_s26 = int_to_ptr.vmem [resolvable:$true] %s87_s26 }
  0x1d   :  { %s3284_s30 = scalar_lea.hbm %s3914_s3, 36864 }
  0x1e   :  { %p3285_p8 = scmp.ne.s32.totalorder %s3914_s3, %s3284_s30  ;;  %p3288_p9 = scmp.lt.u32.totalorder %s3284_s30, %s3914_s3 }
  0x20   :  { %p3290_p10 = pnand %p3288_p9, %p3285_p8 }
  0x22   :  { %3293 = shalt.err (!%p3290_p10)
}
  0x23   :  { %s3294_s1 = scalar_lea.vmem %s66_s24, 36864  ;;  %p3299_p12 = scmp.lt.s32.totalorder %s66_s24, %s66_s24 }
  0x24   :  { %p3295_p11 = scmp.ne.s32.totalorder %s66_s24, %s3294_s1  ;;  %p3300_p13 = scmp.lt.s32.totalorder %s3294_s1, %s3294_s1 }
  0x26   :  { %p3301_p0 = por %p3300_p13, %p3299_p12 }
  0x28   :  { %p3302_p1 = pnand %p3301_p0, %p3295_p11 }
  0x2a   :  { %3305 = shalt.err (!%p3302_p1)
}
  0x2b   :  { %71 = dma.hbm_to_vmem [thread:$0]  %s3914_s3, 36864, %s66_s24, [#allocation10], %s3565_s19, %s3565_s19, %s3566_s20  }
  0x2c   :  { %s3306_s22 = scalar_lea.hbm %s3916_s5, 36864 }
  0x2d   :  { %p3307_p2 = scmp.ne.s32.totalorder %s3916_s5, %s3306_s22  ;;  %p3310_p3 = scmp.lt.u32.totalorder %s3306_s22, %s3916_s5 }
  0x2f   :  { %p3312_p4 = pnand %p3310_p3, %p3307_p2 }
  0x31   :  { %3315 = shalt.err (!%p3312_p4)
}
  0x32   :  { %s3316_s30 = scalar_lea.vmem %s88_s26, 36864  ;;  %p3321_p6 = scmp.lt.s32.totalorder %s88_s26, %s88_s26 }
  0x33   :  { %p3317_p5 = scmp.ne.s32.totalorder %s88_s26, %s3316_s30  ;;  %p3322_p7 = scmp.lt.s32.totalorder %s3316_s30, %s3316_s30 }
  0x35   :  { %p3323_p8 = por %p3322_p7, %p3321_p6 }
  0x37   :  { %p3324_p9 = pnand %p3323_p8, %p3317_p5 }
  0x39   :  { %3327 = shalt.err (!%p3324_p9)
}
  0x3a   :  { %93 = dma.hbm_to_vmem [thread:$0]  %s3916_s5, 36864, %s88_s26, [#allocation13], %s3565_s19, %s3565_s19, %s3566_s20  }
  0x3b   :  { %s3569_s14 = smov [#allocation15]   ;;  %s3328_s1 = scalar_lea.hbm %s3918_s7, 12288 }
  0x3c   :  { %s109_s15 = sshll.u32 %s3569_s14, 4  ;;  %p3329_p10 = scmp.ne.s32.totalorder %s3918_s7, %s3328_s1  ;;  %s110_s15 = int_to_ptr.vmem [resolvable:$true] %s109_s15 }
  0x3d   :  { %p3332_p11 = scmp.lt.u32.totalorder %s3328_s1, %s3918_s7 }
  0x3f   :  { %p3334_p12 = pnand %p3332_p11, %p3329_p10 }
  0x41   :  { %3337 = shalt.err (!%p3334_p12)
}
  0x42   :  { %s3338_s22 = scalar_lea.vmem %s110_s15, 12288  ;;  %p3343_p0 = scmp.lt.s32.totalorder %s110_s15, %s110_s15 }
  0x43   :  { %p3339_p13 = scmp.ne.s32.totalorder %s110_s15, %s3338_s22  ;;  %p3344_p1 = scmp.lt.s32.totalorder %s3338_s22, %s3338_s22 }
  0x45   :  { %p3345_p2 = por %p3344_p1, %p3343_p0 }
  0x47   :  { %p3346_p3 = pnand %p3345_p2, %p3339_p13 }
  0x49   :  { %3349 = shalt.err (!%p3346_p3)
}
  0x4a   :  { %s3570_s5 = smov 256   ;;  %s3571_s19 = smov 16  }
  0x4b   :  { %115 = dma.hbm_to_vmem [thread:$0]  %s3918_s7, 12288, %s110_s15, [#allocation16], %s3570_s5, %s3570_s5, %s3571_s19  }
  0x4c   :  { %s3572_s23 = smov [#allocation18]   ;;  %s3350_s30 = scalar_lea.hbm %s3920_s9, 4096 }
  0x4d   :  { %s131_s25 = sshll.u32 %s3572_s23, 4  ;;  %p3351_p4 = scmp.ne.s32.totalorder %s3920_s9, %s3350_s30  ;;  %s132_s25 = int_to_ptr.vmem [resolvable:$true] %s131_s25 }
  0x4e   :  { %p3354_p5 = scmp.lt.u32.totalorder %s3350_s30, %s3920_s9 }
  0x50   :  { %p3356_p6 = pnand %p3354_p5, %p3351_p4 }
  0x52   :  { %3359 = shalt.err (!%p3356_p6)
}
  0x53   :  { %s3360_s12 = scalar_lea.vmem %s132_s25, 4096  ;;  %p3365_p8 = scmp.lt.s32.totalorder %s132_s25, %s132_s25 }
  0x54   :  { %p3361_p7 = scmp.ne.s32.totalorder %s132_s25, %s3360_s12  ;;  %p3366_p9 = scmp.lt.s32.totalorder %s3360_s12, %s3360_s12 }
  0x56   :  { %p3367_p10 = por %p3366_p9, %p3365_p8 }
  0x58   :  { %p3368_p11 = pnand %p3367_p10, %p3361_p7 }
  0x5a   :  { %3371 = shalt.err (!%p3368_p11)
}
  0x5b   :  { %s3573_s7 = smov 128   ;;  %s3574_s15 = smov 8  }
  0x5c   :  { %137 = dma.hbm_to_vmem [thread:$0]  %s3920_s9, 4096, %s132_s25, [#allocation19], %s3573_s7, %s3573_s7, %s3574_s15  }
  0x5d   :  { %s3575_s17 = smov [#allocation3]   ;;  %s3576_s21 = smov [#allocation8]  }
  0x5e   :  { %s34_s18 = sshll.u32 %s3575_s17, 4  ;;  %s56_s22 = sshll.u32 %s3576_s21, 4  ;;  %s35_s18 = int_to_ptr.vmem [resolvable:$true] %s34_s18  ;;  %s57_s22 = int_to_ptr.vmem [resolvable:$true] %s56_s22 }
  0x5f   :  { %s3372_s20 = scalar_lea.hbm %s3911_s0, 128 }
  0x60   :  { %p3373_p12 = scmp.ne.s32.totalorder %s3911_s0, %s3372_s20  ;;  %p3376_p13 = scmp.lt.u32.totalorder %s3372_s20, %s3911_s0 }
  0x62   :  { %p3378_p0 = pnand %p3376_p13, %p3373_p12 }
  0x64   :  { %3381 = shalt.err (!%p3378_p0)
}
  0x65   :  { %s3382_s9 = scalar_lea.vmem %s35_s18, 128  ;;  %p3387_p2 = scmp.lt.s32.totalorder %s35_s18, %s35_s18 }
  0x66   :  { %p3383_p1 = scmp.ne.s32.totalorder %s35_s18, %s3382_s9  ;;  %p3388_p3 = scmp.lt.s32.totalorder %s3382_s9, %s3382_s9 }
  0x68   :  { %p3389_p4 = por %p3388_p3, %p3387_p2 }
  0x6a   :  { %p3390_p5 = pnand %p3389_p4, %p3383_p1 }
  0x6c   :  { %3393 = shalt.err (!%p3390_p5)
}
  0x6d   :  { %37 = dma.hbm_to_vmem [thread:$0]  %s3911_s0, 128, %s35_s18, [#allocation4]  }
  0x6e   :  { %s3394_s14 = scalar_lea.hbm %s3913_s2, 96 }
  0x6f   :  { %p3395_p6 = scmp.ne.s32.totalorder %s3913_s2, %s3394_s14  ;;  %p3398_p7 = scmp.lt.u32.totalorder %s3394_s14, %s3913_s2 }
  0x71   :  { %p3400_p8 = pnand %p3398_p7, %p3395_p6 }
  0x73   :  { %3403 = shalt.err (!%p3400_p8)
}
  0x74   :  { %s3404_s1 = scalar_lea.vmem %s57_s22, 96  ;;  %p3409_p10 = scmp.lt.s32.totalorder %s57_s22, %s57_s22 }
  0x75   :  { %p3405_p9 = scmp.ne.s32.totalorder %s57_s22, %s3404_s1  ;;  %p3410_p11 = scmp.lt.s32.totalorder %s3404_s1, %s3404_s1 }
  0x77   :  { %p3411_p12 = por %p3410_p11, %p3409_p10 }
  0x79   :  { %p3412_p13 = pnand %p3411_p12, %p3405_p9 }
  0x7b   :  { %3415 = shalt.err (!%p3412_p13)
}
  0x7c   :  { %59 = dma.hbm_to_vmem [thread:$0]  %s3913_s2, 96, %s57_s22, [#allocation7]  }
  0x7d   :  { %s3577_s17 = smov [#allocation11]   ;;  %s3578_s21 = smov [#allocation14]  }
  0x7e   :  { %s78_s18 = sshll.u32 %s3577_s17, 4  ;;  %s100_s5 = sshll.u32 %s3578_s21, 4  ;;  %s79_s18 = int_to_ptr.vmem [resolvable:$true] %s78_s18  ;;  %s101_s5 = int_to_ptr.vmem [resolvable:$true] %s100_s5 }
  0x7f   :  { %s3416_s26 = scalar_lea.hbm %s3915_s4, 96 }
  0x80   :  { %p3417_p0 = scmp.ne.s32.totalorder %s3915_s4, %s3416_s26  ;;  %p3420_p1 = scmp.lt.u32.totalorder %s3416_s26, %s3915_s4 }
  0x82   :  { %p3422_p2 = pnand %p3420_p1, %p3417_p0 }
  0x84   :  { %3425 = shalt.err (!%p3422_p2)
}
  0x85   :  { %s3426_s2 = scalar_lea.vmem %s79_s18, 96  ;;  %p3431_p4 = scmp.lt.s32.totalorder %s79_s18, %s79_s18 }
  0x86   :  { %p3427_p3 = scmp.ne.s32.totalorder %s79_s18, %s3426_s2  ;;  %p3432_p5 = scmp.lt.s32.totalorder %s3426_s2, %s3426_s2 }
  0x88   :  { %p3433_p6 = por %p3432_p5, %p3431_p4 }
  0x8a   :  { %p3434_p7 = pnand %p3433_p6, %p3427_p3 }
  0x8c   :  { %3437 = shalt.err (!%p3434_p7)
}
  0x8d   :  { %81 = dma.hbm_to_vmem [thread:$0]  %s3915_s4, 96, %s79_s18, [#allocation10]  }
  0x8e   :  { %s3438_s24 = scalar_lea.hbm %s3917_s6, 96 }
  0x8f   :  { %p3439_p8 = scmp.ne.s32.totalorder %s3917_s6, %s3438_s24  ;;  %p3442_p9 = scmp.lt.u32.totalorder %s3438_s24, %s3917_s6 }
  0x91   :  { %p3444_p10 = pnand %p3442_p9, %p3439_p8 }
  0x93   :  { %3447 = shalt.err (!%p3444_p10)
}
  0x94   :  { %s3448_s15 = scalar_lea.vmem %s101_s5, 96  ;;  %p3453_p12 = scmp.lt.s32.totalorder %s101_s5, %s101_s5 }
  0x95   :  { %p3449_p11 = scmp.ne.s32.totalorder %s101_s5, %s3448_s15  ;;  %p3454_p13 = scmp.lt.s32.totalorder %s3448_s15, %s3448_s15 }
  0x97   :  { %p3455_p0 = por %p3454_p13, %p3453_p12 }
  0x99   :  { %p3456_p1 = pnand %p3455_p0, %p3449_p11 }
  0x9b   :  { %3459 = shalt.err (!%p3456_p1)
}
  0x9c   :  { %103 = dma.hbm_to_vmem [thread:$0]  %s3917_s6, 96, %s101_s5, [#allocation13]  }
  0x9d   :  { %s3579_s0 = smov [#allocation17]   ;;  %s3580_s17 = smov [#allocation20]  }
  0x9e   :  { %s122_s28 = sshll.u32 %s3579_s0, 4  ;;  %s144_s18 = sshll.u32 %s3580_s17, 4  ;;  %s123_s28 = int_to_ptr.vmem [resolvable:$true] %s122_s28  ;;  %s145_s18 = int_to_ptr.vmem [resolvable:$true] %s144_s18 }
  0x9f   :  { %s3460_s20 = scalar_lea.hbm %s3919_s8, 32 }
  0xa0   :  { %p3461_p2 = scmp.ne.s32.totalorder %s3919_s8, %s3460_s20  ;;  %p3464_p3 = scmp.lt.u32.totalorder %s3460_s20, %s3919_s8 }
  0xa2   :  { %p3466_p4 = pnand %p3464_p3, %p3461_p2 }
  0xa4   :  { %3469 = shalt.err (!%p3466_p4)
}
  0xa5   :  { %s3470_s6 = scalar_lea.vmem %s123_s28, 32  ;;  %p3475_p6 = scmp.lt.s32.totalorder %s123_s28, %s123_s28 }
  0xa6   :  { %p3471_p5 = scmp.ne.s32.totalorder %s123_s28, %s3470_s6  ;;  %p3476_p7 = scmp.lt.s32.totalorder %s3470_s6, %s3470_s6 }
  0xa8   :  { %p3477_p8 = por %p3476_p7, %p3475_p6 }
  0xaa   :  { %p3478_p9 = pnand %p3477_p8, %p3471_p5 }
  0xac   :  { %3481 = shalt.err (!%p3478_p9)
}
  0xad   :  { %125 = dma.hbm_to_vmem [thread:$0]  %s3919_s8, 32, %s123_s28, [#allocation16]  }
  0xae   :  { %s3482_s25 = scalar_lea.hbm %s3921_s10, 16 }
  0xaf   :  { %p3483_p10 = scmp.ne.s32.totalorder %s3921_s10, %s3482_s25  ;;  %p3486_p11 = scmp.lt.u32.totalorder %s3482_s25, %s3921_s10 }
  0xb1   :  { %p3488_p12 = pnand %p3486_p11, %p3483_p10 }
  0xb3   :  { %3491 = shalt.err (!%p3488_p12)
}
  0xb4   :  { %s3492_s16 = scalar_lea.vmem %s145_s18, 16  ;;  %s3496_s12 = scalar_lea.vmem %s145_s18, 32 }
  0xb5   :  { %p3493_p13 = scmp.ne.s32.totalorder %s145_s18, %s3492_s16  ;;  %p3497_p0 = scmp.lt.s32.totalorder %s145_s18, %s145_s18 }
  0xb6   :  { %p3498_p1 = scmp.lt.s32.totalorder %s3496_s12, %s3492_s16 }
  0xb8   :  { %p3499_p2 = por %p3498_p1, %p3497_p0 }
  0xba   :  { %p3500_p3 = pnand %p3499_p2, %p3493_p13 }
  0xbc   :  { %3503 = shalt.err (!%p3500_p3)
}
  0xbd   :  { %147 = dma.hbm_to_vmem [thread:$0]  %s3921_s10, 16, %s145_s18, [#allocation19]  }
  0xbe   :  { %s3581_s15 = smov [#allocation21]   ;;  %s3504_s28 = scalar_lea.hbm %s3922_s11, 16 }
  0xbf   :  { %s154_s4 = sshll.u32 %s3581_s15, 4  ;;  %p3505_p4 = scmp.ne.s32.totalorder %s3922_s11, %s3504_s28  ;;  %s155_s4 = int_to_ptr.vmem [resolvable:$true] %s154_s4 }
  0xc0   :  { %p3508_p5 = scmp.lt.u32.totalorder %s3504_s28, %s3922_s11 }
  0xc2   :  { %p3510_p6 = pnand %p3508_p5, %p3505_p4 }
  0xc4   :  { %3513 = shalt.err (!%p3510_p6)
}
  0xc5   :  { %s3514_s26 = scalar_lea.vmem %s155_s4, 16  ;;  %s3518_s10 = scalar_lea.vmem %s155_s4, 32 }
  0xc6   :  { %p3515_p7 = scmp.ne.s32.totalorder %s155_s4, %s3514_s26  ;;  %p3519_p8 = scmp.lt.s32.totalorder %s155_s4, %s155_s4 }
  0xc7   :  { %p3520_p9 = scmp.lt.s32.totalorder %s3518_s10, %s3514_s26 }
  0xc9   :  { %p3521_p10 = por %p3520_p9, %p3519_p8 }
  0xcb   :  { %p3522_p11 = pnand %p3521_p10, %p3515_p7 }
  0xcd   :  { %3525 = shalt.err (!%p3522_p11)
}
  0xce   :  { %157 = dma.hbm_to_vmem [thread:$0]  %s3922_s11, 16, %s155_s4, [#allocation22]  }
  0xcf   :  { %3548 = dma.done.wait [#allocation4], 128  }
  0xd0   :  { %3549 = vsyncadd [#allocation4], 4294967168 }
  0xd1   :  { %3550 = dma.done.wait [#allocation7], 2400  }
  0xd2   :  { %3551 = vsyncadd [#allocation7], 4294964896 }
  0xd3   :  { %3552 = dma.done.wait [#allocation10], 36960  }
  0xd4   :  { %3553 = vsyncadd [#allocation10], 4294930336 }
  0xd5   :  { %3554 = dma.done.wait [#allocation13], 36960  }
  0xd6   :  { %3555 = vsyncadd [#allocation13], 4294930336 }
  0xd7   :  { %3556 = dma.done.wait [#allocation16], 12320  }
  0xd8   :  { %3557 = vsyncadd [#allocation16], 4294954976 }
  0xd9   :  { %3558 = dma.done.wait [#allocation19], 4112  }
  0xda   :  { %3559 = vsyncadd [#allocation19], 4294963184 }
  0xdb   :  { %3560 = dma.done.wait [#allocation22], 16  }
  0xdc   :  { %3561 = vsyncadd [#allocation22], 4294967280  ;;  %v3582_v1 = vmov 0.0   ;;  %v198_v2 = vld [vmem:[#allocation6 + $0x8] sm:$0xff]  ;;  %v204_v3 = vld [vmem:[#allocation6 + $0x38] sm:$0xff]  ;;  %vm247_vm0 = vcmask 195584  }
  0xdd   :  { %315 = vmatprep.mubr.f32.mxu1 %v3582_v1  ;;  %457 = vmatprep.mubr.f32.mxu0 %v3582_v1  ;;  %v197_v4 = vld [vmem:[#allocation6] sm:$0xff]  ;;  %v2495_v5 = vpack.c.bf16 %v204_v3, %v198_v2  ;;  %v203_v6 = vld [vmem:[#allocation6 + $0x30] sm:$0xff]  ;;  %v202_v7 = vld [vmem:[#allocation6 + $0x28] sm:$0xff]  ;;  %vm3583_vm1 = vmmov 0   ;;  %s3585_s11 = smov [#allocation23]   ;;  %vm2426_vm2 = vcmask 57344  }
  0xde   :  { %v208_v8 = vld [vmem:[#allocation6 + $0x58] sm:$0xff]  ;;  %v2497_v9 = vpack.c.bf16 %v203_v6, %v197_v4  ;;  %v201_v11 = vld [vmem:[#allocation6 + $0x20] sm:$0xff]  ;;  %v207_v12 = vld [vmem:[#allocation6 + $0x50] sm:$0xff]  ;;  %s2434_s27 = sshll.u32 %s3585_s11, 4  ;;  %s2435_s27 = int_to_ptr.vmem [resolvable:$true] %s2434_s27 }
  0xdf   :  { %v2503_v10 = vpack.c.bf16 %v208_v8, %v202_v7  ;;  %v210_v13 = vld [vmem:[#allocation6 + $0x68] sm:$0xff]  ;;  %2496 = vmatprep.subr.bf16.mxu1 %v2495_v5  ;;  %v2505_v14 = vpack.c.bf16 %v207_v12, %v201_v11  ;;  %v200_v16 = vld [vmem:[#allocation6 + $0x18] sm:$0xff]  ;;  %v209_v18 = vld [vmem:[#allocation6 + $0x60] sm:$0xff]  ;;  %s3526_s29 = scalar_lea.vmem %s2435_s27, 16  ;;  %s3530_s6 = scalar_lea.vmem %s2435_s27, 32 }
  0xe0   :  { %v214_v15 = vld [vmem:[#allocation6 + $0x88] sm:$0xff]  ;;  %2498 = vmatpush1.bf16.msra.mxu1 %v2497_v9  ;;  %v199_v20 = vld [vmem:[#allocation6 + $0x10] sm:$0xff]  ;;  %v205_v21 = vld [vmem:[#allocation6 + $0x40] sm:$0xff]  ;;  %p3527_p12 = scmp.ne.s32.totalorder %s2435_s27, %s3526_s29  ;;  %p3531_p13 = scmp.lt.s32.totalorder %s2435_s27, %s2435_s27 }
  0xe1   :  { %2504 = vmatprep.subr.bf16.mxu0 %v2503_v10  ;;  %v206_v17 = vld [vmem:[#allocation6 + $0x48] sm:$0xff]  ;;  %255 = vmatprep.subr.mxu1 %v210_v13  ;;  %v196_v22 = vld [vmem:[#allocation3] sm:$0xff]  ;;  %v2501_v23 = vpack.c.bf16 %v205_v21, %v199_v20  ;;  %v213_v24 = vld [vmem:[#allocation6 + $0x80] sm:$0xff]  ;;  %p3532_p0 = scmp.lt.s32.totalorder %s3530_s6, %s3526_s29 }
  0xe2   :  { %2506 = vmatpush1.bf16.msra.mxu0 %v2505_v14  ;;  %v2499_v19 = vpack.c.bf16 %v206_v17, %v200_v16  ;;  %v212_v25 = vld [vmem:[#allocation6 + $0x78] sm:$0xff]  ;;  %v480_v27 = vld [vmem:[#allocation9 + $0x38] sm:$0xff]  ;;  %v479_v29 = vld [vmem:[#allocation9 + $0x30] sm:$0xff] }
  0xe3   :  { %397 = vmatprep.subr.mxu0 %v214_v15  ;;  %v474_v26 = vld [vmem:[#allocation9 + $0x8] sm:$0xff]  ;;  %v473_v28 = vld [vmem:[#allocation9] sm:$0xff]  ;;  %v492_v31 = vld [vmem:[#allocation9 + $0x98] sm:$0xff]  ;;  %p3533_p1 = por %p3532_p0, %p3531_p13 }
  0xe4   :  { %256 = vmatpush1.msra.mxu1 %v209_v18  ;;  %v486_v30 = vld [vmem:[#allocation9 + $0x68] sm:$0xff]  ;;  %v211_v32 = vld [vmem:[#allocation6 + $0x70] sm:$0xff]  ;;  %v2507_v33 = vpack.c.bf16 %v480_v27, %v474_v26  ;;  %v2509_v34 = vpack.c.bf16 %v479_v29, %v473_v28  ;;  %v491_v37 = vld [vmem:[#allocation9 + $0x90] sm:$0xff] }
  0xe5   :  { %2449 = vmatmul.mubr.msk.f32.vlgmr.msra.gmra.mrb[0].mxu1 %vm247_vm0, %v196_v22  ;;  %2500 = vmatprep.subr.bf16.mxu1 %v2499_v19  ;;  %v2511_v35 = vpack.c.bf16 %v492_v31, %v486_v30  ;;  %v485_v36 = vld [vmem:[#allocation9 + $0x60] sm:$0xff]  ;;  %v498_v38 = vld [vmem:[#allocation9 + $0xc8] sm:$0xff]  ;;  %v504_v39 = vld [vmem:[#allocation9 + $0xf8] sm:$0xff]  ;;  %p3534_p2 = pnand %p3533_p1, %p3527_p12 }
  0xe6   :  { %398 = vmatpush1.msra.mxu0 %v213_v24  ;;  %2502 = vmatpush1.bf16.msra.mxu1 %v2501_v23  ;;  %v2513_v40 = vpack.c.bf16 %v491_v37, %v485_v36  ;;  %v497_v41 = vld [vmem:[#allocation9 + $0xc0] sm:$0xff]  ;;  %v503_v42 = vld [vmem:[#allocation9 + $0xf0] sm:$0xff]  ;;  %v2515_v43 = vpack.c.bf16 %v504_v39, %v498_v38  ;;  %v510_v44 = vld [vmem:[#allocation9 + $0x128] sm:$0xff] }
  0xe7   :  { %2451 = vmatmul.mubr.msk.f32.vlgmr.msra.gmra.mrb[0].mxu0 %vm247_vm0, %v196_v22  ;;  %326 = vmatprep.subr.mxu1 %v212_v25  ;;  %v666_v45 = vld [vmem:[#allocation9 + $0x608] sm:$0xff]  ;;  %v672_v46 = vld [vmem:[#allocation9 + $0x638] sm:$0xff]  ;;  %v665_v49 = vld [vmem:[#allocation9 + $0x600] sm:$0xff]  ;;  %v2517_v53 = vpack.c.bf16 %v503_v42, %v497_v41 }
  0xe8   :  { %386 = vmatprep.mubr.f32.mxu1 %v3582_v1  ;;  %928 = vmatprep.mubr.f32.mxu0 %v3582_v1  ;;  %v516_v47 = vld [vmem:[#allocation9 + $0x158] sm:$0xff]  ;;  %v2571_v48 = vpack.c.bf16 %v672_v46, %v666_v45  ;;  %v671_v50 = vld [vmem:[#allocation9 + $0x630] sm:$0xff]  ;;  %v678_v52 = vld [vmem:[#allocation9 + $0x668] sm:$0xff] }
  0xe9   :  { %v2573_v51 = vpack.c.bf16 %v671_v50, %v665_v49  ;;  %v509_v54 = vld [vmem:[#allocation9 + $0x120] sm:$0xff]  ;;  %v515_v55 = vld [vmem:[#allocation9 + $0x150] sm:$0xff]  ;;  %v684_v56 = vld [vmem:[#allocation9 + $0x698] sm:$0xff]  ;;  %v2519_v57 = vpack.c.bf16 %v516_v47, %v510_v44 }
  0xea   :  { %327 = vmatpush1.msra.mxu1 %v211_v32  ;;  %2572 = vmatprep.subr.bf16.mxu0 %v2571_v48  ;;  %v522_v58 = vld [vmem:[#allocation9 + $0x188] sm:$0xff]  ;;  %v2575_v59 = vpack.c.bf16 %v684_v56, %v678_v52  ;;  %v677_v60 = vld [vmem:[#allocation9 + $0x660] sm:$0xff]  ;;  %v683_v61 = vld [vmem:[#allocation9 + $0x690] sm:$0xff]  ;;  %v2521_v5 = vpack.c.bf16 %v515_v55, %v509_v54 }
  0xeb   :  { %2450 = vmatmul.mubr.msk.f32.vlgmr.msra.gmra.mrb[2].mxu1 %vm247_vm0, %v196_v22  ;;  %2508 = vmatprep.subr.bf16.mxu1 %v2507_v33  ;;  %v528_v62 = vld [vmem:[#allocation9 + $0x1b8] sm:$0xff]  ;;  %v2577_v63 = vpack.c.bf16 %v683_v61, %v677_v60  ;;  %v690_v0 = vld [vmem:[#allocation9 + $0x6c8] sm:$0xff]  ;;  %v689_v4 = vld [vmem:[#allocation9 + $0x6c0] sm:$0xff] }
  0xec   :  { %2510 = vmatpush1.bf16.msra.mxu1 %v2509_v34  ;;  %2574 = vmatpush1.bf16.msra.mxu0 %v2573_v51  ;;  %v696_v2 = vld [vmem:[#allocation9 + $0x6f8] sm:$0xff]  ;;  %v521_v6 = vld [vmem:[#allocation9 + $0x180] sm:$0xff]  ;;  %v527_v7 = vld [vmem:[#allocation9 + $0x1b0] sm:$0xff]  ;;  %v2523_v9 = vpack.c.bf16 %v528_v62, %v522_v58 }
  0xed   :  { %2512 = vmatprep.subr.bf16.mxu1 %v2511_v35  ;;  %2576 = vmatprep.subr.bf16.mxu0 %v2575_v59  ;;  %v2579_v3 = vpack.c.bf16 %v696_v2, %v690_v0  ;;  %v695_v8 = vld [vmem:[#allocation9 + $0x6f0] sm:$0xff]  ;;  %v534_v10 = vld [vmem:[#allocation9 + $0x1e8] sm:$0xff]  ;;  %v708_v13 = vld [vmem:[#allocation9 + $0x758] sm:$0xff]  ;;  %v2525_v19 = vpack.c.bf16 %v527_v7, %v521_v6 }
  0xee   :  { %v2581_v11 = vpack.c.bf16 %v695_v8, %v689_v4  ;;  %v702_v12 = vld [vmem:[#allocation9 + $0x728] sm:$0xff]  ;;  %v540_v14 = vld [vmem:[#allocation9 + $0x218] sm:$0xff]  ;;  %v701_v16 = vld [vmem:[#allocation9 + $0x720] sm:$0xff] }
  0xef   :  { %v2583_v15 = vpack.c.bf16 %v708_v13, %v702_v12  ;;  %v707_v17 = vld [vmem:[#allocation9 + $0x750] sm:$0xff]  ;;  %v714_v18 = vld [vmem:[#allocation9 + $0x788] sm:$0xff]  ;;  %v720_v20 = vld [vmem:[#allocation9 + $0x7b8] sm:$0xff]  ;;  %v2527_v21 = vpack.c.bf16 %v540_v14, %v534_v10 }
  0xf0   :  { %2514 = vmatpush1.bf16.msra.mxu1 %v2513_v40  ;;  %2578 = vmatpush1.bf16.msra.mxu0 %v2577_v63  ;;  %v533_v22 = vld [vmem:[#allocation9 + $0x1e0] sm:$0xff]  ;;  %v539_v23 = vld [vmem:[#allocation9 + $0x210] sm:$0xff]  ;;  %v546_v24 = vld [vmem:[#allocation9 + $0x248] sm:$0xff]  ;;  %v2585_v25 = vpack.c.bf16 %v707_v17, %v701_v16  ;;  %v2587_v27 = vpack.c.bf16 %v720_v20, %v714_v18 }
  0xf1   :  { %2516 = vmatprep.subr.bf16.mxu1 %v2515_v43  ;;  %2580 = vmatprep.subr.bf16.mxu0 %v2579_v3  ;;  %v552_v26 = vld [vmem:[#allocation9 + $0x278] sm:$0xff]  ;;  %v713_v28 = vld [vmem:[#allocation9 + $0x780] sm:$0xff]  ;;  %v719_v29 = vld [vmem:[#allocation9 + $0x7b0] sm:$0xff]  ;;  %v2529_v30 = vpack.c.bf16 %v539_v23, %v533_v22 }
  0xf2   :  { %v2531_v31 = vpack.c.bf16 %v552_v26, %v546_v24  ;;  %v545_v32 = vld [vmem:[#allocation9 + $0x240] sm:$0xff]  ;;  %v551_v33 = vld [vmem:[#allocation9 + $0x270] sm:$0xff]  ;;  %v2589_v34 = vpack.c.bf16 %v719_v29, %v713_v28  ;;  %v558_v35 = vld [vmem:[#allocation9 + $0x2a8] sm:$0xff] }
  0xf3   :  { %v564_v36 = vld [vmem:[#allocation9 + $0x2d8] sm:$0xff]  ;;  %v2533_v37 = vpack.c.bf16 %v551_v33, %v545_v32  ;;  %v557_v39 = vld [vmem:[#allocation9 + $0x2a0] sm:$0xff]  ;;  %v563_v40 = vld [vmem:[#allocation9 + $0x2d0] sm:$0xff] }
  0xf4   :  { %2518 = vmatpush1.bf16.msra.mxu1 %v2517_v53  ;;  %2582 = vmatpush1.bf16.msra.mxu0 %v2581_v11  ;;  %v2535_v38 = vpack.c.bf16 %v564_v36, %v558_v35  ;;  %v570_v41 = vld [vmem:[#allocation9 + $0x308] sm:$0xff]  ;;  %v576_v42 = vld [vmem:[#allocation9 + $0x338] sm:$0xff]  ;;  %v2537_v43 = vpack.c.bf16 %v563_v40, %v557_v39  ;;  %v569_v45 = vld [vmem:[#allocation9 + $0x300] sm:$0xff] }
  0xf5   :  { %2520 = vmatprep.subr.bf16.mxu1 %v2519_v57  ;;  %2584 = vmatprep.subr.bf16.mxu0 %v2583_v15  ;;  %v2539_v44 = vpack.c.bf16 %v576_v42, %v570_v41  ;;  %v575_v46 = vld [vmem:[#allocation9 + $0x330] sm:$0xff]  ;;  %v582_v47 = vld [vmem:[#allocation9 + $0x368] sm:$0xff]  ;;  %v588_v48 = vld [vmem:[#allocation9 + $0x398] sm:$0xff] }
  0xf6   :  { %v2541_v49 = vpack.c.bf16 %v575_v46, %v569_v45  ;;  %v2543_v50 = vpack.c.bf16 %v588_v48, %v582_v47  ;;  %v581_v51 = vld [vmem:[#allocation9 + $0x360] sm:$0xff]  ;;  %v587_v52 = vld [vmem:[#allocation9 + $0x390] sm:$0xff]  ;;  %v594_v53 = vld [vmem:[#allocation9 + $0x3c8] sm:$0xff] }
  0xf7   :  { %v600_v54 = vld [vmem:[#allocation9 + $0x3f8] sm:$0xff]  ;;  %v2545_v55 = vpack.c.bf16 %v587_v52, %v581_v51  ;;  %v593_v57 = vld [vmem:[#allocation9 + $0x3c0] sm:$0xff]  ;;  %v599_v58 = vld [vmem:[#allocation9 + $0x3f0] sm:$0xff]  ;;  %v217_v51 = vlaneseq }
  0xf8   :  { %2522 = vmatpush1.bf16.msra.mxu1 %v2521_v5  ;;  %2586 = vmatpush1.bf16.msra.mxu0 %v2585_v25  ;;  %v2547_v56 = vpack.c.bf16 %v600_v54, %v594_v53  ;;  %v606_v59 = vld [vmem:[#allocation9 + $0x428] sm:$0xff]  ;;  %v612_v60 = vld [vmem:[#allocation9 + $0x458] sm:$0xff]  ;;  %v2549_v61 = vpack.c.bf16 %v599_v58, %v593_v57  ;;  %v605_v63 = vld [vmem:[#allocation9 + $0x420] sm:$0xff] }
  0xf9   :  { %2524 = vmatprep.subr.bf16.mxu1 %v2523_v9  ;;  %2588 = vmatprep.subr.bf16.mxu0 %v2587_v27  ;;  %v2551_v62 = vpack.c.bf16 %v612_v60, %v606_v59  ;;  %v611_v0 = vld [vmem:[#allocation9 + $0x450] sm:$0xff]  ;;  %v618_v2 = vld [vmem:[#allocation9 + $0x488] sm:$0xff]  ;;  %v624_v3 = vld [vmem:[#allocation9 + $0x4b8] sm:$0xff]  ;;  %v218_v52 = vshrl.u32 %v217_v51, 7 }
  0xfa   :  { %v2553_v4 = vpack.c.bf16 %v611_v0, %v605_v63  ;;  %v2555_v5 = vpack.c.bf16 %v624_v3, %v618_v2  ;;  %v617_v6 = vld [vmem:[#allocation9 + $0x480] sm:$0xff]  ;;  %v623_v7 = vld [vmem:[#allocation9 + $0x4b0] sm:$0xff]  ;;  %v726_v9 = vld [vmem:[#allocation9 + $0x7e8] sm:$0xff] }
  0xfb   :  { %v2557_v8 = vpack.c.bf16 %v623_v7, %v617_v6  ;;  %v732_v10 = vld [vmem:[#allocation9 + $0x818] sm:$0xff]  ;;  %v630_v12 = vld [vmem:[#allocation9 + $0x4e8] sm:$0xff]  ;;  %v725_v14 = vld [vmem:[#allocation9 + $0x7e0] sm:$0xff]  ;;  %v3819_v53 = vsub.s32 1, %v218_v52  ;;  %v3825_v57 = vsub.s32 0, %v218_v52  ;;  %v3829_v60 = vsub.s32 2, %v218_v52 }
  0xfc   :  { %2526 = vmatpush1.bf16.msra.mxu1 %v2525_v19  ;;  %2590 = vmatpush1.bf16.msra.mxu0 %v2589_v34  ;;  %v2591_v11 = vpack.c.bf16 %v732_v10, %v726_v9  ;;  %v636_v13 = vld [vmem:[#allocation9 + $0x518] sm:$0xff]  ;;  %v731_v16 = vld [vmem:[#allocation9 + $0x810] sm:$0xff]  ;;  %v629_v17 = vld [vmem:[#allocation9 + $0x4e0] sm:$0xff]  ;;  %v3832_v63 = vsub.s32 3, %v218_v52 }
  0xfd   :  { %2528 = vmatprep.subr.bf16.mxu1 %v2527_v21  ;;  %v2559_v15 = vpack.c.bf16 %v636_v13, %v630_v12  ;;  %v635_v18 = vld [vmem:[#allocation9 + $0x510] sm:$0xff]  ;;  %v2593_v19 = vpack.c.bf16 %v731_v16, %v725_v14  ;;  %v738_v21 = vld [vmem:[#allocation9 + $0x848] sm:$0xff]  ;;  %v744_v22 = vld [vmem:[#allocation9 + $0x878] sm:$0xff] }
  0xfe   :  { %2592 = vmatprep.subr.bf16.mxu0 %v2591_v11  ;;  %v2561_v20 = vpack.c.bf16 %v635_v18, %v629_v17  ;;  %v2595_v23 = vpack.c.bf16 %v744_v22, %v738_v21  ;;  %v642_v24 = vld [vmem:[#allocation9 + $0x548] sm:$0xff]  ;;  %v648_v25 = vld [vmem:[#allocation9 + $0x578] sm:$0xff]  ;;  %v737_v26 = vld [vmem:[#allocation9 + $0x840] sm:$0xff] }
  0xff   :  { %v2563_v27 = vpack.c.bf16 %v648_v25, %v642_v24  ;;  %v743_v28 = vld [vmem:[#allocation9 + $0x870] sm:$0xff]  ;;  %v641_v29 = vld [vmem:[#allocation9 + $0x540] sm:$0xff]  ;;  %v750_v33 = vld [vmem:[#allocation9 + $0x8a8] sm:$0xff] }
 0x100   :  { %2530 = vmatpush1.bf16.msra.mxu1 %v2529_v30  ;;  %2594 = vmatpush1.bf16.msra.mxu0 %v2593_v19  ;;  %v647_v30 = vld [vmem:[#allocation9 + $0x570] sm:$0xff]  ;;  %v756_v34 = vld [vmem:[#allocation9 + $0x8d8] sm:$0xff]  ;;  %v654_v36 = vld [vmem:[#allocation9 + $0x5a8] sm:$0xff] }
 0x101   :  { %2532 = vmatprep.subr.bf16.mxu1 %v2531_v31  ;;  %2596 = vmatprep.subr.bf16.mxu0 %v2595_v23  ;;  %v2597_v31 = vpack.c.bf16 %v743_v28, %v737_v26  ;;  %v2565_v32 = vpack.c.bf16 %v647_v30, %v641_v29  ;;  %v2599_v35 = vpack.c.bf16 %v756_v34, %v750_v33  ;;  %v755_v40 = vld [vmem:[#allocation9 + $0x8d0] sm:$0xff]  ;;  %v653_v41 = vld [vmem:[#allocation9 + $0x5a0] sm:$0xff]  ;;  %v476_v45 = vld [vmem:[#allocation9 + $0x18] sm:$0xff] }
 0x102   :  { %v659_v42 = vld [vmem:[#allocation9 + $0x5d0] sm:$0xff]  ;;  %v482_v46 = vld [vmem:[#allocation9 + $0x48] sm:$0xff]  ;;  %v215_v54 = vld [vmem:[#allocation8] sm:$0x3f] }
 0x103   :  { %v2603_v47 = vpack.c.bf16 %v482_v46, %v476_v45  ;;  %v478_v48 = vld [vmem:[#allocation9 + $0x28] sm:$0xff]  ;;  %v224_v58 = vrot.slane %v215_v54, %v3819_v53  ;;  %v220_v2 = vrot.slane %v215_v54, %v3825_v57  ;;  %v228_v6 = vrot.slane %v215_v54, %v3829_v60  ;;  %v475_v18 = vld [vmem:[#allocation9 + $0x10] sm:$0xff]  ;;  %v481_v19 = vld [vmem:[#allocation9 + $0x40] sm:$0xff] }
 0x104   :  { %2534 = vmatpush1.bf16.msra.mxu1 %v2533_v37  ;;  %2598 = vmatpush1.bf16.msra.mxu0 %v2597_v31  ;;  %v660_v37 = vld [vmem:[#allocation9 + $0x5d8] sm:$0xff]  ;;  %v232_v10 = vrot.slane %v215_v54, %v3832_v63  ;;  %v477_v21 = vld [vmem:[#allocation9 + $0x20] sm:$0xff]  ;;  %v483_v22 = vld [vmem:[#allocation9 + $0x50] sm:$0xff]  ;;  %v2605_v28 = vpack.c.bf16 %v481_v19, %v475_v18 }
 0x105   :  { %2536 = vmatprep.subr.bf16.mxu1 %v2535_v38  ;;  %v749_v38 = vld [vmem:[#allocation9 + $0x8a0] sm:$0xff]  ;;  %v2567_v39 = vpack.c.bf16 %v660_v37, %v654_v36  ;;  %2600 = vmatprep.subr.bf16.mxu0 %v2599_v35  ;;  %v488_v24 = vld [vmem:[#allocation9 + $0x78] sm:$0xff]  ;;  %v494_v25 = vld [vmem:[#allocation9 + $0xa8] sm:$0xff] }
 0x106   :  { %v490_v29 = vld [vmem:[#allocation9 + $0x88] sm:$0xff]  ;;  %v496_v30 = vld [vmem:[#allocation9 + $0xb8] sm:$0xff]  ;;  %v487_v33 = vld [vmem:[#allocation9 + $0x70] sm:$0xff]  ;;  %v2607_v37 = vpack.c.bf16 %v494_v25, %v488_v24 }
 0x107   :  { %v493_v34 = vld [vmem:[#allocation9 + $0xa0] sm:$0xff]  ;;  %v507_v51 = vld [vmem:[#allocation9 + $0x110] sm:$0xff]  ;;  %v536_v19 = vld [vmem:[#allocation9 + $0x1f8] sm:$0xff] }
 0x108   :  { %2538 = vmatpush1.bf16.msra.mxu1 %v2537_v43  ;;  %v2601_v43 = vpack.c.bf16 %v755_v40, %v749_v38  ;;  %v489_v35 = vld [vmem:[#allocation9 + $0x80] sm:$0xff]  ;;  %v495_v38 = vld [vmem:[#allocation9 + $0xb0] sm:$0xff]  ;;  %v506_v40 = vld [vmem:[#allocation9 + $0x108] sm:$0xff] }
 0x109   :  { %2540 = vmatprep.subr.bf16.mxu1 %v2539_v44  ;;  %v2569_v44 = vpack.c.bf16 %v659_v42, %v653_v41  ;;  %v2703_v41 = vpack.c.bf16 %v496_v30, %v490_v29  ;;  %v502_v42 = vld [vmem:[#allocation9 + $0xe8] sm:$0xff]  ;;  %v2705_v45 = vpack.c.bf16 %v495_v38, %v489_v35  ;;  %v531_v18 = vld [vmem:[#allocation9 + $0x1d0] sm:$0xff]  ;;  %v556_v35 = vld [vmem:[#allocation9 + $0x298] sm:$0xff] }
 0x10a   :  { %2602 = vmatpush1.bf16.msra.mxu0 %v2601_v43  ;;  %v508_v43 = vld [vmem:[#allocation9 + $0x118] sm:$0xff]  ;;  %v543_v30 = vld [vmem:[#allocation9 + $0x230] sm:$0xff] }
 0x10b   :  { %2604 = vmatprep.subr.bf16.mxu0 %v2603_v47  ;;  %v499_v47 = vld [vmem:[#allocation9 + $0xd0] sm:$0xff] }
 0x10c   :  { %2542 = vmatpush1.bf16.msra.mxu1 %v2541_v49  ;;  %v484_v49 = vld [vmem:[#allocation9 + $0x58] sm:$0xff] }
 0x10d   :  { %2544 = vmatprep.subr.bf16.mxu1 %v2543_v50  ;;  %v2699_v50 = vpack.c.bf16 %v484_v49, %v478_v48  ;;  %v505_v48 = vld [vmem:[#allocation9 + $0x100] sm:$0xff] }
 0x10e   :  { %v501_v49 = vld [vmem:[#allocation9 + $0xe0] sm:$0xff] }
 0x110   :  { %2546 = vmatpush1.bf16.msra.mxu1 %v2545_v55  ;;  %v3821_v55 = vsub.s32 4, %v218_v52 }
 0x111   :  { %2548 = vmatprep.subr.bf16.mxu1 %v2547_v56  ;;  %v3823_v56 = vsub.s32 5, %v218_v52  ;;  %v512_v52 = vld [vmem:[#allocation9 + $0x138] sm:$0xff] }
 0x112   :  { %v236_v59 = vrot.slane %v215_v54, %v3821_v55 }
 0x114   :  { %2550 = vmatpush1.bf16.msra.mxu1 %v2549_v61 }
 0x115   :  { %2552 = vmatprep.subr.bf16.mxu1 %v2551_v62  ;;  %v240_v62 = vrot.slane %v215_v54, %v3823_v56  ;;  %v518_v54 = vld [vmem:[#allocation9 + $0x168] sm:$0xff] }
 0x118   :  { %2554 = vmatpush1.bf16.msra.mxu1 %v2553_v4 }
 0x119   :  { %2556 = vmatprep.subr.bf16.mxu1 %v2555_v5 }
 0x11c   :  { %2558 = vmatpush1.bf16.msra.mxu1 %v2557_v8 }
 0x11d   :  { %2560 = vmatprep.subr.bf16.mxu1 %v2559_v15 }
 0x120   :  { %2562 = vmatpush1.bf16.msra.mxu1 %v2561_v20 }
 0x121   :  { %2564 = vmatprep.subr.bf16.mxu1 %v2563_v27 }
 0x124   :  { %2566 = vmatpush1.bf16.msra.mxu1 %v2565_v32  ;;  %v2701_v32 = vpack.c.bf16 %v483_v22, %v477_v21  ;;  %v538_v21 = vld [vmem:[#allocation9 + $0x208] sm:$0xff]  ;;  %v544_v22 = vld [vmem:[#allocation9 + $0x238] sm:$0xff] }
 0x125   :  { %2568 = vmatprep.subr.bf16.mxu1 %v2567_v39  ;;  %v500_v39 = vld [vmem:[#allocation9 + $0xd8] sm:$0xff]  ;;  %v2719_v29 = vpack.c.bf16 %v544_v22, %v538_v21  ;;  %v585_v21 = vld [vmem:[#allocation9 + $0x380] sm:$0xff] }
 0x126   :  { %v2611_v46 = vpack.c.bf16 %v506_v40, %v500_v39  ;;  %v547_v40 = vld [vmem:[#allocation9 + $0x250] sm:$0xff] }
 0x128   :  { %2570 = vmatpush1.bf16.msra.mxu1 %v2569_v44  ;;  %v2609_v44 = vpack.c.bf16 %v493_v34, %v487_v33  ;;  %v554_v33 = vld [vmem:[#allocation9 + $0x288] sm:$0xff] }
 0x129   :  { %2700 = vmatprep.subr.bf16.mxu1 %v2699_v50  ;;  %v2707_v50 = vpack.c.bf16 %v508_v43, %v502_v42  ;;  %v550_v34 = vld [vmem:[#allocation9 + $0x268] sm:$0xff]  ;;  %v549_v42 = vld [vmem:[#allocation9 + $0x260] sm:$0xff] }
 0x12a   :  { %v2723_v43 = vpack.c.bf16 %v556_v35, %v550_v34  ;;  %v597_v34 = vld [vmem:[#allocation9 + $0x3e0] sm:$0xff] }
 0x1b8   :  { %v317_v61 = vpop.f32.mrb[0].mxu1 }
 0x1b9   :  { %v319_v0 = vpop.f32.mrb[1].mxu1  ;;  %v318_v12 = vadd.f32 %v317_v61, %v220_v2  ;;  %v2613_v61 = vpack.c.bf16 %v505_v48, %v499_v47  ;;  %v511_v2 = vld [vmem:[#allocation9 + $0x130] sm:$0xff]  ;;  %v562_v47 = vld [vmem:[#allocation9 + $0x2c8] sm:$0xff]  ;;  %v568_v48 = vld [vmem:[#allocation9 + $0x2f8] sm:$0xff] }
 0x1ba   :  { %v320_v3 = vadd.f32 %v319_v0, %v224_v58  ;;  %v459_v4 = vpop.f32.mrb[0].mxu0  ;;  %v514_v58 = vld [vmem:[#allocation9 + $0x148] sm:$0xff]  ;;  %v2615_v0 = vpack.c.bf16 %v518_v54, %v512_v52  ;;  %v559_v52 = vld [vmem:[#allocation9 + $0x2b0] sm:$0xff]  ;;  %v565_v54 = vld [vmem:[#allocation9 + $0x2e0] sm:$0xff] }
 0x1bb   :  { %v460_v5 = vadd.f32 %v459_v4, %v236_v59  ;;  %v461_v7 = vpop.f32.mrb[1].mxu0  ;;  %v464_v26 = vmax.f32 %v318_v12, 0.0  ;;  %v520_v59 = vld [vmem:[#allocation9 + $0x178] sm:$0xff]  ;;  %v513_v4 = vld [vmem:[#allocation9 + $0x140] sm:$0xff] }
 0x1bc   :  { %v465_v8 = vmax.f32 %v320_v3, 0.0  ;;  %v462_v9 = vadd.f32 %v461_v7, %v240_v62  ;;  %v2709_v62 = vpack.c.bf16 %v507_v51, %v501_v49  ;;  %v517_v3 = vld [vmem:[#allocation9 + $0x160] sm:$0xff]  ;;  %v524_v7 = vld [vmem:[#allocation9 + $0x198] sm:$0xff] }
 0x1bd   :  { %v468_v11 = vmax.f32 %v460_v5, 0.0  ;;  %v2711_v5 = vpack.c.bf16 %v520_v59, %v514_v58  ;;  %v561_v58 = vld [vmem:[#allocation9 + $0x2c0] sm:$0xff]  ;;  %v2727_v59 = vpack.c.bf16 %v568_v48, %v562_v47 }
 0x1be   :  { %v388_v13 = vpop.f32.mrb[2].mxu1  ;;  %v469_v16 = vmax.f32 %v462_v9, 0.0  ;;  %v526_v9 = vld [vmem:[#allocation9 + $0x1a8] sm:$0xff]  ;;  %v609_v47 = vld [vmem:[#allocation9 + $0x440] sm:$0xff] }
 0x1bf   :  { %v471_v14 = vmax.f32 %v465_v8, %v468_v11  ;;  %v389_v15 = vadd.f32 %v388_v13, %v228_v6  ;;  %v390_v17 = vpop.f32.mrb[3].mxu1  ;;  %v519_v6 = vld [vmem:[#allocation9 + $0x170] sm:$0xff]  ;;  %v530_v8 = vld [vmem:[#allocation9 + $0x1c8] sm:$0xff]  ;;  %v2617_v11 = vpack.c.bf16 %v517_v3, %v511_v2  ;;  %v580_v3 = vld [vmem:[#allocation9 + $0x358] sm:$0xff] }
 0x1c0   :  { %v391_v20 = vadd.f32 %v390_v17, %v232_v10  ;;  %v532_v10 = vld [vmem:[#allocation9 + $0x1d8] sm:$0xff]  ;;  %v2713_v12 = vpack.c.bf16 %v519_v6, %v513_v4  ;;  %v2619_v13 = vpack.c.bf16 %v530_v8, %v524_v7  ;;  %v574_v2 = vld [vmem:[#allocation9 + $0x328] sm:$0xff]  ;;  %v2633_v4 = vpack.c.bf16 %v565_v54, %v559_v52  ;;  %v571_v7 = vld [vmem:[#allocation9 + $0x310] sm:$0xff] }
 0x1c1   :  { %v466_v23 = vmax.f32 %v389_v15, 0.0  ;;  %857 = vmatprep.mubr.f32.mxu1 %v471_v14  ;;  %v529_v15 = vld [vmem:[#allocation9 + $0x1c0] sm:$0xff]  ;;  %v2715_v17 = vpack.c.bf16 %v532_v10, %v526_v9  ;;  %v2731_v10 = vpack.c.bf16 %v580_v3, %v574_v2  ;;  %v622_v52 = vld [vmem:[#allocation9 + $0x4a8] sm:$0xff]  ;;  %v628_v54 = vld [vmem:[#allocation9 + $0x4d8] sm:$0xff] }
 0x1c2   :  { %v467_v27 = vmax.f32 %v391_v20, 0.0  ;;  %v542_v20 = vld [vmem:[#allocation9 + $0x228] sm:$0xff]  ;;  %v577_v8 = vld [vmem:[#allocation9 + $0x340] sm:$0xff]  ;;  %v2747_v3 = vpack.c.bf16 %v628_v54, %v622_v52 }
 0x1c3   :  { %v3837_v31 = vmax.f32 %v466_v23, %v469_v16  ;;  %v525_v16 = vld [vmem:[#allocation9 + $0x1a0] sm:$0xff]  ;;  %v2623_v25 = vpack.c.bf16 %v542_v20, %v536_v19  ;;  %v583_v19 = vld [vmem:[#allocation9 + $0x370] sm:$0xff] }
 0x1c4   :  { %v3839_v36 = vmax.f32 %v464_v26, %v467_v27  ;;  %v2717_v24 = vpack.c.bf16 %v531_v18, %v525_v16  ;;  %v535_v26 = vld [vmem:[#allocation9 + $0x1f0] sm:$0xff]  ;;  %v541_v27 = vld [vmem:[#allocation9 + $0x220] sm:$0xff]  ;;  %v2637_v16 = vpack.c.bf16 %v577_v8, %v571_v7  ;;  %v634_v7 = vld [vmem:[#allocation9 + $0x508] sm:$0xff] }
 0x1c5   :  { %929 = vmatmul.mubr.f32.vlgmr.msra.gmra.mrb[2].mxu0 %v3837_v31  ;;  %v573_v9 = vld [vmem:[#allocation9 + $0x320] sm:$0xff]  ;;  %v640_v8 = vld [vmem:[#allocation9 + $0x538] sm:$0xff] }
 0x1c6   :  { %2606 = vmatpush1.bf16.msra.mxu0 %v2605_v28  ;;  %858 = vmatmul.mubr.f32.vlgmr.msra.gmra.mrb[4].mxu1 %v3839_v36  ;;  %v537_v28 = vld [vmem:[#allocation9 + $0x200] sm:$0xff] }
 0x1c7   :  { %999 = vmatprep.mubr.f32.mxu0 %v471_v14  ;;  %2702 = vmatpush1.bf16.msra.mxu1 %v2701_v32  ;;  %v548_v32 = vld [vmem:[#allocation9 + $0x258] sm:$0xff]  ;;  %v2721_v38 = vpack.c.bf16 %v543_v30, %v537_v28  ;;  %v589_v20 = vld [vmem:[#allocation9 + $0x3a0] sm:$0xff] }
 0x1c8   :  { %1141 = vmatprep.mubr.f32.mxu1 %v471_v14  ;;  %2608 = vmatprep.subr.bf16.mxu0 %v2607_v37  ;;  %v523_v14 = vld [vmem:[#allocation9 + $0x190] sm:$0xff]  ;;  %v2625_v37 = vpack.c.bf16 %v541_v27, %v535_v26  ;;  %v2627_v39 = vpack.c.bf16 %v554_v33, %v548_v32  ;;  %v598_v26 = vld [vmem:[#allocation9 + $0x3e8] sm:$0xff]  ;;  %v604_v27 = vld [vmem:[#allocation9 + $0x418] sm:$0xff]  ;;  %v2641_v28 = vpack.c.bf16 %v589_v20, %v583_v19 }
 0x1c9   :  { %2704 = vmatprep.subr.bf16.mxu1 %v2703_v41  ;;  %v2621_v23 = vpack.c.bf16 %v529_v15, %v523_v14  ;;  %v553_v41 = vld [vmem:[#allocation9 + $0x280] sm:$0xff]  ;;  %v586_v14 = vld [vmem:[#allocation9 + $0x388] sm:$0xff]  ;;  %v592_v15 = vld [vmem:[#allocation9 + $0x3b8] sm:$0xff]  ;;  %v2739_v35 = vpack.c.bf16 %v604_v27, %v598_v26 }
 0x1ca   :  { %2610 = vmatpush1.bf16.msra.mxu0 %v2609_v44  ;;  %v555_v44 = vld [vmem:[#allocation9 + $0x290] sm:$0xff]  ;;  %v2629_v49 = vpack.c.bf16 %v553_v41, %v547_v40  ;;  %v2735_v22 = vpack.c.bf16 %v592_v15, %v586_v14  ;;  %v601_v33 = vld [vmem:[#allocation9 + $0x400] sm:$0xff]  ;;  %v610_v40 = vld [vmem:[#allocation9 + $0x448] sm:$0xff]  ;;  %v2751_v15 = vpack.c.bf16 %v640_v8, %v634_v7 }
 0x1cb   :  { %2706 = vmatpush1.bf16.msra.mxu1 %v2705_v45  ;;  %2612 = vmatprep.subr.bf16.mxu0 %v2611_v46  ;;  %v560_v45 = vld [vmem:[#allocation9 + $0x2b8] sm:$0xff]  ;;  %v566_v46 = vld [vmem:[#allocation9 + $0x2e8] sm:$0xff]  ;;  %v595_v32 = vld [vmem:[#allocation9 + $0x3d0] sm:$0xff] }
 0x1cc   :  { %2708 = vmatprep.subr.bf16.mxu1 %v2707_v50  ;;  %v2725_v50 = vpack.c.bf16 %v555_v44, %v549_v42  ;;  %v2631_v51 = vpack.c.bf16 %v566_v46, %v560_v45  ;;  %v616_v41 = vld [vmem:[#allocation9 + $0x478] sm:$0xff]  ;;  %v2645_v42 = vpack.c.bf16 %v601_v33, %v595_v32  ;;  %v607_v45 = vld [vmem:[#allocation9 + $0x430] sm:$0xff]  ;;  %v613_v46 = vld [vmem:[#allocation9 + $0x460] sm:$0xff] }
 0x1cd   :  { %v2743_v48 = vpack.c.bf16 %v616_v41, %v610_v40  ;;  %v621_v2 = vld [vmem:[#allocation9 + $0x4a0] sm:$0xff]  ;;  %v646_v19 = vld [vmem:[#allocation9 + $0x568] sm:$0xff]  ;;  %v652_v20 = vld [vmem:[#allocation9 + $0x598] sm:$0xff] }
 0x1ce   :  { %2614 = vmatpush1.bf16.msra.mxu0 %v2613_v61  ;;  %v567_v61 = vld [vmem:[#allocation9 + $0x2f0] sm:$0xff]  ;;  %v633_v14 = vld [vmem:[#allocation9 + $0x500] sm:$0xff]  ;;  %v2755_v27 = vpack.c.bf16 %v652_v20, %v646_v19  ;;  %v658_v32 = vld [vmem:[#allocation9 + $0x5c8] sm:$0xff] }
 0x1cf   :  { %2710 = vmatpush1.bf16.msra.mxu1 %v2709_v62  ;;  %2616 = vmatprep.subr.bf16.mxu0 %v2615_v0  ;;  %v572_v62 = vld [vmem:[#allocation9 + $0x318] sm:$0xff]  ;;  %v578_v0 = vld [vmem:[#allocation9 + $0x348] sm:$0xff]  ;;  %v645_v26 = vld [vmem:[#allocation9 + $0x560] sm:$0xff] }
 0x1d0   :  { %2712 = vmatprep.subr.bf16.mxu1 %v2711_v5  ;;  %v2729_v5 = vpack.c.bf16 %v567_v61, %v561_v58  ;;  %v2635_v6 = vpack.c.bf16 %v578_v0, %v572_v62  ;;  %v2649_v58 = vpack.c.bf16 %v613_v46, %v607_v45  ;;  %v619_v62 = vld [vmem:[#allocation9 + $0x490] sm:$0xff]  ;;  %v625_v0 = vld [vmem:[#allocation9 + $0x4c0] sm:$0xff]  ;;  %v664_v33 = vld [vmem:[#allocation9 + $0x5f8] sm:$0xff] }
 0x1d1   :  { %v657_v40 = vld [vmem:[#allocation9 + $0x5c0] sm:$0xff]  ;;  %v2759_v41 = vpack.c.bf16 %v664_v33, %v658_v32  ;;  %v670_v45 = vld [vmem:[#allocation9 + $0x628] sm:$0xff]  ;;  %v676_v46 = vld [vmem:[#allocation9 + $0x658] sm:$0xff] }
 0x1d2   :  { %2618 = vmatpush1.bf16.msra.mxu0 %v2617_v11  ;;  %v579_v11 = vld [vmem:[#allocation9 + $0x350] sm:$0xff]  ;;  %v669_v52 = vld [vmem:[#allocation9 + $0x620] sm:$0xff]  ;;  %v2763_v54 = vpack.c.bf16 %v676_v46, %v670_v45 }
 0x1d3   :  { %2714 = vmatpush1.bf16.msra.mxu1 %v2713_v12  ;;  %2620 = vmatprep.subr.bf16.mxu0 %v2619_v13  ;;  %v584_v12 = vld [vmem:[#allocation9 + $0x378] sm:$0xff]  ;;  %v590_v13 = vld [vmem:[#allocation9 + $0x3a8] sm:$0xff]  ;;  %v681_v7 = vld [vmem:[#allocation9 + $0x680] sm:$0xff] }
 0x1d4   :  { %2716 = vmatprep.subr.bf16.mxu1 %v2715_v17  ;;  %v2733_v17 = vpack.c.bf16 %v579_v11, %v573_v9  ;;  %v2639_v18 = vpack.c.bf16 %v590_v13, %v584_v12  ;;  %v2653_v9 = vpack.c.bf16 %v625_v0, %v619_v62  ;;  %v631_v12 = vld [vmem:[#allocation9 + $0x4f0] sm:$0xff]  ;;  %v637_v13 = vld [vmem:[#allocation9 + $0x520] sm:$0xff]  ;;  %v682_v62 = vld [vmem:[#allocation9 + $0x688] sm:$0xff] }
 0x1d5   :  { %v688_v0 = vld [vmem:[#allocation9 + $0x6b8] sm:$0xff]  ;;  %v693_v19 = vld [vmem:[#allocation9 + $0x6e0] sm:$0xff]  ;;  %v711_v33 = vld [vmem:[#allocation9 + $0x770] sm:$0xff] }
 0x1d6   :  { %2622 = vmatpush1.bf16.msra.mxu0 %v2621_v23  ;;  %v591_v23 = vld [vmem:[#allocation9 + $0x3b0] sm:$0xff]  ;;  %v2767_v8 = vpack.c.bf16 %v688_v0, %v682_v62 }
 0x1d7   :  { %2718 = vmatpush1.bf16.msra.mxu1 %v2717_v24  ;;  %2624 = vmatprep.subr.bf16.mxu0 %v2623_v25  ;;  %v596_v24 = vld [vmem:[#allocation9 + $0x3d8] sm:$0xff]  ;;  %v602_v25 = vld [vmem:[#allocation9 + $0x408] sm:$0xff]  ;;  %v723_v46 = vld [vmem:[#allocation9 + $0x7d0] sm:$0xff] }
 0x1d8   :  { %2720 = vmatprep.subr.bf16.mxu1 %v2719_v29  ;;  %v2737_v29 = vpack.c.bf16 %v591_v23, %v585_v21  ;;  %v2643_v30 = vpack.c.bf16 %v602_v25, %v596_v24  ;;  %v2657_v21 = vpack.c.bf16 %v637_v13, %v631_v12  ;;  %v643_v24 = vld [vmem:[#allocation9 + $0x550] sm:$0xff]  ;;  %v649_v25 = vld [vmem:[#allocation9 + $0x580] sm:$0xff]  ;;  %v694_v12 = vld [vmem:[#allocation9 + $0x6e8] sm:$0xff] }
 0x1d9   :  { %v700_v13 = vld [vmem:[#allocation9 + $0x718] sm:$0xff]  ;;  %v735_v0 = vld [vmem:[#allocation9 + $0x830] sm:$0xff] }
 0x1da   :  { %2626 = vmatpush1.bf16.msra.mxu0 %v2625_v37  ;;  %v603_v37 = vld [vmem:[#allocation9 + $0x410] sm:$0xff]  ;;  %v2771_v20 = vpack.c.bf16 %v700_v13, %v694_v12 }
 0x1db   :  { %2722 = vmatpush1.bf16.msra.mxu1 %v2721_v38  ;;  %2628 = vmatprep.subr.bf16.mxu0 %v2627_v39  ;;  %v608_v38 = vld [vmem:[#allocation9 + $0x438] sm:$0xff]  ;;  %v614_v39 = vld [vmem:[#allocation9 + $0x468] sm:$0xff]  ;;  %v747_v13 = vld [vmem:[#allocation9 + $0x890] sm:$0xff] }
 0x1dc   :  { %2724 = vmatprep.subr.bf16.mxu1 %v2723_v43  ;;  %v2741_v43 = vpack.c.bf16 %v603_v37, %v597_v34  ;;  %v2647_v44 = vpack.c.bf16 %v614_v39, %v608_v38  ;;  %v2661_v34 = vpack.c.bf16 %v649_v25, %v643_v24  ;;  %v655_v38 = vld [vmem:[#allocation9 + $0x5b0] sm:$0xff]  ;;  %v661_v39 = vld [vmem:[#allocation9 + $0x5e0] sm:$0xff]  ;;  %v706_v24 = vld [vmem:[#allocation9 + $0x748] sm:$0xff] }
 0x1dd   :  { %v712_v25 = vld [vmem:[#allocation9 + $0x778] sm:$0xff] }
 0x1de   :  { %2630 = vmatpush1.bf16.msra.mxu0 %v2629_v49  ;;  %v615_v49 = vld [vmem:[#allocation9 + $0x470] sm:$0xff]  ;;  %v2775_v32 = vpack.c.bf16 %v712_v25, %v706_v24  ;;  %v753_v24 = vld [vmem:[#allocation9 + $0x8c0] sm:$0xff] }
 0x1df   :  { %2726 = vmatpush1.bf16.msra.mxu1 %v2725_v50  ;;  %2632 = vmatprep.subr.bf16.mxu0 %v2631_v51  ;;  %v620_v50 = vld [vmem:[#allocation9 + $0x498] sm:$0xff]  ;;  %v626_v51 = vld [vmem:[#allocation9 + $0x4c8] sm:$0xff]  ;;  %v759_v25 = vld [vmem:[#allocation9 + $0x8f0] sm:$0xff] }
 0x1e0   :  { %2728 = vmatprep.subr.bf16.mxu1 %v2727_v59  ;;  %v2745_v59 = vpack.c.bf16 %v615_v49, %v609_v47  ;;  %v2651_v61 = vpack.c.bf16 %v626_v51, %v620_v50  ;;  %v2665_v47 = vpack.c.bf16 %v661_v39, %v655_v38  ;;  %v667_v50 = vld [vmem:[#allocation9 + $0x610] sm:$0xff]  ;;  %v673_v51 = vld [vmem:[#allocation9 + $0x640] sm:$0xff]  ;;  %v724_v38 = vld [vmem:[#allocation9 + $0x7d8] sm:$0xff] }
 0x1e2   :  { %2634 = vmatpush1.bf16.msra.mxu0 %v2633_v4  ;;  %v627_v4 = vld [vmem:[#allocation9 + $0x4d0] sm:$0xff] }
 0x1e3   :  { %2730 = vmatpush1.bf16.msra.mxu1 %v2729_v5  ;;  %2636 = vmatprep.subr.bf16.mxu0 %v2635_v6  ;;  %v632_v5 = vld [vmem:[#allocation9 + $0x4f8] sm:$0xff]  ;;  %v638_v6 = vld [vmem:[#allocation9 + $0x528] sm:$0xff] }
 0x1e4   :  { %2732 = vmatprep.subr.bf16.mxu1 %v2731_v10  ;;  %v2749_v10 = vpack.c.bf16 %v627_v4, %v621_v2  ;;  %v2655_v11 = vpack.c.bf16 %v638_v6, %v632_v5  ;;  %v2669_v2 = vpack.c.bf16 %v673_v51, %v667_v50  ;;  %v679_v5 = vld [vmem:[#allocation9 + $0x670] sm:$0xff]  ;;  %v685_v6 = vld [vmem:[#allocation9 + $0x6a0] sm:$0xff]  ;;  %v736_v50 = vld [vmem:[#allocation9 + $0x838] sm:$0xff] }
 0x1e6   :  { %2638 = vmatpush1.bf16.msra.mxu0 %v2637_v16  ;;  %v639_v16 = vld [vmem:[#allocation9 + $0x530] sm:$0xff] }
 0x1e7   :  { %2734 = vmatpush1.bf16.msra.mxu1 %v2733_v17  ;;  %2640 = vmatprep.subr.bf16.mxu0 %v2639_v18  ;;  %v644_v17 = vld [vmem:[#allocation9 + $0x558] sm:$0xff]  ;;  %v650_v18 = vld [vmem:[#allocation9 + $0x588] sm:$0xff] }
 0x1e8   :  { %2736 = vmatprep.subr.bf16.mxu1 %v2735_v22  ;;  %v2753_v22 = vpack.c.bf16 %v639_v16, %v633_v14  ;;  %v2659_v23 = vpack.c.bf16 %v650_v18, %v644_v17  ;;  %v2673_v14 = vpack.c.bf16 %v685_v6, %v679_v5  ;;  %v691_v17 = vld [vmem:[#allocation9 + $0x6d0] sm:$0xff]  ;;  %v697_v18 = vld [vmem:[#allocation9 + $0x700] sm:$0xff]  ;;  %v748_v5 = vld [vmem:[#allocation9 + $0x898] sm:$0xff] }
 0x1ea   :  { %2642 = vmatpush1.bf16.msra.mxu0 %v2641_v28  ;;  %v651_v28 = vld [vmem:[#allocation9 + $0x590] sm:$0xff] }
 0x1eb   :  { %2738 = vmatpush1.bf16.msra.mxu1 %v2737_v29  ;;  %2644 = vmatprep.subr.bf16.mxu0 %v2643_v30  ;;  %v656_v29 = vld [vmem:[#allocation9 + $0x5b8] sm:$0xff]  ;;  %v662_v30 = vld [vmem:[#allocation9 + $0x5e8] sm:$0xff] }
 0x1ec   :  { %2740 = vmatprep.subr.bf16.mxu1 %v2739_v35  ;;  %v2757_v35 = vpack.c.bf16 %v651_v28, %v645_v26  ;;  %v2663_v37 = vpack.c.bf16 %v662_v30, %v656_v29  ;;  %v703_v28 = vld [vmem:[#allocation9 + $0x730] sm:$0xff]  ;;  %v709_v29 = vld [vmem:[#allocation9 + $0x760] sm:$0xff] }
 0x1ed   :  { %v705_v30 = vld [vmem:[#allocation9 + $0x740] sm:$0xff]  ;;  %v2681_v39 = vpack.c.bf16 %v709_v29, %v703_v28 }
 0x1ee   :  { %2646 = vmatpush1.bf16.msra.mxu0 %v2645_v42  ;;  %v663_v42 = vld [vmem:[#allocation9 + $0x5f0] sm:$0xff]  ;;  %v1235_v28 = vld [vmem:[#allocation12 + $0x38] sm:$0xff] }
 0x1ef   :  { %2742 = vmatpush1.bf16.msra.mxu1 %v2741_v43  ;;  %2648 = vmatprep.subr.bf16.mxu0 %v2647_v44  ;;  %v668_v43 = vld [vmem:[#allocation9 + $0x618] sm:$0xff]  ;;  %v674_v44 = vld [vmem:[#allocation9 + $0x648] sm:$0xff] }
 0x1f0   :  { %2744 = vmatprep.subr.bf16.mxu1 %v2743_v48  ;;  %v2761_v48 = vpack.c.bf16 %v663_v42, %v657_v40  ;;  %v2667_v49 = vpack.c.bf16 %v674_v44, %v668_v43  ;;  %v2777_v40 = vpack.c.bf16 %v711_v33, %v705_v30  ;;  %v715_v42 = vld [vmem:[#allocation9 + $0x790] sm:$0xff]  ;;  %v721_v43 = vld [vmem:[#allocation9 + $0x7c0] sm:$0xff] }
 0x1f1   :  { %v717_v44 = vld [vmem:[#allocation9 + $0x7a0] sm:$0xff]  ;;  %v2685_v51 = vpack.c.bf16 %v721_v43, %v715_v42  ;;  %v1249_v43 = vld [vmem:[#allocation12 + $0xa8] sm:$0xff] }
 0x1f2   :  { %2650 = vmatpush1.bf16.msra.mxu0 %v2649_v58  ;;  %v675_v58 = vld [vmem:[#allocation9 + $0x650] sm:$0xff]  ;;  %v1231_v29 = vld [vmem:[#allocation12 + $0x18] sm:$0xff]  ;;  %v1228_v33 = vld [vmem:[#allocation12] sm:$0xff] }
 0x1f3   :  { %2746 = vmatpush1.bf16.msra.mxu1 %v2745_v59  ;;  %2652 = vmatprep.subr.bf16.mxu0 %v2651_v61  ;;  %v680_v59 = vld [vmem:[#allocation9 + $0x678] sm:$0xff]  ;;  %v686_v61 = vld [vmem:[#allocation9 + $0x6a8] sm:$0xff] }
 0x1f4   :  { %2748 = vmatprep.subr.bf16.mxu1 %v2747_v3  ;;  %v2765_v3 = vpack.c.bf16 %v675_v58, %v669_v52  ;;  %v2671_v4 = vpack.c.bf16 %v686_v61, %v680_v59  ;;  %v2781_v52 = vpack.c.bf16 %v723_v46, %v717_v44  ;;  %v727_v58 = vld [vmem:[#allocation9 + $0x7f0] sm:$0xff]  ;;  %v733_v59 = vld [vmem:[#allocation9 + $0x820] sm:$0xff] }
 0x1f5   :  { %v729_v61 = vld [vmem:[#allocation9 + $0x800] sm:$0xff]  ;;  %v2689_v6 = vpack.c.bf16 %v733_v59, %v727_v58  ;;  %v1261_v58 = vld [vmem:[#allocation12 + $0x108] sm:$0xff] }
 0x1f6   :  { %2654 = vmatpush1.bf16.msra.mxu0 %v2653_v9  ;;  %v687_v9 = vld [vmem:[#allocation9 + $0x6b0] sm:$0xff]  ;;  %v1243_v42 = vld [vmem:[#allocation12 + $0x78] sm:$0xff]  ;;  %v1240_v46 = vld [vmem:[#allocation12 + $0x60] sm:$0xff] }
 0x1f7   :  { %2750 = vmatpush1.bf16.msra.mxu1 %v2749_v10  ;;  %2656 = vmatprep.subr.bf16.mxu0 %v2655_v11  ;;  %v692_v10 = vld [vmem:[#allocation9 + $0x6d8] sm:$0xff]  ;;  %v698_v11 = vld [vmem:[#allocation9 + $0x708] sm:$0xff] }
 0x1f8   :  { %2752 = vmatprep.subr.bf16.mxu1 %v2751_v15  ;;  %v2769_v15 = vpack.c.bf16 %v687_v9, %v681_v7  ;;  %v2675_v16 = vpack.c.bf16 %v698_v11, %v692_v10  ;;  %v2785_v7 = vpack.c.bf16 %v735_v0, %v729_v61  ;;  %v739_v9 = vld [vmem:[#allocation9 + $0x850] sm:$0xff]  ;;  %v745_v10 = vld [vmem:[#allocation9 + $0x880] sm:$0xff] }
 0x1f9   :  { %v741_v11 = vld [vmem:[#allocation9 + $0x860] sm:$0xff] }
 0x1fa   :  { %2658 = vmatpush1.bf16.msra.mxu0 %v2657_v21  ;;  %v699_v21 = vld [vmem:[#allocation9 + $0x710] sm:$0xff]  ;;  %v1252_v0 = vld [vmem:[#allocation12 + $0xc0] sm:$0xff] }
 0x1fb   :  { %2754 = vmatpush1.bf16.msra.mxu1 %v2753_v22  ;;  %2660 = vmatprep.subr.bf16.mxu0 %v2659_v23  ;;  %v704_v22 = vld [vmem:[#allocation9 + $0x738] sm:$0xff]  ;;  %v710_v23 = vld [vmem:[#allocation9 + $0x768] sm:$0xff]  ;;  %v2773_v26 = vpack.c.bf16 %v699_v21, %v693_v19  ;;  %v2789_v19 = vpack.c.bf16 %v747_v13, %v741_v11  ;;  %v751_v21 = vld [vmem:[#allocation9 + $0x8b0] sm:$0xff] }
 0x1fc   :  { %2756 = vmatprep.subr.bf16.mxu1 %v2755_v27  ;;  %v2679_v27 = vpack.c.bf16 %v710_v23, %v704_v22  ;;  %v757_v22 = vld [vmem:[#allocation9 + $0x8e0] sm:$0xff]  ;;  %v1270_v13 = vld [vmem:[#allocation12 + $0x150] sm:$0xff] }
 0x1fe   :  { %2662 = vmatpush1.bf16.msra.mxu0 %v2661_v34  ;;  %v716_v34 = vld [vmem:[#allocation9 + $0x798] sm:$0xff] }
 0x1ff   :  { %2758 = vmatpush1.bf16.msra.mxu1 %v2757_v35  ;;  %2664 = vmatprep.subr.bf16.mxu0 %v2663_v37  ;;  %v722_v35 = vld [vmem:[#allocation9 + $0x7c8] sm:$0xff] }
 0x200   :  { %2760 = vmatprep.subr.bf16.mxu1 %v2759_v41  ;;  %v718_v37 = vld [vmem:[#allocation9 + $0x7a8] sm:$0xff]  ;;  %v2683_v41 = vpack.c.bf16 %v722_v35, %v716_v34  ;;  %v1234_v34 = vld [vmem:[#allocation12 + $0x30] sm:$0xff] }
 0x201   :  { %v2779_v45 = vpack.c.bf16 %v724_v38, %v718_v37  ;;  %v1230_v37 = vld [vmem:[#allocation12 + $0x10] sm:$0xff]  ;;  %v1236_v38 = vld [vmem:[#allocation12 + $0x40] sm:$0xff] }
 0x202   :  { %2666 = vmatpush1.bf16.msra.mxu0 %v2665_v47  ;;  %v728_v47 = vld [vmem:[#allocation9 + $0x7f8] sm:$0xff]  ;;  %v2893_v44 = vpack.c.bf16 %v1236_v38, %v1230_v37  ;;  %v1288_v37 = vld [vmem:[#allocation12 + $0x1e0] sm:$0xff] }
 0x203   :  { %2762 = vmatpush1.bf16.msra.mxu1 %v2761_v48  ;;  %2668 = vmatprep.subr.bf16.mxu0 %v2667_v49  ;;  %v734_v48 = vld [vmem:[#allocation9 + $0x828] sm:$0xff]  ;;  %v1294_v38 = vld [vmem:[#allocation12 + $0x210] sm:$0xff] }
 0x204   :  { %2764 = vmatprep.subr.bf16.mxu1 %v2763_v54  ;;  %v730_v49 = vld [vmem:[#allocation9 + $0x808] sm:$0xff]  ;;  %v2687_v54 = vpack.c.bf16 %v734_v48, %v728_v47  ;;  %v1246_v47 = vld [vmem:[#allocation12 + $0x90] sm:$0xff] }
 0x205   :  { %1000 = vmatmul.mubr.f32.vlgmr.msra.gmra.mrb[4].mxu0 %v3839_v36  ;;  %v2783_v62 = vpack.c.bf16 %v736_v50, %v730_v49  ;;  %v1242_v48 = vld [vmem:[#allocation12 + $0x70] sm:$0xff]  ;;  %v2895_v49 = vpack.c.bf16 %v1249_v43, %v1243_v42  ;;  %v1248_v50 = vld [vmem:[#allocation12 + $0xa0] sm:$0xff]  ;;  %v2801_v59 = vpack.c.bf16 %v1246_v47, %v1240_v46  ;;  %v1301_v42 = vld [vmem:[#allocation12 + $0x248] sm:$0xff]  ;;  %v2817_v46 = vpack.c.bf16 %v1294_v38, %v1288_v37 }
 0x206   :  { %2670 = vmatpush1.bf16.msra.mxu0 %v2669_v2  ;;  %1142 = vmatmul.mubr.f32.vlgmr.msra.gmra.mrb[6].mxu1 %v3839_v36  ;;  %v2677_v36 = vpack.c.bf16 %v697_v18, %v691_v17  ;;  %v740_v2 = vld [vmem:[#allocation9 + $0x858] sm:$0xff]  ;;  %v2693_v18 = vpack.c.bf16 %v745_v10, %v739_v9  ;;  %v2897_v61 = vpack.c.bf16 %v1248_v50, %v1242_v48  ;;  %v1273_v9 = vld [vmem:[#allocation12 + $0x168] sm:$0xff] }
 0x207   :  { %2766 = vmatpush1.bf16.msra.mxu1 %v2765_v3  ;;  %2672 = vmatprep.subr.bf16.mxu0 %v2671_v4  ;;  %v746_v3 = vld [vmem:[#allocation9 + $0x888] sm:$0xff]  ;;  %v760_v17 = vld [vmem:[#allocation9 + $0x8f8] sm:$0xff] }
 0x208   :  { %2768 = vmatprep.subr.bf16.mxu1 %v2767_v8  ;;  %1070 = vmatprep.mubr.f32.mxu0 %v3582_v1  ;;  %v742_v4 = vld [vmem:[#allocation9 + $0x868] sm:$0xff]  ;;  %v2691_v8 = vpack.c.bf16 %v746_v3, %v740_v2  ;;  %v1258_v2 = vld [vmem:[#allocation12 + $0xf0] sm:$0xff]  ;;  %v1307_v43 = vld [vmem:[#allocation12 + $0x278] sm:$0xff] }
 0x209   :  { %1212 = vmatprep.mubr.f32.mxu1 %v3582_v1  ;;  %v2787_v12 = vpack.c.bf16 %v748_v5, %v742_v4  ;;  %v1254_v3 = vld [vmem:[#allocation12 + $0xd0] sm:$0xff]  ;;  %v1260_v5 = vld [vmem:[#allocation12 + $0x100] sm:$0xff]  ;;  %v2805_v10 = vpack.c.bf16 %v1258_v2, %v1252_v0  ;;  %v2819_v48 = vpack.c.bf16 %v1307_v43, %v1301_v42 }
 0x20a   :  { %2674 = vmatpush1.bf16.msra.mxu0 %v2673_v14  ;;  %v752_v14 = vld [vmem:[#allocation9 + $0x8b8] sm:$0xff] }
 0x20b   :  { %2770 = vmatpush1.bf16.msra.mxu1 %v2769_v15  ;;  %2676 = vmatprep.subr.bf16.mxu0 %v2675_v16  ;;  %v758_v15 = vld [vmem:[#allocation9 + $0x8e8] sm:$0xff]  ;;  %v1306_v50 = vld [vmem:[#allocation12 + $0x270] sm:$0xff] }
 0x20c   :  { %2772 = vmatprep.subr.bf16.mxu1 %v2771_v20  ;;  %v754_v16 = vld [vmem:[#allocation9 + $0x8c8] sm:$0xff]  ;;  %v2695_v20 = vpack.c.bf16 %v758_v15, %v752_v14  ;;  %v1266_v14 = vld [vmem:[#allocation12 + $0x130] sm:$0xff] }
 0x20d   :  { %v2791_v23 = vpack.c.bf16 %v760_v17, %v754_v16  ;;  %v1272_v16 = vld [vmem:[#allocation12 + $0x160] sm:$0xff]  ;;  %v1277_v17 = vld [vmem:[#allocation12 + $0x188] sm:$0xff]  ;;  %v1350_v42 = vld [vmem:[#allocation12 + $0x3d0] sm:$0xff] }
 0x20e   :  { %2678 = vmatpush1.bf16.msra.mxu0 %v2677_v36  ;;  %v2697_v36 = vpack.c.bf16 %v757_v22, %v751_v21  ;;  %v2905_v22 = vpack.c.bf16 %v1272_v16, %v1266_v14  ;;  %v1330_v16 = vld [vmem:[#allocation12 + $0x330] sm:$0xff] }
 0x20f   :  { %2774 = vmatpush1.bf16.msra.mxu1 %v2773_v26  ;;  %2680 = vmatprep.subr.bf16.mxu0 %v2679_v27  ;;  %v2793_v26 = vpack.c.bf16 %v759_v25, %v753_v24  ;;  %v1229_v27 = vld [vmem:[#allocation12 + $0x8] sm:$0xff]  ;;  %v1276_v24 = vld [vmem:[#allocation12 + $0x180] sm:$0xff]  ;;  %v1282_v25 = vld [vmem:[#allocation12 + $0x1b0] sm:$0xff] }
 0x210   :  { %2776 = vmatprep.subr.bf16.mxu1 %v2775_v32  ;;  %v2795_v30 = vpack.c.bf16 %v1235_v28, %v1229_v27  ;;  %v1237_v32 = vld [vmem:[#allocation12 + $0x48] sm:$0xff]  ;;  %v1284_v27 = vld [vmem:[#allocation12 + $0x1c0] sm:$0xff] }
 0x211   :  { %v2891_v35 = vpack.c.bf16 %v1237_v32, %v1231_v29  ;;  %v1289_v28 = vld [vmem:[#allocation12 + $0x1e8] sm:$0xff]  ;;  %v1295_v29 = vld [vmem:[#allocation12 + $0x218] sm:$0xff] }
 0x212   :  { %2682 = vmatpush1.bf16.msra.mxu0 %v2681_v39  ;;  %v1241_v39 = vld [vmem:[#allocation12 + $0x68] sm:$0xff] }
 0x213   :  { %2778 = vmatpush1.bf16.msra.mxu1 %v2777_v40  ;;  %2684 = vmatprep.subr.bf16.mxu0 %v2683_v41  ;;  %v2797_v40 = vpack.c.bf16 %v1234_v34, %v1228_v33  ;;  %v1247_v41 = vld [vmem:[#allocation12 + $0x98] sm:$0xff]  ;;  %v1297_v32 = vld [vmem:[#allocation12 + $0x228] sm:$0xff]  ;;  %v2813_v33 = vpack.c.bf16 %v1282_v25, %v1276_v24 }
 0x214   :  { %2780 = vmatprep.subr.bf16.mxu1 %v2779_v45  ;;  %v2799_v45 = vpack.c.bf16 %v1247_v41, %v1241_v39  ;;  %v1290_v39 = vld [vmem:[#allocation12 + $0x1f0] sm:$0xff]  ;;  %v1296_v41 = vld [vmem:[#allocation12 + $0x220] sm:$0xff] }
 0x215   :  { %v2913_v47 = vpack.c.bf16 %v1296_v41, %v1290_v39  ;;  %v1354_v41 = vld [vmem:[#allocation12 + $0x3f0] sm:$0xff] }
 0x216   :  { %2686 = vmatpush1.bf16.msra.mxu0 %v2685_v51  ;;  %v1253_v51 = vld [vmem:[#allocation12 + $0xc8] sm:$0xff] }
 0x217   :  { %2782 = vmatpush1.bf16.msra.mxu1 %v2781_v52  ;;  %2688 = vmatprep.subr.bf16.mxu0 %v2687_v54  ;;  %v1259_v52 = vld [vmem:[#allocation12 + $0xf8] sm:$0xff] }
 0x218   :  { %2784 = vmatprep.subr.bf16.mxu1 %v2783_v62  ;;  %v1255_v54 = vld [vmem:[#allocation12 + $0xd8] sm:$0xff]  ;;  %v2803_v62 = vpack.c.bf16 %v1259_v52, %v1253_v51  ;;  %v1302_v51 = vld [vmem:[#allocation12 + $0x250] sm:$0xff] }
 0x219   :  { %v2899_v4 = vpack.c.bf16 %v1261_v58, %v1255_v54  ;;  %v1308_v54 = vld [vmem:[#allocation12 + $0x280] sm:$0xff]  ;;  %v1313_v58 = vld [vmem:[#allocation12 + $0x2a8] sm:$0xff] }
 0x21a   :  { %2690 = vmatpush1.bf16.msra.mxu0 %v2689_v6  ;;  %v1265_v6 = vld [vmem:[#allocation12 + $0x128] sm:$0xff]  ;;  %v2917_v2 = vpack.c.bf16 %v1308_v54, %v1302_v51  ;;  %v1366_v54 = vld [vmem:[#allocation12 + $0x450] sm:$0xff] }
 0x21b   :  { %2786 = vmatpush1.bf16.msra.mxu1 %v2785_v7  ;;  %2692 = vmatprep.subr.bf16.mxu0 %v2691_v8  ;;  %v1271_v7 = vld [vmem:[#allocation12 + $0x158] sm:$0xff] }
 0x21c   :  { %2788 = vmatprep.subr.bf16.mxu1 %v2787_v12  ;;  %v1267_v8 = vld [vmem:[#allocation12 + $0x138] sm:$0xff]  ;;  %v2807_v11 = vpack.c.bf16 %v1271_v7, %v1265_v6  ;;  %v1264_v12 = vld [vmem:[#allocation12 + $0x120] sm:$0xff]  ;;  %v1314_v6 = vld [vmem:[#allocation12 + $0x2b0] sm:$0xff] }
 0x21d   :  { %v2903_v15 = vpack.c.bf16 %v1273_v9, %v1267_v8  ;;  %v2809_v21 = vpack.c.bf16 %v1270_v13, %v1264_v12  ;;  %v1320_v8 = vld [vmem:[#allocation12 + $0x2e0] sm:$0xff]  ;;  %v1325_v9 = vld [vmem:[#allocation12 + $0x308] sm:$0xff] }
 0x21e   :  { %2694 = vmatpush1.bf16.msra.mxu0 %v2693_v18  ;;  %v1283_v18 = vld [vmem:[#allocation12 + $0x1b8] sm:$0xff]  ;;  %v2921_v13 = vpack.c.bf16 %v1320_v8, %v1314_v6  ;;  %v1378_v8 = vld [vmem:[#allocation12 + $0x4b0] sm:$0xff] }
 0x21f   :  { %2790 = vmatpush1.bf16.msra.mxu1 %v2789_v19  ;;  %2696 = vmatprep.subr.bf16.mxu0 %v2695_v20  ;;  %v1279_v19 = vld [vmem:[#allocation12 + $0x198] sm:$0xff]  ;;  %v1285_v20 = vld [vmem:[#allocation12 + $0x1c8] sm:$0xff] }
 0x220   :  { %2792 = vmatprep.subr.bf16.mxu1 %v2791_v23  ;;  %v2811_v23 = vpack.c.bf16 %v1283_v18, %v1277_v17  ;;  %v1326_v17 = vld [vmem:[#allocation12 + $0x310] sm:$0xff] }
 0x222   :  { %2698 = vmatpush1.bf16.msra.mxu0 %v2697_v36  ;;  %v1278_v36 = vld [vmem:[#allocation12 + $0x190] sm:$0xff] }
 0x223   :  { %2794 = vmatpush1.bf16.msra.mxu1 %v2793_v26  ;;  %2796 = vmatprep.subr.bf16.mxu0 %v2795_v30  ;;  %v2907_v26 = vpack.c.bf16 %v1285_v20, %v1279_v19  ;;  %v1291_v30 = vld [vmem:[#allocation12 + $0x1f8] sm:$0xff]  ;;  %v2909_v34 = vpack.c.bf16 %v1284_v27, %v1278_v36  ;;  %v1332_v19 = vld [vmem:[#allocation12 + $0x340] sm:$0xff]  ;;  %v1337_v20 = vld [vmem:[#allocation12 + $0x368] sm:$0xff] }
 0x224   :  { %2892 = vmatprep.subr.bf16.mxu1 %v2891_v35  ;;  %v2815_v35 = vpack.c.bf16 %v1295_v29, %v1289_v28  ;;  %v2925_v25 = vpack.c.bf16 %v1332_v19, %v1326_v17  ;;  %v1342_v27 = vld [vmem:[#allocation12 + $0x390] sm:$0xff] }
 0x225   :  { %1071 = vmatmul.mubr.f32.vlgmr.msra.gmra.mrb[4].mxu0 %v3837_v31  ;;  %v1338_v28 = vld [vmem:[#allocation12 + $0x370] sm:$0xff] }
 0x226   :  { %1213 = vmatmul.mubr.f32.vlgmr.msra.gmra.mrb[6].mxu1 %v3837_v31  ;;  %2798 = vmatpush1.bf16.msra.mxu0 %v2797_v40  ;;  %v2901_v31 = vpack.c.bf16 %v1260_v5, %v1254_v3  ;;  %v2911_v40 = vpack.c.bf16 %v1297_v32, %v1291_v30  ;;  %v1318_v5 = vld [vmem:[#allocation12 + $0x2d0] sm:$0xff]  ;;  %v1344_v30 = vld [vmem:[#allocation12 + $0x3a0] sm:$0xff]  ;;  %v1349_v32 = vld [vmem:[#allocation12 + $0x3c8] sm:$0xff] }
 0x227   :  { %2894 = vmatpush1.bf16.msra.mxu1 %v2893_v44  ;;  %2800 = vmatprep.subr.bf16.mxu0 %v2799_v45  ;;  %v1303_v44 = vld [vmem:[#allocation12 + $0x258] sm:$0xff]  ;;  %v1309_v45 = vld [vmem:[#allocation12 + $0x288] sm:$0xff]  ;;  %v2929_v38 = vpack.c.bf16 %v1344_v30, %v1338_v28  ;;  %v1390_v19 = vld [vmem:[#allocation12 + $0x510] sm:$0xff] }
 0x228   :  { %2896 = vmatprep.subr.bf16.mxu1 %v2895_v49  ;;  %v1300_v49 = vld [vmem:[#allocation12 + $0x240] sm:$0xff]  ;;  %v2915_v52 = vpack.c.bf16 %v1309_v45, %v1303_v44  ;;  %v1361_v45 = vld [vmem:[#allocation12 + $0x428] sm:$0xff]  ;;  %v1402_v30 = vld [vmem:[#allocation12 + $0x570] sm:$0xff] }
 0x229   :  { %v2821_v0 = vpack.c.bf16 %v1306_v50, %v1300_v49  ;;  %v1356_v44 = vld [vmem:[#allocation12 + $0x400] sm:$0xff]  ;;  %v1405_v28 = vld [vmem:[#allocation12 + $0x588] sm:$0xff] }
 0x22a   :  { %2802 = vmatpush1.bf16.msra.mxu0 %v2801_v59  ;;  %v1319_v59 = vld [vmem:[#allocation12 + $0x2d8] sm:$0xff]  ;;  %v2933_v50 = vpack.c.bf16 %v1356_v44, %v1350_v42  ;;  %v1417_v42 = vld [vmem:[#allocation12 + $0x5e8] sm:$0xff]  ;;  %v1414_v44 = vld [vmem:[#allocation12 + $0x5d0] sm:$0xff] }
 0x22b   :  { %2898 = vmatpush1.bf16.msra.mxu1 %v2897_v61  ;;  %2804 = vmatprep.subr.bf16.mxu0 %v2803_v62  ;;  %v1315_v61 = vld [vmem:[#allocation12 + $0x2b8] sm:$0xff]  ;;  %v1321_v62 = vld [vmem:[#allocation12 + $0x2e8] sm:$0xff]  ;;  %v2823_v3 = vpack.c.bf16 %v1319_v59, %v1313_v58  ;;  %v1362_v58 = vld [vmem:[#allocation12 + $0x430] sm:$0xff] }
 0x22c   :  { %2900 = vmatprep.subr.bf16.mxu1 %v2899_v4  ;;  %v1312_v4 = vld [vmem:[#allocation12 + $0x2a0] sm:$0xff]  ;;  %v2919_v7 = vpack.c.bf16 %v1321_v62, %v1315_v61  ;;  %v1373_v62 = vld [vmem:[#allocation12 + $0x488] sm:$0xff] }
 0x22d   :  { %v2825_v12 = vpack.c.bf16 %v1318_v5, %v1312_v4  ;;  %v1368_v61 = vld [vmem:[#allocation12 + $0x460] sm:$0xff] }
 0x22e   :  { %2806 = vmatpush1.bf16.msra.mxu0 %v2805_v10  ;;  %v1331_v10 = vld [vmem:[#allocation12 + $0x338] sm:$0xff]  ;;  %v2937_v5 = vpack.c.bf16 %v1368_v61, %v1362_v58  ;;  %v1429_v58 = vld [vmem:[#allocation12 + $0x648] sm:$0xff] }
 0x22f   :  { %2902 = vmatpush1.bf16.msra.mxu1 %v2901_v31  ;;  %2808 = vmatprep.subr.bf16.mxu0 %v2807_v11  ;;  %v1327_v31 = vld [vmem:[#allocation12 + $0x318] sm:$0xff]  ;;  %v1333_v11 = vld [vmem:[#allocation12 + $0x348] sm:$0xff]  ;;  %v2827_v14 = vpack.c.bf16 %v1331_v10, %v1325_v9  ;;  %v1374_v9 = vld [vmem:[#allocation12 + $0x490] sm:$0xff] }
 0x230   :  { %2904 = vmatprep.subr.bf16.mxu1 %v2903_v15  ;;  %v1324_v15 = vld [vmem:[#allocation12 + $0x300] sm:$0xff]  ;;  %v2923_v18 = vpack.c.bf16 %v1333_v11, %v1327_v31  ;;  %v1385_v11 = vld [vmem:[#allocation12 + $0x4e8] sm:$0xff]  ;;  %v761_v61 = vld [vmem:[#allocation11] sm:$0x3f] }
 0x231   :  { %v2829_v24 = vpack.c.bf16 %v1330_v16, %v1324_v15  ;;  %v1380_v31 = vld [vmem:[#allocation12 + $0x4c0] sm:$0xff] }
 0x232   :  { %2810 = vmatpush1.bf16.msra.mxu0 %v2809_v21  ;;  %v1343_v21 = vld [vmem:[#allocation12 + $0x398] sm:$0xff]  ;;  %v2941_v16 = vpack.c.bf16 %v1380_v31, %v1374_v9  ;;  %v778_v31 = vrot.slane %v761_v61, %v3832_v63 }
 0x233   :  { %2906 = vmatpush1.bf16.msra.mxu1 %v2905_v22  ;;  %2812 = vmatprep.subr.bf16.mxu0 %v2811_v23  ;;  %v1339_v22 = vld [vmem:[#allocation12 + $0x378] sm:$0xff]  ;;  %v1345_v23 = vld [vmem:[#allocation12 + $0x3a8] sm:$0xff]  ;;  %v2831_v36 = vpack.c.bf16 %v1343_v21, %v1337_v20  ;;  %v1386_v21 = vld [vmem:[#allocation12 + $0x4f0] sm:$0xff] }
 0x234   :  { %2908 = vmatprep.subr.bf16.mxu1 %v2907_v26  ;;  %v1336_v26 = vld [vmem:[#allocation12 + $0x360] sm:$0xff]  ;;  %v2927_v29 = vpack.c.bf16 %v1345_v23, %v1339_v22 }
 0x235   :  { %v2833_v37 = vpack.c.bf16 %v1342_v27, %v1336_v26  ;;  %v1392_v22 = vld [vmem:[#allocation12 + $0x520] sm:$0xff]  ;;  %v1399_v26 = vld [vmem:[#allocation12 + $0x558] sm:$0xff] }
 0x236   :  { %2814 = vmatpush1.bf16.msra.mxu0 %v2813_v33  ;;  %v1355_v33 = vld [vmem:[#allocation12 + $0x3f8] sm:$0xff] }
 0x237   :  { %2910 = vmatpush1.bf16.msra.mxu1 %v2909_v34  ;;  %2816 = vmatprep.subr.bf16.mxu0 %v2815_v35  ;;  %v1351_v34 = vld [vmem:[#allocation12 + $0x3d8] sm:$0xff]  ;;  %v1357_v35 = vld [vmem:[#allocation12 + $0x408] sm:$0xff]  ;;  %v2835_v39 = vpack.c.bf16 %v1355_v33, %v1349_v32  ;;  %v2947_v32 = vpack.c.bf16 %v1405_v28, %v1399_v26 }
 0x238   :  { %2912 = vmatprep.subr.bf16.mxu1 %v2911_v40  ;;  %v1348_v40 = vld [vmem:[#allocation12 + $0x3c0] sm:$0xff]  ;;  %v2931_v43 = vpack.c.bf16 %v1357_v35, %v1351_v34  ;;  %v1398_v34 = vld [vmem:[#allocation12 + $0x550] sm:$0xff] }
 0x239   :  { %v2837_v49 = vpack.c.bf16 %v1354_v41, %v1348_v40  ;;  %v1404_v35 = vld [vmem:[#allocation12 + $0x580] sm:$0xff]  ;;  %v1411_v40 = vld [vmem:[#allocation12 + $0x5b8] sm:$0xff] }
 0x23a   :  { %2818 = vmatpush1.bf16.msra.mxu0 %v2817_v46  ;;  %v1367_v46 = vld [vmem:[#allocation12 + $0x458] sm:$0xff] }
 0x23b   :  { %2914 = vmatpush1.bf16.msra.mxu1 %v2913_v47  ;;  %2820 = vmatprep.subr.bf16.mxu0 %v2819_v48  ;;  %v1363_v47 = vld [vmem:[#allocation12 + $0x438] sm:$0xff]  ;;  %v1369_v48 = vld [vmem:[#allocation12 + $0x468] sm:$0xff]  ;;  %v2839_v51 = vpack.c.bf16 %v1367_v46, %v1361_v45  ;;  %v2951_v45 = vpack.c.bf16 %v1417_v42, %v1411_v40  ;;  %v1432_v40 = vld [vmem:[#allocation12 + $0x660] sm:$0xff] }
 0x23c   :  { %2916 = vmatprep.subr.bf16.mxu1 %v2915_v52  ;;  %v1360_v52 = vld [vmem:[#allocation12 + $0x420] sm:$0xff]  ;;  %v2935_v59 = vpack.c.bf16 %v1369_v48, %v1363_v47  ;;  %v1410_v47 = vld [vmem:[#allocation12 + $0x5b0] sm:$0xff] }
 0x23d   :  { %v2841_v4 = vpack.c.bf16 %v1366_v54, %v1360_v52  ;;  %v1416_v48 = vld [vmem:[#allocation12 + $0x5e0] sm:$0xff]  ;;  %v1423_v52 = vld [vmem:[#allocation12 + $0x618] sm:$0xff] }
 0x23e   :  { %2822 = vmatpush1.bf16.msra.mxu0 %v2821_v0  ;;  %v1379_v0 = vld [vmem:[#allocation12 + $0x4b8] sm:$0xff] }
 0x23f   :  { %2918 = vmatpush1.bf16.msra.mxu1 %v2917_v2  ;;  %2824 = vmatprep.subr.bf16.mxu0 %v2823_v3  ;;  %v1375_v2 = vld [vmem:[#allocation12 + $0x498] sm:$0xff]  ;;  %v1381_v3 = vld [vmem:[#allocation12 + $0x4c8] sm:$0xff]  ;;  %v2843_v6 = vpack.c.bf16 %v1379_v0, %v1373_v62  ;;  %v766_v62 = vrot.slane %v761_v61, %v3825_v57  ;;  %v770_v0 = vrot.slane %v761_v61, %v3819_v53 }
 0x240   :  { %2920 = vmatprep.subr.bf16.mxu1 %v2919_v7  ;;  %v1372_v7 = vld [vmem:[#allocation12 + $0x480] sm:$0xff]  ;;  %v2939_v10 = vpack.c.bf16 %v1381_v3, %v1375_v2 }
 0x241   :  { %v2845_v15 = vpack.c.bf16 %v1378_v8, %v1372_v7 }
 0x242   :  { %2826 = vmatpush1.bf16.msra.mxu0 %v2825_v12  ;;  %v1391_v12 = vld [vmem:[#allocation12 + $0x518] sm:$0xff] }
 0x243   :  { %2922 = vmatpush1.bf16.msra.mxu1 %v2921_v13  ;;  %2828 = vmatprep.subr.bf16.mxu0 %v2827_v14  ;;  %v1387_v13 = vld [vmem:[#allocation12 + $0x4f8] sm:$0xff]  ;;  %v1393_v14 = vld [vmem:[#allocation12 + $0x528] sm:$0xff]  ;;  %v2847_v17 = vpack.c.bf16 %v1391_v12, %v1385_v11  ;;  %v782_v11 = vrot.slane %v761_v61, %v3821_v55  ;;  %v786_v12 = vrot.slane %v761_v61, %v3823_v56 }
 0x244   :  { %2924 = vmatprep.subr.bf16.mxu1 %v2923_v18  ;;  %v1384_v18 = vld [vmem:[#allocation12 + $0x4e0] sm:$0xff]  ;;  %v2943_v20 = vpack.c.bf16 %v1393_v14, %v1387_v13 }
 0x245   :  { %v2849_v23 = vpack.c.bf16 %v1390_v19, %v1384_v18 }
 0x246   :  { %2830 = vmatpush1.bf16.msra.mxu0 %v2829_v24  ;;  %v2945_v24 = vpack.c.bf16 %v1392_v22, %v1386_v21  ;;  %v1426_v21 = vld [vmem:[#allocation12 + $0x630] sm:$0xff] }
 0x247   :  { %2926 = vmatpush1.bf16.msra.mxu1 %v2925_v25  ;;  %2832 = vmatprep.subr.bf16.mxu0 %v2831_v36  ;;  %v1397_v25 = vld [vmem:[#allocation12 + $0x548] sm:$0xff]  ;;  %v1403_v36 = vld [vmem:[#allocation12 + $0x578] sm:$0xff]  ;;  %v1422_v22 = vld [vmem:[#allocation12 + $0x610] sm:$0xff] }
 0x248   :  { %2928 = vmatprep.subr.bf16.mxu1 %v2927_v29  ;;  %v2851_v27 = vpack.c.bf16 %v1403_v36, %v1397_v25  ;;  %v1396_v29 = vld [vmem:[#allocation12 + $0x540] sm:$0xff]  ;;  %v1433_v25 = vld [vmem:[#allocation12 + $0x668] sm:$0xff]  ;;  %v1439_v36 = vld [vmem:[#allocation12 + $0x698] sm:$0xff] }
 0x249   :  { %v2853_v33 = vpack.c.bf16 %v1402_v30, %v1396_v29  ;;  %v1435_v30 = vld [vmem:[#allocation12 + $0x678] sm:$0xff] }
 0x24a   :  { %2834 = vmatpush1.bf16.msra.mxu0 %v2833_v37  ;;  %v2949_v37 = vpack.c.bf16 %v1404_v35, %v1398_v34 }
 0x24b   :  { %2930 = vmatpush1.bf16.msra.mxu1 %v2929_v38  ;;  %2836 = vmatprep.subr.bf16.mxu0 %v2835_v39  ;;  %v1409_v38 = vld [vmem:[#allocation12 + $0x5a8] sm:$0xff]  ;;  %v1415_v39 = vld [vmem:[#allocation12 + $0x5d8] sm:$0xff] }
 0x24c   :  { %2932 = vmatprep.subr.bf16.mxu1 %v2931_v43  ;;  %v2855_v41 = vpack.c.bf16 %v1415_v39, %v1409_v38  ;;  %v1408_v43 = vld [vmem:[#allocation12 + $0x5a0] sm:$0xff] }
 0x24d   :  { %v2857_v46 = vpack.c.bf16 %v1414_v44, %v1408_v43  ;;  %v2863_v43 = vpack.c.bf16 %v1439_v36, %v1433_v25  ;;  %v1481_v25 = vld [vmem:[#allocation12 + $0x7e8] sm:$0xff]  ;;  %v1487_v36 = vld [vmem:[#allocation12 + $0x818] sm:$0xff] }
 0x24e   :  { %2838 = vmatpush1.bf16.msra.mxu0 %v2837_v49  ;;  %v2953_v49 = vpack.c.bf16 %v1416_v48, %v1410_v47  ;;  %v1445_v47 = vld [vmem:[#allocation12 + $0x6c8] sm:$0xff]  ;;  %v1451_v48 = vld [vmem:[#allocation12 + $0x6f8] sm:$0xff] }
 0x24f   :  { %2934 = vmatpush1.bf16.msra.mxu1 %v2933_v50  ;;  %2840 = vmatprep.subr.bf16.mxu0 %v2839_v51  ;;  %v1421_v50 = vld [vmem:[#allocation12 + $0x608] sm:$0xff]  ;;  %v1427_v51 = vld [vmem:[#allocation12 + $0x638] sm:$0xff] }
 0x250   :  { %2936 = vmatprep.subr.bf16.mxu1 %v2935_v59  ;;  %v2859_v54 = vpack.c.bf16 %v1427_v51, %v1421_v50  ;;  %v2955_v59 = vpack.c.bf16 %v1429_v58, %v1423_v52  ;;  %v1453_v50 = vld [vmem:[#allocation12 + $0x708] sm:$0xff]  ;;  %v1450_v58 = vld [vmem:[#allocation12 + $0x6f0] sm:$0xff] }
 0x252   :  { %2842 = vmatpush1.bf16.msra.mxu0 %v2841_v4 }
 0x253   :  { %2938 = vmatpush1.bf16.msra.mxu1 %v2937_v5  ;;  %2844 = vmatprep.subr.bf16.mxu0 %v2843_v6 }
 0x254   :  { %2940 = vmatprep.subr.bf16.mxu1 %v2939_v10  ;;  %v774_v10 = vrot.slane %v761_v61, %v3829_v60 }
 0x256   :  { %2846 = vmatpush1.bf16.msra.mxu0 %v2845_v15 }
 0x257   :  { %2942 = vmatpush1.bf16.msra.mxu1 %v2941_v16  ;;  %2848 = vmatprep.subr.bf16.mxu0 %v2847_v17 }
 0x258   :  { %2944 = vmatprep.subr.bf16.mxu1 %v2943_v20  ;;  %v1420_v20 = vld [vmem:[#allocation12 + $0x600] sm:$0xff] }
 0x259   :  { %v2861_v38 = vpack.c.bf16 %v1426_v21, %v1420_v20  ;;  %v1474_v20 = vld [vmem:[#allocation12 + $0x7b0] sm:$0xff] }
 0x25a   :  { %2850 = vmatpush1.bf16.msra.mxu0 %v2849_v23 }
 0x25b   :  { %2946 = vmatpush1.bf16.msra.mxu1 %v2945_v24  ;;  %2852 = vmatprep.subr.bf16.mxu0 %v2851_v27  ;;  %v1428_v24 = vld [vmem:[#allocation12 + $0x640] sm:$0xff] }
 0x25c   :  { %2948 = vmatprep.subr.bf16.mxu1 %v2947_v32  ;;  %v1441_v32 = vld [vmem:[#allocation12 + $0x6a8] sm:$0xff]  ;;  %v2957_v39 = vpack.c.bf16 %v1428_v24, %v1422_v22  ;;  %v1476_v24 = vld [vmem:[#allocation12 + $0x7c0] sm:$0xff] }
 0x25d   :  { %v2959_v44 = vpack.c.bf16 %v1441_v32, %v1435_v30  ;;  %v1480_v30 = vld [vmem:[#allocation12 + $0x7e0] sm:$0xff]  ;;  %v1486_v32 = vld [vmem:[#allocation12 + $0x810] sm:$0xff] }
 0x25e   :  { %2854 = vmatpush1.bf16.msra.mxu0 %v2853_v33 }
 0x25f   :  { %2950 = vmatpush1.bf16.msra.mxu1 %v2949_v37  ;;  %2856 = vmatprep.subr.bf16.mxu0 %v2855_v41  ;;  %v1438_v41 = vld [vmem:[#allocation12 + $0x690] sm:$0xff] }
 0x260   :  { %2952 = vmatprep.subr.bf16.mxu1 %v2951_v45  ;;  %v1434_v45 = vld [vmem:[#allocation12 + $0x670] sm:$0xff]  ;;  %v2865_v51 = vpack.c.bf16 %v1438_v41, %v1432_v40  ;;  %v1493_v40 = vld [vmem:[#allocation12 + $0x848] sm:$0xff]  ;;  %v1499_v41 = vld [vmem:[#allocation12 + $0x878] sm:$0xff] }
 0x262   :  { %2858 = vmatpush1.bf16.msra.mxu0 %v2857_v46  ;;  %v1440_v46 = vld [vmem:[#allocation12 + $0x6a0] sm:$0xff] }
 0x263   :  { %2954 = vmatpush1.bf16.msra.mxu1 %v2953_v49  ;;  %2860 = vmatprep.subr.bf16.mxu0 %v2859_v54  ;;  %v1447_v49 = vld [vmem:[#allocation12 + $0x6d8] sm:$0xff]  ;;  %v2961_v52 = vpack.c.bf16 %v1440_v46, %v1434_v45  ;;  %v1444_v54 = vld [vmem:[#allocation12 + $0x6c0] sm:$0xff]  ;;  %v2881_v45 = vpack.c.bf16 %v1486_v32, %v1480_v30  ;;  %v1274_v30 = vld [vmem:[#allocation12 + $0x170] sm:$0xff] }
 0x264   :  { %2956 = vmatprep.subr.bf16.mxu1 %v2955_v59  ;;  %v2867_v59 = vpack.c.bf16 %v1451_v48, %v1445_v47  ;;  %v2963_v61 = vpack.c.bf16 %v1453_v50, %v1447_v49  ;;  %v1492_v47 = vld [vmem:[#allocation12 + $0x840] sm:$0xff]  ;;  %v1498_v48 = vld [vmem:[#allocation12 + $0x870] sm:$0xff]  ;;  %v2883_v49 = vpack.c.bf16 %v1499_v41, %v1493_v40  ;;  %v1281_v32 = vld [vmem:[#allocation12 + $0x1a8] sm:$0xff] }
 0x265   :  { %v1293_v40 = vld [vmem:[#allocation12 + $0x208] sm:$0xff]  ;;  %v1299_v41 = vld [vmem:[#allocation12 + $0x238] sm:$0xff] }
 0x298   :  { %v930_v2 = vpop.f32.mrb[2].mxu0 }
 0x299   :  { %v859_v3 = vpop.f32.mrb[4].mxu1  ;;  %v932_v4 = vpop.f32.mrb[3].mxu0 }
 0x29a   :  { %v860_v5 = vadd.f32 %v859_v3, %v766_v62  ;;  %v861_v6 = vpop.f32.mrb[5].mxu1  ;;  %v1446_v62 = vld [vmem:[#allocation12 + $0x6d0] sm:$0xff]  ;;  %v1463_v3 = vld [vmem:[#allocation12 + $0x758] sm:$0xff] }
 0x29b   :  { %v862_v7 = vadd.f32 %v861_v6, %v770_v0  ;;  %v1452_v0 = vld [vmem:[#allocation12 + $0x700] sm:$0xff]  ;;  %v2869_v6 = vpack.c.bf16 %v1450_v58, %v1444_v54  ;;  %v1505_v54 = vld [vmem:[#allocation12 + $0x8a8] sm:$0xff]  ;;  %v1511_v58 = vld [vmem:[#allocation12 + $0x8d8] sm:$0xff] }
 0x29c   :  { %v931_v8 = vadd.f32 %v930_v2, %v860_v5  ;;  %v1457_v2 = vld [vmem:[#allocation12 + $0x728] sm:$0xff] }
 0x29d   :  { %v933_v9 = vadd.f32 %v932_v4, %v862_v7  ;;  %v1459_v4 = vld [vmem:[#allocation12 + $0x738] sm:$0xff]  ;;  %v1465_v5 = vld [vmem:[#allocation12 + $0x768] sm:$0xff]  ;;  %v2965_v7 = vpack.c.bf16 %v1452_v0, %v1446_v62  ;;  %v2885_v62 = vpack.c.bf16 %v1498_v48, %v1492_v47 }
 0x29e   :  { %v1219_v26 = vmax.f32 %v931_v8, 0.0  ;;  %v1456_v8 = vld [vmem:[#allocation12 + $0x720] sm:$0xff]  ;;  %v1305_v47 = vld [vmem:[#allocation12 + $0x268] sm:$0xff]  ;;  %v1311_v48 = vld [vmem:[#allocation12 + $0x298] sm:$0xff] }
 0x29f   :  { %v1220_v27 = vmax.f32 %v933_v9, 0.0  ;;  %v1462_v9 = vld [vmem:[#allocation12 + $0x750] sm:$0xff] }
 0x2f8   :  { %v1072_v13 = vpop.f32.mrb[4].mxu0 }
 0x2f9   :  { %v3215_v14 = vadd.f32 %v1072_v13, %v774_v10  ;;  %v1074_v15 = vpop.f32.mrb[5].mxu0  ;;  %v1214_v16 = vpop.f32.mrb[6].mxu1  ;;  %v2871_v10 = vpack.c.bf16 %v1463_v3, %v1457_v2  ;;  %v1469_v13 = vld [vmem:[#allocation12 + $0x788] sm:$0xff]  ;;  %v1504_v2 = vld [vmem:[#allocation12 + $0x8a0] sm:$0xff]  ;;  %v2887_v3 = vpack.c.bf16 %v1511_v58, %v1505_v54  ;;  %v1323_v58 = vld [vmem:[#allocation12 + $0x2f8] sm:$0xff] }
 0x2fa   :  { %v3216_v17 = vadd.f32 %v1074_v15, %v778_v31  ;;  %v3217_v18 = vadd.f32 %v1214_v16, %v782_v11  ;;  %v1216_v19 = vpop.f32.mrb[7].mxu1  ;;  %v2967_v31 = vpack.c.bf16 %v1465_v5, %v1459_v4  ;;  %v1458_v11 = vld [vmem:[#allocation12 + $0x730] sm:$0xff]  ;;  %v1471_v15 = vld [vmem:[#allocation12 + $0x798] sm:$0xff]  ;;  %v1477_v16 = vld [vmem:[#allocation12 + $0x7c8] sm:$0xff] }
 0x2fb   :  { %v3218_v23 = vadd.f32 %v1216_v19, %v786_v12  ;;  %v1221_v33 = vmax.f32 %v3215_v14, 0.0  ;;  %v1464_v12 = vld [vmem:[#allocation12 + $0x760] sm:$0xff]  ;;  %v1475_v14 = vld [vmem:[#allocation12 + $0x7b8] sm:$0xff]  ;;  %v2971_v22 = vpack.c.bf16 %v1477_v16, %v1471_v15  ;;  %v1510_v5 = vld [vmem:[#allocation12 + $0x8d0] sm:$0xff] }
 0x2fc   :  { %v1222_v28 = vmax.f32 %v3216_v17, 0.0  ;;  %v1223_v29 = vmax.f32 %v3217_v18, 0.0  ;;  %v2873_v17 = vpack.c.bf16 %v1462_v9, %v1456_v8  ;;  %v2969_v18 = vpack.c.bf16 %v1464_v12, %v1458_v11  ;;  %v1468_v19 = vld [vmem:[#allocation12 + $0x780] sm:$0xff]  ;;  %v1233_v8 = vld [vmem:[#allocation12 + $0x28] sm:$0xff]  ;;  %v1239_v9 = vld [vmem:[#allocation12 + $0x58] sm:$0xff] }
 0x2fd   :  { %v1224_v34 = vmax.f32 %v3218_v23, 0.0  ;;  %v2875_v21 = vpack.c.bf16 %v1475_v14, %v1469_v13  ;;  %v1470_v23 = vld [vmem:[#allocation12 + $0x790] sm:$0xff]  ;;  %v2987_v11 = vpack.c.bf16 %v1239_v9, %v1233_v8  ;;  %v1232_v12 = vld [vmem:[#allocation12 + $0x20] sm:$0xff]  ;;  %v1245_v14 = vld [vmem:[#allocation12 + $0x88] sm:$0xff] }
 0x2fe   :  { %v3855_v35 = vmax.f32 %v1219_v26, %v1222_v28  ;;  %v3857_v37 = vmax.f32 %v1220_v27, %v1223_v29  ;;  %v1483_v26 = vld [vmem:[#allocation12 + $0x7f8] sm:$0xff]  ;;  %v1489_v27 = vld [vmem:[#allocation12 + $0x828] sm:$0xff]  ;;  %v2877_v28 = vpack.c.bf16 %v1474_v20, %v1468_v19  ;;  %v2973_v29 = vpack.c.bf16 %v1476_v24, %v1470_v23  ;;  %v1238_v13 = vld [vmem:[#allocation12 + $0x50] sm:$0xff] }
 0x2ff   :  { %v3859_v42 = vmax.f32 %v1221_v33, %v1224_v34  ;;  %v2879_v33 = vpack.c.bf16 %v1487_v36, %v1481_v25  ;;  %v2975_v34 = vpack.c.bf16 %v1489_v27, %v1483_v26  ;;  %v1251_v15 = vld [vmem:[#allocation12 + $0xb8] sm:$0xff]  ;;  %v2989_v16 = vpack.c.bf16 %v1238_v13, %v1232_v12  ;;  %v1250_v19 = vld [vmem:[#allocation12 + $0xb0] sm:$0xff]  ;;  %v1257_v20 = vld [vmem:[#allocation12 + $0xe8] sm:$0xff] }
 0x300   :  { %1612 = vmatprep.mubr.f32.mxu0 %v3857_v37  ;;  %1754 = vmatprep.mubr.f32.mxu1 %v3857_v37  ;;  %v1256_v24 = vld [vmem:[#allocation12 + $0xe0] sm:$0xff]  ;;  %v1262_v25 = vld [vmem:[#allocation12 + $0x110] sm:$0xff]  ;;  %v1269_v36 = vld [vmem:[#allocation12 + $0x148] sm:$0xff] }
 0x301   :  { %1613 = vmatmul.mubr.f32.vlgmr.msra.gmra.mrb[6].mxu0 %v3855_v35  ;;  %1755 = vmatmul.mubr.f32.vlgmr.msra.gmra.mrb[8].mxu1 %v3855_v35  ;;  %v1275_v26 = vld [vmem:[#allocation12 + $0x178] sm:$0xff]  ;;  %v2997_v27 = vpack.c.bf16 %v1262_v25, %v1256_v24  ;;  %v1317_v54 = vld [vmem:[#allocation12 + $0x2c8] sm:$0xff]  ;;  %v1346_v12 = vld [vmem:[#allocation12 + $0x3b0] sm:$0xff] }
 0x302   :  { %2862 = vmatpush1.bf16.msra.mxu0 %v2861_v38  ;;  %2958 = vmatpush1.bf16.msra.mxu1 %v2957_v39  ;;  %v1482_v38 = vld [vmem:[#allocation12 + $0x7f0] sm:$0xff]  ;;  %v1488_v39 = vld [vmem:[#allocation12 + $0x820] sm:$0xff]  ;;  %v1341_v8 = vld [vmem:[#allocation12 + $0x388] sm:$0xff] }
 0x303   :  { %2864 = vmatprep.subr.bf16.mxu0 %v2863_v43  ;;  %2960 = vmatprep.subr.bf16.mxu1 %v2959_v44  ;;  %v1495_v43 = vld [vmem:[#allocation12 + $0x858] sm:$0xff]  ;;  %v1501_v44 = vld [vmem:[#allocation12 + $0x888] sm:$0xff]  ;;  %v2977_v46 = vpack.c.bf16 %v1488_v39, %v1482_v38  ;;  %v1286_v39 = vld [vmem:[#allocation12 + $0x1d0] sm:$0xff] }
 0x304   :  { %1683 = vmatprep.mubr.f32.mxu0 %v3582_v1  ;;  %1825 = vmatprep.mubr.f32.mxu1 %v3582_v1  ;;  %v2979_v50 = vpack.c.bf16 %v1501_v44, %v1495_v43  ;;  %v3007_v44 = vpack.c.bf16 %v1299_v41, %v1293_v40  ;;  %v1347_v9 = vld [vmem:[#allocation12 + $0x3b8] sm:$0xff]  ;;  %v1353_v13 = vld [vmem:[#allocation12 + $0x3e8] sm:$0xff]  ;;  %v1370_v24 = vld [vmem:[#allocation12 + $0x470] sm:$0xff] }
 0x305   :  { %v1377_v25 = vld [vmem:[#allocation12 + $0x4a8] sm:$0xff]  ;;  %v1407_v40 = vld [vmem:[#allocation12 + $0x598] sm:$0xff] }
 0x306   :  { %2866 = vmatpush1.bf16.msra.mxu0 %v2865_v51  ;;  %2962 = vmatpush1.bf16.msra.mxu1 %v2961_v52  ;;  %v1494_v51 = vld [vmem:[#allocation12 + $0x850] sm:$0xff]  ;;  %v1500_v52 = vld [vmem:[#allocation12 + $0x880] sm:$0xff] }
 0x307   :  { %2868 = vmatprep.subr.bf16.mxu0 %v2867_v59  ;;  %2964 = vmatprep.subr.bf16.mxu1 %v2963_v61  ;;  %v1507_v59 = vld [vmem:[#allocation12 + $0x8b8] sm:$0xff]  ;;  %v1513_v61 = vld [vmem:[#allocation12 + $0x8e8] sm:$0xff]  ;;  %v2981_v0 = vpack.c.bf16 %v1500_v52, %v1494_v51  ;;  %v1304_v51 = vld [vmem:[#allocation12 + $0x260] sm:$0xff] }
 0x308   :  { %v2983_v4 = vpack.c.bf16 %v1513_v61, %v1507_v59  ;;  %v1310_v52 = vld [vmem:[#allocation12 + $0x290] sm:$0xff]  ;;  %v3015_v61 = vpack.c.bf16 %v1323_v58, %v1317_v54  ;;  %v1431_v54 = vld [vmem:[#allocation12 + $0x658] sm:$0xff] }
 0x309   :  { %v3013_v59 = vpack.c.bf16 %v1310_v52, %v1304_v51  ;;  %v1418_v51 = vld [vmem:[#allocation12 + $0x5f0] sm:$0xff]  ;;  %v1425_v52 = vld [vmem:[#allocation12 + $0x628] sm:$0xff] }
 0x30a   :  { %2870 = vmatpush1.bf16.msra.mxu0 %v2869_v6  ;;  %2966 = vmatpush1.bf16.msra.mxu1 %v2965_v7  ;;  %v1506_v6 = vld [vmem:[#allocation12 + $0x8b0] sm:$0xff]  ;;  %v1512_v7 = vld [vmem:[#allocation12 + $0x8e0] sm:$0xff] }
 0x30b   :  { %2872 = vmatprep.subr.bf16.mxu0 %v2871_v10  ;;  %2968 = vmatprep.subr.bf16.mxu1 %v2967_v31  ;;  %v2889_v10 = vpack.c.bf16 %v1510_v5, %v1504_v2  ;;  %v2985_v31 = vpack.c.bf16 %v1512_v7, %v1506_v6  ;;  %v1329_v2 = vld [vmem:[#allocation12 + $0x328] sm:$0xff]  ;;  %v1328_v6 = vld [vmem:[#allocation12 + $0x320] sm:$0xff]  ;;  %v1334_v7 = vld [vmem:[#allocation12 + $0x350] sm:$0xff] }
 0x30e   :  { %2874 = vmatpush1.bf16.msra.mxu0 %v2873_v17  ;;  %2970 = vmatpush1.bf16.msra.mxu1 %v2969_v18  ;;  %v2991_v17 = vpack.c.bf16 %v1251_v15, %v1245_v14  ;;  %v1244_v18 = vld [vmem:[#allocation12 + $0x80] sm:$0xff]  ;;  %v1359_v14 = vld [vmem:[#allocation12 + $0x418] sm:$0xff] }
 0x30f   :  { %2876 = vmatprep.subr.bf16.mxu0 %v2875_v21  ;;  %2972 = vmatprep.subr.bf16.mxu1 %v2971_v22  ;;  %v1263_v21 = vld [vmem:[#allocation12 + $0x118] sm:$0xff]  ;;  %v2993_v22 = vpack.c.bf16 %v1250_v19, %v1244_v18  ;;  %v1358_v18 = vld [vmem:[#allocation12 + $0x410] sm:$0xff]  ;;  %v1365_v19 = vld [vmem:[#allocation12 + $0x448] sm:$0xff] }
 0x310   :  { %v2995_v23 = vpack.c.bf16 %v1263_v21, %v1257_v20  ;;  %v1371_v20 = vld [vmem:[#allocation12 + $0x478] sm:$0xff] }
 0x312   :  { %2878 = vmatpush1.bf16.msra.mxu0 %v2877_v28  ;;  %2974 = vmatpush1.bf16.msra.mxu1 %v2973_v29  ;;  %v2999_v28 = vpack.c.bf16 %v1275_v26, %v1269_v36  ;;  %v1268_v29 = vld [vmem:[#allocation12 + $0x140] sm:$0xff]  ;;  %v1383_v36 = vld [vmem:[#allocation12 + $0x4d8] sm:$0xff] }
 0x313   :  { %2880 = vmatprep.subr.bf16.mxu0 %v2879_v33  ;;  %2976 = vmatprep.subr.bf16.mxu1 %v2975_v34  ;;  %v1287_v33 = vld [vmem:[#allocation12 + $0x1d8] sm:$0xff]  ;;  %v3001_v34 = vpack.c.bf16 %v1274_v30, %v1268_v29  ;;  %v1382_v29 = vld [vmem:[#allocation12 + $0x4d0] sm:$0xff]  ;;  %v1389_v30 = vld [vmem:[#allocation12 + $0x508] sm:$0xff] }
 0x314   :  { %v3003_v38 = vpack.c.bf16 %v1287_v33, %v1281_v32  ;;  %v1395_v32 = vld [vmem:[#allocation12 + $0x538] sm:$0xff] }
 0x316   :  { %2882 = vmatpush1.bf16.msra.mxu0 %v2881_v45  ;;  %2978 = vmatpush1.bf16.msra.mxu1 %v2977_v46  ;;  %v1292_v45 = vld [vmem:[#allocation12 + $0x200] sm:$0xff]  ;;  %v1298_v46 = vld [vmem:[#allocation12 + $0x230] sm:$0xff] }
 0x317   :  { %2884 = vmatprep.subr.bf16.mxu0 %v2883_v49  ;;  %2980 = vmatprep.subr.bf16.mxu1 %v2979_v50  ;;  %v3009_v49 = vpack.c.bf16 %v1298_v46, %v1292_v45  ;;  %v3011_v50 = vpack.c.bf16 %v1311_v48, %v1305_v47  ;;  %v1406_v45 = vld [vmem:[#allocation12 + $0x590] sm:$0xff]  ;;  %v1413_v46 = vld [vmem:[#allocation12 + $0x5c8] sm:$0xff]  ;;  %v1419_v47 = vld [vmem:[#allocation12 + $0x5f8] sm:$0xff] }
 0x31a   :  { %2886 = vmatpush1.bf16.msra.mxu0 %v2885_v62  ;;  %2982 = vmatpush1.bf16.msra.mxu1 %v2981_v0  ;;  %v1316_v62 = vld [vmem:[#allocation12 + $0x2c0] sm:$0xff]  ;;  %v1322_v0 = vld [vmem:[#allocation12 + $0x2f0] sm:$0xff] }
 0x31b   :  { %2888 = vmatprep.subr.bf16.mxu0 %v2887_v3  ;;  %2984 = vmatprep.subr.bf16.mxu1 %v2983_v4  ;;  %v1335_v3 = vld [vmem:[#allocation12 + $0x358] sm:$0xff]  ;;  %v3017_v4 = vpack.c.bf16 %v1322_v0, %v1316_v62  ;;  %v1430_v62 = vld [vmem:[#allocation12 + $0x650] sm:$0xff]  ;;  %v1437_v0 = vld [vmem:[#allocation12 + $0x688] sm:$0xff] }
 0x31c   :  { %v3019_v5 = vpack.c.bf16 %v1335_v3, %v1329_v2  ;;  %v1443_v2 = vld [vmem:[#allocation12 + $0x6b8] sm:$0xff] }
 0x31e   :  { %2890 = vmatpush1.bf16.msra.mxu0 %v2889_v10  ;;  %2986 = vmatpush1.bf16.msra.mxu1 %v2985_v31  ;;  %v3021_v10 = vpack.c.bf16 %v1334_v7, %v1328_v6  ;;  %v3023_v31 = vpack.c.bf16 %v1347_v9, %v1341_v8  ;;  %v1442_v6 = vld [vmem:[#allocation12 + $0x6b0] sm:$0xff]  ;;  %v1449_v7 = vld [vmem:[#allocation12 + $0x6e8] sm:$0xff]  ;;  %v1455_v8 = vld [vmem:[#allocation12 + $0x718] sm:$0xff] }
 0x31f   :  { %2988 = vmatprep.subr.bf16.mxu0 %v2987_v11  ;;  %v1340_v11 = vld [vmem:[#allocation12 + $0x380] sm:$0xff] }
 0x320   :  { %v3025_v15 = vpack.c.bf16 %v1346_v12, %v1340_v11  ;;  %v1454_v11 = vld [vmem:[#allocation12 + $0x710] sm:$0xff]  ;;  %v1461_v12 = vld [vmem:[#allocation12 + $0x748] sm:$0xff] }
 0x321   :  { %1684 = vmatmul.mubr.f32.vlgmr.msra.gmra.mrb[6].mxu0 %v3859_v42  ;;  %1826 = vmatmul.mubr.f32.vlgmr.msra.gmra.mrb[8].mxu1 %v3859_v42 }
 0x322   :  { %2990 = vmatpush1.bf16.msra.mxu0 %v2989_v16  ;;  %1896 = vmatprep.mubr.f32.mxu0 %v3857_v37  ;;  %v1280_v37 = vld [vmem:[#allocation12 + $0x1a0] sm:$0xff]  ;;  %v3027_v16 = vpack.c.bf16 %v1359_v14, %v1353_v13  ;;  %v1467_v13 = vld [vmem:[#allocation12 + $0x778] sm:$0xff] }
 0x323   :  { %2992 = vmatprep.subr.bf16.mxu0 %v2991_v17  ;;  %v3005_v43 = vpack.c.bf16 %v1286_v39, %v1280_v37  ;;  %v1352_v17 = vld [vmem:[#allocation12 + $0x3e0] sm:$0xff]  ;;  %v1394_v37 = vld [vmem:[#allocation12 + $0x530] sm:$0xff]  ;;  %v1401_v39 = vld [vmem:[#allocation12 + $0x568] sm:$0xff] }
 0x324   :  { %v3029_v21 = vpack.c.bf16 %v1358_v18, %v1352_v17  ;;  %v1466_v17 = vld [vmem:[#allocation12 + $0x770] sm:$0xff]  ;;  %v1473_v18 = vld [vmem:[#allocation12 + $0x7a8] sm:$0xff] }
 0x326   :  { %2994 = vmatpush1.bf16.msra.mxu0 %v2993_v22  ;;  %v3031_v22 = vpack.c.bf16 %v1371_v20, %v1365_v19  ;;  %v1479_v19 = vld [vmem:[#allocation12 + $0x7d8] sm:$0xff] }
 0x327   :  { %2996 = vmatprep.subr.bf16.mxu0 %v2995_v23  ;;  %v1364_v23 = vld [vmem:[#allocation12 + $0x440] sm:$0xff]  ;;  %v3067_v20 = vpack.c.bf16 %v1479_v19, %v1473_v18 }
 0x328   :  { %v3033_v26 = vpack.c.bf16 %v1370_v24, %v1364_v23  ;;  %v1485_v23 = vld [vmem:[#allocation12 + $0x808] sm:$0xff]  ;;  %v1491_v24 = vld [vmem:[#allocation12 + $0x838] sm:$0xff] }
 0x329   :  { %v2003_v19 = vld [vmem:[#allocation15 + $0xa0] sm:$0xff] }
 0x32a   :  { %2998 = vmatpush1.bf16.msra.mxu0 %v2997_v27  ;;  %v3035_v27 = vpack.c.bf16 %v1383_v36, %v1377_v25  ;;  %v3071_v36 = vpack.c.bf16 %v1491_v24, %v1485_v23  ;;  %v2007_v24 = vld [vmem:[#allocation15 + $0xc0] sm:$0xff] }
 0x32b   :  { %3000 = vmatprep.subr.bf16.mxu0 %v2999_v28  ;;  %v1376_v28 = vld [vmem:[#allocation12 + $0x4a0] sm:$0xff] }
 0x32c   :  { %v3037_v33 = vpack.c.bf16 %v1382_v29, %v1376_v28  ;;  %v1497_v28 = vld [vmem:[#allocation12 + $0x868] sm:$0xff]  ;;  %v1503_v29 = vld [vmem:[#allocation12 + $0x898] sm:$0xff] }
 0x32e   :  { %3002 = vmatpush1.bf16.msra.mxu0 %v3001_v34  ;;  %v3039_v34 = vpack.c.bf16 %v1395_v32, %v1389_v30  ;;  %v3075_v32 = vpack.c.bf16 %v1503_v29, %v1497_v28  ;;  %v2011_v29 = vld [vmem:[#allocation15 + $0xe0] sm:$0xff] }
 0x32f   :  { %3004 = vmatprep.subr.bf16.mxu0 %v3003_v38  ;;  %v1388_v38 = vld [vmem:[#allocation12 + $0x500] sm:$0xff] }
 0x330   :  { %v3041_v41 = vpack.c.bf16 %v1394_v37, %v1388_v38  ;;  %v1509_v38 = vld [vmem:[#allocation12 + $0x8c8] sm:$0xff]  ;;  %v1515_v37 = vld [vmem:[#allocation12 + $0x8f8] sm:$0xff] }
 0x332   :  { %3006 = vmatpush1.bf16.msra.mxu0 %v3005_v43  ;;  %v3043_v43 = vpack.c.bf16 %v1407_v40, %v1401_v39  ;;  %v3079_v40 = vpack.c.bf16 %v1515_v37, %v1509_v38  ;;  %v2015_v37 = vld [vmem:[#allocation15 + $0x100] sm:$0xff] }
 0x333   :  { %3008 = vmatprep.subr.bf16.mxu0 %v3007_v44  ;;  %v1400_v44 = vld [vmem:[#allocation12 + $0x560] sm:$0xff] }
 0x334   :  { %v3045_v48 = vpack.c.bf16 %v1406_v45, %v1400_v44  ;;  %v1984_v45 = vld [vmem:[#allocation15 + $0x8] sm:$0xff] }
 0x336   :  { %3010 = vmatpush1.bf16.msra.mxu0 %v3009_v49  ;;  %v3047_v49 = vpack.c.bf16 %v1419_v47, %v1413_v46  ;;  %v1986_v46 = vld [vmem:[#allocation15 + $0x18] sm:$0xff]  ;;  %v1983_v47 = vld [vmem:[#allocation15] sm:$0xff] }
 0x337   :  { %3012 = vmatprep.subr.bf16.mxu0 %v3011_v50  ;;  %v1412_v50 = vld [vmem:[#allocation12 + $0x5c0] sm:$0xff] }
 0x338   :  { %v3049_v58 = vpack.c.bf16 %v1418_v51, %v1412_v50  ;;  %v1988_v50 = vld [vmem:[#allocation15 + $0x28] sm:$0xff]  ;;  %v1990_v51 = vld [vmem:[#allocation15 + $0x38] sm:$0xff] }
 0x33a   :  { %3014 = vmatpush1.bf16.msra.mxu0 %v3013_v59  ;;  %v3051_v59 = vpack.c.bf16 %v1431_v54, %v1425_v52  ;;  %v3087_v54 = vpack.c.bf16 %v1990_v51, %v1988_v50  ;;  %v2023_v51 = vld [vmem:[#allocation15 + $0x140] sm:$0xff] }
 0x33b   :  { %3016 = vmatprep.subr.bf16.mxu0 %v3015_v61  ;;  %v1424_v61 = vld [vmem:[#allocation12 + $0x620] sm:$0xff] }
 0x33c   :  { %v3053_v3 = vpack.c.bf16 %v1430_v62, %v1424_v61  ;;  %v1992_v61 = vld [vmem:[#allocation15 + $0x48] sm:$0xff]  ;;  %v1994_v62 = vld [vmem:[#allocation15 + $0x58] sm:$0xff] }
 0x33e   :  { %3018 = vmatpush1.bf16.msra.mxu0 %v3017_v4  ;;  %v3055_v4 = vpack.c.bf16 %v1443_v2, %v1437_v0  ;;  %v3091_v2 = vpack.c.bf16 %v1994_v62, %v1992_v61  ;;  %v2027_v62 = vld [vmem:[#allocation15 + $0x160] sm:$0xff] }
 0x33f   :  { %3020 = vmatprep.subr.bf16.mxu0 %v3019_v5  ;;  %v1436_v5 = vld [vmem:[#allocation12 + $0x680] sm:$0xff] }
 0x340   :  { %v3057_v9 = vpack.c.bf16 %v1442_v6, %v1436_v5  ;;  %v1996_v5 = vld [vmem:[#allocation15 + $0x68] sm:$0xff]  ;;  %v1998_v6 = vld [vmem:[#allocation15 + $0x78] sm:$0xff] }
 0x342   :  { %3022 = vmatpush1.bf16.msra.mxu0 %v3021_v10  ;;  %v3059_v10 = vpack.c.bf16 %v1455_v8, %v1449_v7  ;;  %v3095_v8 = vpack.c.bf16 %v1998_v6, %v1996_v5  ;;  %v2031_v6 = vld [vmem:[#allocation15 + $0x180] sm:$0xff] }
 0x343   :  { %3024 = vmatprep.subr.bf16.mxu0 %v3023_v31  ;;  %v1448_v31 = vld [vmem:[#allocation12 + $0x6e0] sm:$0xff] }
 0x344   :  { %v3061_v14 = vpack.c.bf16 %v1454_v11, %v1448_v31  ;;  %v2000_v31 = vld [vmem:[#allocation15 + $0x88] sm:$0xff]  ;;  %v2002_v11 = vld [vmem:[#allocation15 + $0x98] sm:$0xff] }
 0x346   :  { %3026 = vmatpush1.bf16.msra.mxu0 %v3025_v15  ;;  %v3063_v15 = vpack.c.bf16 %v1467_v13, %v1461_v12  ;;  %v3099_v13 = vpack.c.bf16 %v2002_v11, %v2000_v31  ;;  %v2035_v11 = vld [vmem:[#allocation15 + $0x1a0] sm:$0xff] }
 0x347   :  { %3028 = vmatprep.subr.bf16.mxu0 %v3027_v16  ;;  %v1460_v16 = vld [vmem:[#allocation12 + $0x740] sm:$0xff] }
 0x34a   :  { %3030 = vmatpush1.bf16.msra.mxu0 %v3029_v21  ;;  %v1472_v21 = vld [vmem:[#allocation12 + $0x7a0] sm:$0xff] }
 0x34b   :  { %3032 = vmatprep.subr.bf16.mxu0 %v3031_v22  ;;  %v1478_v22 = vld [vmem:[#allocation12 + $0x7d0] sm:$0xff] }
 0x34c   :  { %v3069_v25 = vpack.c.bf16 %v1478_v22, %v1472_v21  ;;  %v2010_v21 = vld [vmem:[#allocation15 + $0xd8] sm:$0xff] }
 0x34e   :  { %3034 = vmatpush1.bf16.msra.mxu0 %v3033_v26  ;;  %v1484_v26 = vld [vmem:[#allocation12 + $0x800] sm:$0xff] }
 0x34f   :  { %3036 = vmatprep.subr.bf16.mxu0 %v3035_v27  ;;  %v1490_v27 = vld [vmem:[#allocation12 + $0x830] sm:$0xff] }
 0x350   :  { %v3073_v30 = vpack.c.bf16 %v1490_v27, %v1484_v26  ;;  %v2014_v26 = vld [vmem:[#allocation15 + $0xf8] sm:$0xff] }
 0x352   :  { %3038 = vmatpush1.bf16.msra.mxu0 %v3037_v33  ;;  %v1496_v33 = vld [vmem:[#allocation12 + $0x860] sm:$0xff] }
 0x353   :  { %3040 = vmatprep.subr.bf16.mxu0 %v3039_v34  ;;  %v1502_v34 = vld [vmem:[#allocation12 + $0x890] sm:$0xff] }
 0x354   :  { %v3077_v39 = vpack.c.bf16 %v1502_v34, %v1496_v33  ;;  %v2018_v33 = vld [vmem:[#allocation15 + $0x118] sm:$0xff] }
 0x356   :  { %3042 = vmatpush1.bf16.msra.mxu0 %v3041_v41  ;;  %v1508_v41 = vld [vmem:[#allocation12 + $0x8c0] sm:$0xff] }
 0x357   :  { %3044 = vmatprep.subr.bf16.mxu0 %v3043_v43  ;;  %v1514_v43 = vld [vmem:[#allocation12 + $0x8f0] sm:$0xff] }
 0x358   :  { %v3081_v44 = vpack.c.bf16 %v1514_v43, %v1508_v41  ;;  %v2022_v41 = vld [vmem:[#allocation15 + $0x138] sm:$0xff] }
 0x35a   :  { %3046 = vmatpush1.bf16.msra.mxu0 %v3045_v48  ;;  %v3083_v48 = vpack.c.bf16 %v1986_v46, %v1984_v45  ;;  %v2019_v45 = vld [vmem:[#allocation15 + $0x120] sm:$0xff]  ;;  %v2021_v46 = vld [vmem:[#allocation15 + $0x130] sm:$0xff] }
 0x35b   :  { %3048 = vmatprep.subr.bf16.mxu0 %v3047_v49  ;;  %v1985_v49 = vld [vmem:[#allocation15 + $0x10] sm:$0xff] }
 0x35c   :  { %v3085_v52 = vpack.c.bf16 %v1985_v49, %v1983_v47  ;;  %3084 = vmatprep.subr.bf16.mxu1 %v3083_v48  ;;  %v2024_v47 = vld [vmem:[#allocation15 + $0x148] sm:$0xff]  ;;  %v2026_v48 = vld [vmem:[#allocation15 + $0x158] sm:$0xff]  ;;  %v3121_v49 = vpack.c.bf16 %v2021_v46, %v2019_v45 }
 0x35d   :  { %v3123_v50 = vpack.c.bf16 %v2026_v48, %v2024_v47  ;;  %v2236_v46 = vld [vmem:[#allocation18 + $0x8] sm:$0xff]  ;;  %v2253_v47 = vld [vmem:[#allocation18 + $0x90] sm:$0xff]  ;;  %v2254_v48 = vld [vmem:[#allocation18 + $0x98] sm:$0xff] }
 0x35e   :  { %3050 = vmatpush1.bf16.msra.mxu0 %v3049_v58  ;;  %v1987_v58 = vld [vmem:[#allocation15 + $0x20] sm:$0xff]  ;;  %3086 = vmatpush1.bf16.msra.mxu1 %v3085_v52  ;;  %v2025_v52 = vld [vmem:[#allocation15 + $0x150] sm:$0xff] }
 0x35f   :  { %3052 = vmatprep.subr.bf16.mxu0 %v3051_v59  ;;  %v1989_v59 = vld [vmem:[#allocation15 + $0x30] sm:$0xff]  ;;  %3088 = vmatprep.subr.bf16.mxu1 %v3087_v54  ;;  %v2028_v54 = vld [vmem:[#allocation15 + $0x168] sm:$0xff] }
 0x360   :  { %v3089_v0 = vpack.c.bf16 %v1989_v59, %v1987_v58  ;;  %v2030_v58 = vld [vmem:[#allocation15 + $0x178] sm:$0xff]  ;;  %v3125_v59 = vpack.c.bf16 %v2025_v52, %v2023_v51  ;;  %v2255_v52 = vld [vmem:[#allocation18 + $0xa0] sm:$0xff] }
 0x361   :  { %1897 = vmatmul.mubr.f32.vlgmr.msra.gmra.mrb[8].mxu0 %v3855_v35  ;;  %v3065_v35 = vpack.c.bf16 %v1466_v17, %v1460_v16  ;;  %v2004_v16 = vld [vmem:[#allocation15 + $0xa8] sm:$0xff]  ;;  %v2006_v17 = vld [vmem:[#allocation15 + $0xb8] sm:$0xff]  ;;  %v3127_v61 = vpack.c.bf16 %v2030_v58, %v2028_v54 }
 0x362   :  { %3054 = vmatpush1.bf16.msra.mxu0 %v3053_v3  ;;  %1967 = vmatprep.mubr.f32.mxu0 %v3582_v1  ;;  %v1991_v3 = vld [vmem:[#allocation15 + $0x40] sm:$0xff]  ;;  %v2256_v54 = vld [vmem:[#allocation18 + $0xa8] sm:$0xff] }
 0x363   :  { %3056 = vmatprep.subr.bf16.mxu0 %v3055_v4  ;;  %v1993_v4 = vld [vmem:[#allocation15 + $0x50] sm:$0xff]  ;;  %3090 = vmatpush1.bf16.msra.mxu1 %v3089_v0  ;;  %v2238_v51 = vld [vmem:[#allocation18 + $0x18] sm:$0xff] }
 0x364   :  { %v3093_v7 = vpack.c.bf16 %v1993_v4, %v1991_v3  ;;  %3092 = vmatprep.subr.bf16.mxu1 %v3091_v2  ;;  %v2029_v0 = vld [vmem:[#allocation15 + $0x170] sm:$0xff]  ;;  %v2032_v2 = vld [vmem:[#allocation15 + $0x188] sm:$0xff]  ;;  %v2034_v3 = vld [vmem:[#allocation15 + $0x198] sm:$0xff] }
 0x365   :  { %v3129_v4 = vpack.c.bf16 %v2029_v0, %v2027_v62  ;;  %v3131_v5 = vpack.c.bf16 %v2034_v3, %v2032_v2  ;;  %v2240_v62 = vld [vmem:[#allocation18 + $0x28] sm:$0xff]  ;;  %v2257_v0 = vld [vmem:[#allocation18 + $0xb0] sm:$0xff]  ;;  %v2258_v2 = vld [vmem:[#allocation18 + $0xb8] sm:$0xff] }
 0x366   :  { %3058 = vmatpush1.bf16.msra.mxu0 %v3057_v9  ;;  %v1995_v9 = vld [vmem:[#allocation15 + $0x60] sm:$0xff] }
 0x367   :  { %3060 = vmatprep.subr.bf16.mxu0 %v3059_v10  ;;  %v1997_v10 = vld [vmem:[#allocation15 + $0x70] sm:$0xff]  ;;  %3094 = vmatpush1.bf16.msra.mxu1 %v3093_v7 }
 0x368   :  { %v3097_v12 = vpack.c.bf16 %v1997_v10, %v1995_v9  ;;  %3096 = vmatprep.subr.bf16.mxu1 %v3095_v8  ;;  %v2033_v7 = vld [vmem:[#allocation15 + $0x190] sm:$0xff]  ;;  %v2036_v8 = vld [vmem:[#allocation15 + $0x1a8] sm:$0xff]  ;;  %v2038_v9 = vld [vmem:[#allocation15 + $0x1b8] sm:$0xff] }
 0x369   :  { %v3133_v10 = vpack.c.bf16 %v2033_v7, %v2031_v6  ;;  %v3135_v31 = vpack.c.bf16 %v2038_v9, %v2036_v8  ;;  %v2242_v6 = vld [vmem:[#allocation18 + $0x38] sm:$0xff]  ;;  %v2259_v7 = vld [vmem:[#allocation18 + $0xc0] sm:$0xff]  ;;  %v2260_v8 = vld [vmem:[#allocation18 + $0xc8] sm:$0xff] }
 0x36a   :  { %3062 = vmatpush1.bf16.msra.mxu0 %v3061_v14  ;;  %v1999_v14 = vld [vmem:[#allocation15 + $0x80] sm:$0xff] }
 0x36b   :  { %3064 = vmatprep.subr.bf16.mxu0 %v3063_v15  ;;  %v2001_v15 = vld [vmem:[#allocation15 + $0x90] sm:$0xff]  ;;  %3098 = vmatpush1.bf16.msra.mxu1 %v3097_v12 }
 0x36c   :  { %v3101_v18 = vpack.c.bf16 %v2001_v15, %v1999_v14  ;;  %3100 = vmatprep.subr.bf16.mxu1 %v3099_v13  ;;  %v2037_v12 = vld [vmem:[#allocation15 + $0x1b0] sm:$0xff]  ;;  %v2040_v13 = vld [vmem:[#allocation15 + $0x1c8] sm:$0xff]  ;;  %v2042_v14 = vld [vmem:[#allocation15 + $0x1d8] sm:$0xff] }
 0x36d   :  { %v3137_v15 = vpack.c.bf16 %v2037_v12, %v2035_v11  ;;  %v2244_v11 = vld [vmem:[#allocation18 + $0x48] sm:$0xff]  ;;  %v2261_v12 = vld [vmem:[#allocation18 + $0xd0] sm:$0xff] }
 0x36e   :  { %3066 = vmatpush1.bf16.msra.mxu0 %v3065_v35  ;;  %v2005_v35 = vld [vmem:[#allocation15 + $0xb0] sm:$0xff] }
 0x36f   :  { %3068 = vmatprep.subr.bf16.mxu0 %v3067_v20  ;;  %v2008_v20 = vld [vmem:[#allocation15 + $0xc8] sm:$0xff]  ;;  %3102 = vmatpush1.bf16.msra.mxu1 %v3101_v18  ;;  %v3105_v22 = vpack.c.bf16 %v2005_v35, %v2003_v19  ;;  %v2041_v18 = vld [vmem:[#allocation15 + $0x1d0] sm:$0xff]  ;;  %v2046_v35 = vld [vmem:[#allocation15 + $0x1f8] sm:$0xff] }
 0x370   :  { %v3107_v23 = vpack.c.bf16 %v2010_v21, %v2008_v20  ;;  %v2044_v19 = vld [vmem:[#allocation15 + $0x1e8] sm:$0xff]  ;;  %v2043_v21 = vld [vmem:[#allocation15 + $0x1e0] sm:$0xff] }
 0x371   :  { %v3143_v20 = vpack.c.bf16 %v2046_v35, %v2044_v19 }
 0x372   :  { %3070 = vmatpush1.bf16.msra.mxu0 %v3069_v25  ;;  %v2009_v25 = vld [vmem:[#allocation15 + $0xd0] sm:$0xff] }
 0x373   :  { %3072 = vmatprep.subr.bf16.mxu0 %v3071_v36  ;;  %v2012_v36 = vld [vmem:[#allocation15 + $0xe8] sm:$0xff]  ;;  %v3109_v27 = vpack.c.bf16 %v2009_v25, %v2007_v24  ;;  %v2050_v25 = vld [vmem:[#allocation15 + $0x218] sm:$0xff] }
 0x374   :  { %v3111_v28 = vpack.c.bf16 %v2014_v26, %v2012_v36  ;;  %v2048_v24 = vld [vmem:[#allocation15 + $0x208] sm:$0xff]  ;;  %v3873_v26 = vld [vmem:[#allocation14] sm:$0x3f] }
 0x375   :  { %v3147_v36 = vpack.c.bf16 %v2050_v25, %v2048_v24 }
 0x376   :  { %3074 = vmatpush1.bf16.msra.mxu0 %v3073_v30  ;;  %v2013_v30 = vld [vmem:[#allocation15 + $0xf0] sm:$0xff] }
 0x377   :  { %3076 = vmatprep.subr.bf16.mxu0 %v3075_v32  ;;  %v2016_v32 = vld [vmem:[#allocation15 + $0x108] sm:$0xff]  ;;  %v3113_v34 = vpack.c.bf16 %v2013_v30, %v2011_v29 }
 0x378   :  { %v3115_v38 = vpack.c.bf16 %v2018_v33, %v2016_v32 }
 0x37a   :  { %3078 = vmatpush1.bf16.msra.mxu0 %v3077_v39  ;;  %v2017_v39 = vld [vmem:[#allocation15 + $0x110] sm:$0xff] }
 0x37b   :  { %3080 = vmatprep.subr.bf16.mxu0 %v3079_v40  ;;  %v2020_v40 = vld [vmem:[#allocation15 + $0x128] sm:$0xff]  ;;  %v3117_v43 = vpack.c.bf16 %v2017_v39, %v2015_v37 }
 0x37e   :  { %3082 = vmatpush1.bf16.msra.mxu0 %v3081_v44  ;;  %v3119_v44 = vpack.c.bf16 %v2022_v41, %v2020_v40  ;;  %v2251_v41 = vld [vmem:[#allocation18 + $0x80] sm:$0xff] }
 0x381   :  { %1968 = vmatmul.mubr.f32.vlgmr.msra.gmra.mrb[8].mxu0 %v3859_v42  ;;  %v3103_v42 = vpack.c.bf16 %v2006_v17, %v2004_v16  ;;  %v3139_v16 = vpack.c.bf16 %v2042_v14, %v2040_v13  ;;  %v2039_v17 = vld [vmem:[#allocation15 + $0x1c0] sm:$0xff] }
 0x382   :  { %v2262_v13 = vld [vmem:[#allocation18 + $0xd8] sm:$0xff] }
 0x383   :  { %3104 = vmatprep.subr.bf16.mxu1 %v3103_v42  ;;  %v3141_v42 = vpack.c.bf16 %v2041_v18, %v2039_v17  ;;  %v2246_v17 = vld [vmem:[#allocation18 + $0x58] sm:$0xff]  ;;  %v2263_v18 = vld [vmem:[#allocation18 + $0xe0] sm:$0xff] }
 0x384   :  { %3106 = vmatpush1.bf16.msra.mxu1 %v3105_v22  ;;  %v2045_v22 = vld [vmem:[#allocation15 + $0x1f0] sm:$0xff] }
 0x385   :  { %3108 = vmatprep.subr.bf16.mxu1 %v3107_v23  ;;  %v3145_v23 = vpack.c.bf16 %v2045_v22, %v2043_v21  ;;  %v1529_v21 = vrot.slane %v3873_v26, %v3829_v60  ;;  %v1537_v22 = vrot.slane %v3873_v26, %v3821_v55 }
 0x388   :  { %3110 = vmatpush1.bf16.msra.mxu1 %v3109_v27  ;;  %v1521_v27 = vrot.slane %v3873_v26, %v3825_v57 }
 0x389   :  { %3112 = vmatprep.subr.bf16.mxu1 %v3111_v28  ;;  %v1533_v28 = vrot.slane %v3873_v26, %v3832_v63  ;;  %v3183_v63 = vpack.c.bf16 %v2254_v48, %v2253_v47 }
 0x38c   :  { %3114 = vmatpush1.bf16.msra.mxu1 %v3113_v34 }
 0x38d   :  { %3116 = vmatprep.subr.bf16.mxu1 %v3115_v38 }
 0x390   :  { %3118 = vmatpush1.bf16.msra.mxu1 %v3117_v43  ;;  %v2252_v43 = vld [vmem:[#allocation18 + $0x88] sm:$0xff] }
 0x391   :  { %3120 = vmatprep.subr.bf16.mxu1 %v3119_v44  ;;  %v2235_v44 = vld [vmem:[#allocation18] sm:$0xff]  ;;  %v3179_v45 = vpack.c.bf16 %v2252_v43, %v2251_v41  ;;  %v2054_v41 = vld [vmem:[#allocation15 + $0x238] sm:$0xff] }
 0x393   :  { %3180 = vmatprep.subr.bf16.mxu0 %v3179_v45 }
 0x394   :  { %3122 = vmatpush1.bf16.msra.mxu1 %v3121_v49  ;;  %v3181_v49 = vpack.c.bf16 %v2236_v46, %v2235_v44 }
 0x395   :  { %3124 = vmatprep.subr.bf16.mxu1 %v3123_v50  ;;  %v2237_v50 = vld [vmem:[#allocation18 + $0x10] sm:$0xff] }
 0x396   :  { %3182 = vmatpush3.bf16.msra.mxu0 %v3181_v49  ;;  %v3185_v58 = vpack.c.bf16 %v2238_v51, %v2237_v50  ;;  %v2055_v49 = vld [vmem:[#allocation15 + $0x240] sm:$0xff]  ;;  %v2060_v50 = vld [vmem:[#allocation15 + $0x268] sm:$0xff]  ;;  %v2062_v51 = vld [vmem:[#allocation15 + $0x278] sm:$0xff] }
 0x397   :  { %3184 = vmatprep.subr.bf16.mxu0 %v3183_v63  ;;  %v2057_v63 = vld [vmem:[#allocation15 + $0x250] sm:$0xff] }
 0x398   :  { %3126 = vmatpush1.bf16.msra.mxu1 %v3125_v59  ;;  %v3187_v59 = vpack.c.bf16 %v2256_v54, %v2255_v52  ;;  %v3157_v52 = vpack.c.bf16 %v2057_v63, %v2055_v49  ;;  %v3159_v54 = vpack.c.bf16 %v2062_v51, %v2060_v50 }
 0x399   :  { %3128 = vmatprep.subr.bf16.mxu1 %v3127_v61  ;;  %v2239_v61 = vld [vmem:[#allocation18 + $0x20] sm:$0xff] }
 0x39a   :  { %3186 = vmatpush3.bf16.msra.mxu0 %v3185_v58  ;;  %v3189_v3 = vpack.c.bf16 %v2240_v62, %v2239_v61  ;;  %v2059_v58 = vld [vmem:[#allocation15 + $0x260] sm:$0xff]  ;;  %v2064_v61 = vld [vmem:[#allocation15 + $0x288] sm:$0xff]  ;;  %v2066_v62 = vld [vmem:[#allocation15 + $0x298] sm:$0xff] }
 0x39b   :  { %3188 = vmatprep.subr.bf16.mxu0 %v3187_v59  ;;  %v2061_v59 = vld [vmem:[#allocation15 + $0x270] sm:$0xff] }
 0x39c   :  { %3130 = vmatpush1.bf16.msra.mxu1 %v3129_v4  ;;  %v3191_v4 = vpack.c.bf16 %v2258_v2, %v2257_v0  ;;  %v3163_v0 = vpack.c.bf16 %v2066_v62, %v2064_v61  ;;  %v2063_v2 = vld [vmem:[#allocation15 + $0x280] sm:$0xff] }
 0x39d   :  { %3132 = vmatprep.subr.bf16.mxu1 %v3131_v5  ;;  %v2241_v5 = vld [vmem:[#allocation18 + $0x30] sm:$0xff] }
 0x39e   :  { %3190 = vmatpush3.bf16.msra.mxu0 %v3189_v3  ;;  %v3193_v9 = vpack.c.bf16 %v2242_v6, %v2241_v5  ;;  %v2065_v3 = vld [vmem:[#allocation15 + $0x290] sm:$0xff]  ;;  %v2070_v5 = vld [vmem:[#allocation15 + $0x2b8] sm:$0xff] }
 0x39f   :  { %3192 = vmatprep.subr.bf16.mxu0 %v3191_v4  ;;  %v2068_v4 = vld [vmem:[#allocation15 + $0x2a8] sm:$0xff]  ;;  %v3165_v6 = vpack.c.bf16 %v2065_v3, %v2063_v2 }
 0x3a0   :  { %3134 = vmatpush1.bf16.msra.mxu1 %v3133_v10  ;;  %v3195_v10 = vpack.c.bf16 %v2260_v8, %v2259_v7  ;;  %v3167_v7 = vpack.c.bf16 %v2070_v5, %v2068_v4  ;;  %v2067_v8 = vld [vmem:[#allocation15 + $0x2a0] sm:$0xff] }
 0x3a1   :  { %3136 = vmatprep.subr.bf16.mxu1 %v3135_v31  ;;  %v2243_v31 = vld [vmem:[#allocation18 + $0x40] sm:$0xff] }
 0x3a2   :  { %3194 = vmatpush3.bf16.msra.mxu0 %v3193_v9  ;;  %v3197_v14 = vpack.c.bf16 %v2244_v11, %v2243_v31  ;;  %v2069_v9 = vld [vmem:[#allocation15 + $0x2b0] sm:$0xff]  ;;  %v2074_v31 = vld [vmem:[#allocation15 + $0x2d8] sm:$0xff] }
 0x3a3   :  { %3196 = vmatprep.subr.bf16.mxu0 %v3195_v10  ;;  %v2072_v10 = vld [vmem:[#allocation15 + $0x2c8] sm:$0xff]  ;;  %v3169_v11 = vpack.c.bf16 %v2069_v9, %v2067_v8 }
 0x3a4   :  { %3138 = vmatpush1.bf16.msra.mxu1 %v3137_v15  ;;  %v3199_v15 = vpack.c.bf16 %v2262_v13, %v2261_v12  ;;  %v3171_v12 = vpack.c.bf16 %v2074_v31, %v2072_v10  ;;  %v2071_v13 = vld [vmem:[#allocation15 + $0x2c0] sm:$0xff] }
 0x3a5   :  { %3140 = vmatprep.subr.bf16.mxu1 %v3139_v16  ;;  %v2245_v16 = vld [vmem:[#allocation18 + $0x50] sm:$0xff] }
 0x3a6   :  { %3198 = vmatpush3.bf16.msra.mxu0 %v3197_v14  ;;  %v3201_v19 = vpack.c.bf16 %v2246_v17, %v2245_v16  ;;  %v2073_v14 = vld [vmem:[#allocation15 + $0x2d0] sm:$0xff]  ;;  %v2078_v16 = vld [vmem:[#allocation15 + $0x2f8] sm:$0xff] }
 0x3a7   :  { %3200 = vmatprep.subr.bf16.mxu0 %v3199_v15  ;;  %v2076_v15 = vld [vmem:[#allocation15 + $0x2e8] sm:$0xff]  ;;  %v3173_v17 = vpack.c.bf16 %v2073_v14, %v2071_v13 }
 0x3a8   :  { %3142 = vmatpush1.bf16.msra.mxu1 %v3141_v42  ;;  %v2264_v42 = vld [vmem:[#allocation18 + $0xe8] sm:$0xff] }
 0x3a9   :  { %3144 = vmatprep.subr.bf16.mxu1 %v3143_v20  ;;  %v3203_v35 = vpack.c.bf16 %v2264_v42, %v2263_v18  ;;  %v1525_v20 = vrot.slane %v3873_v26, %v3819_v53  ;;  %v3175_v18 = vpack.c.bf16 %v2078_v16, %v2076_v15  ;;  %v2075_v42 = vld [vmem:[#allocation15 + $0x2e0] sm:$0xff] }
 0x3aa   :  { %3202 = vmatpush3.bf16.msra.mxu0 %v3201_v19  ;;  %v2077_v19 = vld [vmem:[#allocation15 + $0x2f0] sm:$0xff] }
 0x3ab   :  { %3204 = vmatprep.subr.bf16.mxu0 %v3203_v35  ;;  %v3177_v35 = vpack.c.bf16 %v2077_v19, %v2075_v42 }
 0x3ac   :  { %3146 = vmatpush1.bf16.msra.mxu1 %v3145_v23  ;;  %v1541_v23 = vrot.slane %v3873_v26, %v3823_v56  ;;  %v2051_v56 = vld [vmem:[#allocation15 + $0x220] sm:$0xff]  ;;  %v2053_v26 = vld [vmem:[#allocation15 + $0x230] sm:$0xff] }
 0x3ad   :  { %3148 = vmatprep.subr.bf16.mxu1 %v3147_v36  ;;  %v3153_v47 = vpack.c.bf16 %v2053_v26, %v2051_v56 }
 0x3f4   :  { %v1685_v29 = vpop.f32.mrb[6].mxu0  ;;  %v3879_v30 = vpop.f32.mrb[8].mxu1 }
 0x3f5   :  { %v3219_v32 = vadd.f32 %v1685_v29, %v1521_v27  ;;  %v1687_v33 = vpop.f32.mrb[7].mxu0  ;;  %v1829_v34 = vpop.f32.mrb[9].mxu1  ;;  %v3221_v25 = vadd.f32 %v3879_v30, %v1529_v21  ;;  %v2056_v30 = vld [vmem:[#allocation15 + $0x248] sm:$0xff] }
 0x3f6   :  { %v3222_v38 = vadd.f32 %v1829_v34, %v1533_v28  ;;  %v3220_v24 = vadd.f32 %v1687_v33, %v1525_v20  ;;  %v2049_v34 = vld [vmem:[#allocation15 + $0x210] sm:$0xff]  ;;  %v2058_v33 = vld [vmem:[#allocation15 + $0x258] sm:$0xff]  ;;  %v2247_v20 = vld [vmem:[#allocation18 + $0x60] sm:$0xff] }
 0x3f7   :  { %v1974_v37 = vmax.f32 %v3219_v32, 0.0  ;;  %v2047_v32 = vld [vmem:[#allocation15 + $0x200] sm:$0xff]  ;;  %v1976_v60 = vmax.f32 %v3221_v25, 0.0  ;;  %v3155_v48 = vpack.c.bf16 %v2058_v33, %v2056_v30  ;;  %v2248_v21 = vld [vmem:[#allocation18 + $0x68] sm:$0xff] }
 0x3f8   :  { %v1977_v39 = vmax.f32 %v3222_v38, 0.0  ;;  %v1975_v38 = vmax.f32 %v3220_v24, 0.0  ;;  %v3149_v55 = vpack.c.bf16 %v2049_v34, %v2047_v32  ;;  %v2266_v24 = vld [vmem:[#allocation18 + $0xf8] sm:$0xff]  ;;  %v2345_v33 = vld [vmem:[#allocation21] sm:$0x1] }
 0x3fa   :  { %v3881_v40 = vmax.f32 %v1974_v37, %v1977_v39  ;;  %v2052_v39 = vld [vmem:[#allocation15 + $0x228] sm:$0xff] }
 0x3fb   :  { %v3151_v46 = vpack.c.bf16 %v2054_v41, %v2052_v39 }
 0x454   :  { %v1969_v36 = vpop.f32.mrb[8].mxu0 }
 0x455   :  { %v3223_v27 = vadd.f32 %v1969_v36, %v1537_v22  ;;  %v1971_v28 = vpop.f32.mrb[9].mxu0  ;;  %v3205_v22 = vpack.c.bf16 %v2248_v21, %v2247_v20  ;;  %v2249_v36 = vld [vmem:[#allocation18 + $0x70] sm:$0xff] }
 0x456   :  { %v3224_v29 = vadd.f32 %v1971_v28, %v1541_v23  ;;  %v2265_v23 = vld [vmem:[#allocation18 + $0xf0] sm:$0xff] }
 0x457   :  { %v1978_v37 = vmax.f32 %v3223_v27, 0.0  ;;  %3206 = vmatpush3.bf16.msra.mxu0 %v3205_v22  ;;  %v3207_v25 = vpack.c.bf16 %v2266_v24, %v2265_v23  ;;  %v2250_v27 = vld [vmem:[#allocation18 + $0x78] sm:$0xff] }
 0x458   :  { %v1979_v43 = vmax.f32 %v3224_v29, 0.0  ;;  %v3209_v28 = vpack.c.bf16 %v2250_v27, %v2249_v36  ;;  %v2079_v29 = vld [vmem:[#allocation17] sm:$0x3] }
 0x459   :  { %v1981_v44 = vmax.f32 %v1975_v38, %v1978_v37  ;;  %3208 = vmatprep.subr.bf16.mxu0 %v3207_v25  ;;  %v2084_v32 = vrot.slane %v2079_v29, %v3825_v57  ;;  %v2088_v34 = vrot.slane %v2079_v29, %v3819_v53 }
 0x45a   :  { %v1982_v45 = vmax.f32 %v1976_v60, %v1979_v43 }
 0x45b   :  { %2155 = vmatprep.mubr.f32.mxu1 %v1981_v44  ;;  %3210 = vmatpush3.bf16.msra.mxu0 %v3209_v28  ;;  %v2346_v44 = vld [vmem:[#allocation2] sm:$0x1] }
 0x45c   :  { %2156 = vmatmul.mubr.f32.vlgmr.msra.gmra.mrb[10].mxu1 %v3881_v40  ;;  %v3161_v40 = vpack.c.bf16 %v2061_v59, %v2059_v58  ;;  %2490 = vmatprep.subr.mxu0 %v3582_v1 }
 0x45d   :  { %3150 = vmatpush1.bf16.msra.mxu1 %v3149_v55  ;;  %2226 = vmatprep.mubr.f32.mxu1 %v3582_v1  ;;  %v3584_v55 = vmov 0  }
 0x45e   :  { %3152 = vmatprep.subr.bf16.mxu1 %v3151_v46  ;;  %3261 = vset.pattern.permute.xlu0 %v3584_v55  ;;  %v2452_v46 = vld [vmem:[#allocation20] ss:$0 sm:$0xff] }
 0x45f   :  { %2349 = vperm.xlu0 %3261, %v2346_v44  }
 0x461   :  { %3154 = vmatpush1.bf16.msra.mxu1 %v3153_v47 }
 0x462   :  { %3156 = vmatprep.subr.bf16.mxu1 %v3155_v48 }
 0x465   :  { %3158 = vmatpush1.bf16.msra.mxu1 %v3157_v52 }
 0x466   :  { %3160 = vmatprep.subr.bf16.mxu1 %v3159_v54 }
 0x469   :  { %3162 = vmatpush1.bf16.msra.mxu1 %v3161_v40 }
 0x46a   :  { %3164 = vmatprep.subr.bf16.mxu1 %v3163_v0 }
 0x46d   :  { %3166 = vmatpush1.bf16.msra.mxu1 %v3165_v6 }
 0x46e   :  { %3168 = vmatprep.subr.bf16.mxu1 %v3167_v7 }
 0x471   :  { %3170 = vmatpush1.bf16.msra.mxu1 %v3169_v11 }
 0x472   :  { %3172 = vmatprep.subr.bf16.mxu1 %v3171_v12 }
 0x475   :  { %3174 = vmatpush1.bf16.msra.mxu1 %v3173_v17 }
 0x476   :  { %3176 = vmatprep.subr.bf16.mxu1 %v3175_v18 }
 0x479   :  { %3178 = vmatpush1.bf16.msra.mxu1 %v3177_v35 }
 0x47c   :  { %2227 = vmatmul.mubr.f32.vlgmr.msra.gmra.mrb[10].mxu1 %v1982_v45 }
 0x4de   :  { %v2350_v47 = vpop.permute.xlu0 %2349 }
 0x4df   :  { %v2355_v48 = vrot.slane %v2350_v47, %v3825_v57 }
 0x54f   :  { %v2228_v38 = vpop.f32.mrb[10].mxu1 }
 0x550   :  { %v3225_v37 = vadd.f32 %v2228_v38, %v2084_v32  ;;  %v2230_v39 = vpop.f32.mrb[11].mxu1 }
 0x551   :  { %v3226_v41 = vadd.f32 %v2230_v39, %v2088_v34 }
 0x552   :  { %v2233_v43 = vmax.f32 %v3225_v37, 0.0 }
 0x553   :  { %v2234_v60 = vmax.f32 %v3226_v41, 0.0 }
 0x555   :  { %2338 = vmatprep.mubr.f32.mxu0 %v2234_v60 }
 0x556   :  { %2339 = vmatmul.mubr.f32.vlgmr.msra.gmra.mrb[10].mxu0 %v2233_v43 }
 0x557   :  { %2492 = vmatprep.mubr.msk.f32.mxu0 %vm3583_vm1, %v3582_v1 }
 0x629   :  { %v2485_v45 = vpop.f32.mrb[10].mxu0 }
 0x62a   :  { %v2486_v56 = vpop.f32.mrb[11].mxu0 }
 0x62b   :  { %v2487_v26 = vadd.f32 %v2486_v56, %v2485_v45 }
 0x62d   :  { %v2341_v53 = vadd.f32 %v2487_v26, %v2452_v46 }
 0x62f   :  { %v2344_v30 = vmax.f32 %v2341_v53, 0.0 }
 0x631   :  { %2491 = vmatpush3.xpose.msra.mxu0 %v2344_v30 }
 0x634   :  { %2493 = vmatmul.mubr.f32.vlgmr.msra.gmra.mrb[12].mxu0 %v2345_v33 }
 0x707   :  { %v2422_v49 = vpop.f32.mrb[12].mxu0 }
 0x708   :  { %v2423_v1 = vadd.f32 %v2422_v49, %v2355_v48  ;;  %v2494_v63 = vpop.f32.mrb[13].mxu0 }
 0x70a   :  { %2427 = vst.msk [vmem:[#allocation23] sm:$0x1] %vm2426_vm2, %v2423_v1 }
 0x70b   :  { %3537 = shalt.err (!%p3534_p2)
}
 0x70c   :  { %s3538_s2 = scalar_lea.hbm %s3924_s13, 16 }
 0x70d   :  { %p3539_p3 = scmp.ne.s32.totalorder %s3924_s13, %s3538_s2  ;;  %p3542_p4 = scmp.lt.u32.totalorder %s3538_s2, %s3924_s13 }
 0x70f   :  { %p3544_p5 = pnand %p3542_p4, %p3539_p3 }
 0x711   :  { %3547 = shalt.err (!%p3544_p5)
}
 0x712   :  { %2437 = dma.vmem_to_hbm [thread:$0]  %s2435_s27, 16, %s3924_s13, [#allocation5]  }
 0x713   :  { %3562 = dma.done.wait [#allocation5], 16  }
 0x714   :  { %3563 = vsyncadd [#allocation5], 4294967280 }
 0x715   :  { %2441 = vsyncpa [#allocation4], 1 }
 0x716   :  { %2442 = vsyncpa [#allocation7], 1 }
 0x717   :  { %2443 = vsyncpa [#allocation10], 1 }
 0x718   :  { %2444 = vsyncpa [#allocation13], 1 }
 0x719   :  { %2445 = vsyncpa [#allocation16], 1 }
 0x71a   :  { %2446 = vsyncpa [#allocation19], 1 }
 0x71b   :  { %2447 = vsyncpa [#allocation22], 1 }
 0x71c   :  { %2448 = vsyncpa [#allocation5], 1 }

</bundles_post_ra>
